<compile_context>
chip_gen: v6e
topology: v6e:2x2x1
jax: 0.10.0
libtpu: 0.0.40
codegen_flags: <defaults>
</compile_context>

<pallas_src>
import functools

import jax
import jax.numpy as jnp
from jax.experimental import pallas as pl
from jax.experimental.pallas import tpu as pltpu

LATENT = 100
LATENT_PAD = 128      # pad K of first matmul to lane width (cheap: input only)
HIDDEN = 256
OUT = 784             # output kept unpadded (block dim == full array dim)
TB = 256              # batch tile (multiple of 256 for the v6e/v7x 256x256 MXU)


def generator_kernel(x_ref, w1_ref, b1_ref, w2_ref, b2_ref, o_ref):
    # Hidden layer: Linear(100->256) in bf16 with f32 accumulation.
    h = jnp.dot(x_ref[...], w1_ref[...],
                preferred_element_type=jnp.float32) + b1_ref[...]   # (TB, 256) f32
    h = jnp.maximum(h, 0.2 * h)                                     # LeakyReLU(0.2)

    # Output layer: Linear(256->784) + Sigmoid (single EUP op via tanh).
    y = jnp.dot(h.astype(jnp.bfloat16), w2_ref[...],
                preferred_element_type=jnp.float32) + b2_ref[...]   # (TB, 784) f32
    o_ref[...] = (0.5 * (jnp.tanh(0.5 * y) + 1.0)).astype(o_ref.dtype)


def prepare_params(w1, b1, w2, b2):
    """One-time parameter prep (pad + bf16 cast), hoisted out of the per-call path."""
    w1p = jnp.pad(w1.astype(jnp.float32),
                  ((0, LATENT_PAD - LATENT), (0, 0))).astype(jnp.bfloat16)
    b1p = b1.reshape(1, HIDDEN).astype(jnp.float32)
    w2p = w2.astype(jnp.bfloat16)                       # (256, 784), no padding
    b2p = b2.reshape(1, OUT).astype(jnp.float32)
    return w1p, b1p, w2p, b2p


def _vmem_limit_bytes(tb):
    weights = LATENT_PAD * HIDDEN * 2 + HIDDEN * OUT * 2 + (HIDDEN + OUT) * 4
    tiles = 2 * tb * LATENT_PAD * 2 + 2 * tb * OUT * 2   # double-buffered in/out (bf16)
    scratch = tb * (HIDDEN + OUT) * 4                     # f32 intermediates
    # 2x safety factor, floor 16 MiB, never assume more than 48 MiB (v7x has 64 MiB).
    return int(min(max(2 * (weights + tiles + scratch), 16 << 20), 48 << 20))


@functools.partial(jax.jit, static_argnames=("tb",))
def generator_forward(x, w1p, b1p, w2p, b2p, *, tb=TB):
    """x: (B, 100) f32 latent noise; params pre-prepared by prepare_params().

    Returns (B, 784) bf16 (sigmoid outputs in [0, 1])."""
    B = x.shape[0]
    n_tiles = pl.cdiv(B, tb)
    Bp = n_tiles * tb

    # Per-call input prep only: cast to bf16 and pad K 100 -> 128 (tiny traffic).
    xp = x.astype(jnp.bfloat16)
    pad_rows = Bp - B
    xp = jnp.pad(xp, ((0, pad_rows), (0, LATENT_PAD - LATENT)))

    flops = 2 * Bp * (LATENT_PAD * HIDDEN + HIDDEN * OUT)
    bytes_accessed = (xp.size * 2                                   # bf16 input
                      + w1p.size * 2 + w2p.size * 2                 # bf16 weights
                      + b1p.size * 4 + b2p.size * 4                 # f32 biases
                      + Bp * OUT * 2)                               # bf16 output

    out = pl.pallas_call(
        generator_kernel,
        out_shape=jax.ShapeDtypeStruct((Bp, OUT), jnp.bfloat16),
        grid_spec=pltpu.PrefetchScalarGridSpec(
            num_scalar_prefetch=0,
            grid=(n_tiles,),
            in_specs=[
                pl.BlockSpec((tb, LATENT_PAD), lambda i: (i, 0)),      # x tile (pipelined)
                pl.BlockSpec((LATENT_PAD, HIDDEN), lambda i: (0, 0)),  # w1 (resident)
                pl.BlockSpec((1, HIDDEN), lambda i: (0, 0)),           # b1 (resident)
                pl.BlockSpec((HIDDEN, OUT), lambda i: (0, 0)),         # w2 (resident)
                pl.BlockSpec((1, OUT), lambda i: (0, 0)),              # b2 (resident)
            ],
            out_specs=pl.BlockSpec((tb, OUT), lambda i: (i, 0)),
        ),
        compiler_params=pltpu.CompilerParams(
            dimension_semantics=("parallel",),          # shard batch tiles across TCs
            vmem_limit_bytes=_vmem_limit_bytes(tb),
        ),
        cost_estimate=pl.CostEstimate(
            flops=flops,
            transcendentals=Bp * OUT,                   # one tanh per output element
            bytes_accessed=bytes_accessed,
        ),
    )(xp, w1p, b1p, w2p, b2p)

    # Only strip batch padding if B was not a tile multiple (no feature slice).
    return out if Bp == B else out[:B]


def init_params(key):
    """Mirror nn.Linear default init U(-1/sqrt(fan_in), +1/sqrt(fan_in)) in f32."""
    k1, k2, k3, k4 = jax.random.split(key, 4)
    lim1 = 1.0 / jnp.sqrt(float(LATENT))
    lim2 = 1.0 / jnp.sqrt(float(HIDDEN))
    w1 = jax.random.uniform(k1, (LATENT, HIDDEN), jnp.float32, -lim1, lim1)
    b1 = jax.random.uniform(k2, (HIDDEN,), jnp.float32, -lim1, lim1)
    w2 = jax.random.uniform(k3, (HIDDEN, OUT), jnp.float32, -lim2, lim2)
    b2 = jax.random.uniform(k4, (OUT,), jnp.float32, -lim2, lim2)
    return w1, b1, w2, b2


if __name__ == "__main__":
    key = jax.random.PRNGKey(0)
    k_in, k_params = jax.random.split(key)

    # 4 MXU-aligned batch tiles of 256 -> grid=(4,): >=2 iterations per TC on v7x.
    B = 1024
    x = jax.random.normal(k_in, (B, LATENT), jnp.float32)  # latent noise
    w1, b1, w2, b2 = init_params(k_params)

    # One-time weight prep (outside the per-call jitted path).
    w1p, b1p, w2p, b2p = prepare_params(w1, b1, w2, b2)

    out = jax.block_until_ready(
        generator_forward(x, w1p, b1p, w2p, b2p, tb=TB))

    # Full-precision f32 reference (PyTorch semantics). Kernel uses bf16 weights,
    # bf16 output store and a tanh-form sigmoid, so use a loose absolute tolerance.
    h_ref = x @ w1 + b1
    h_ref = jnp.where(h_ref > 0, h_ref, 0.2 * h_ref)
    y_ref = jax.nn.sigmoid(h_ref @ w2 + b2)

    assert out.shape == (B, OUT)
    assert out.dtype == jnp.bfloat16
    max_err = float(jnp.max(jnp.abs(out.astype(jnp.float32) - y_ref)))
    assert max_err < 3e-2, f"max abs error {max_err}"

    print("KERNEL_OK")
</pallas_src>

<mosaic_0001>
module attributes {stable_mosaic.version = 11 : i64} {
  func.func @generator_kernel(%arg0: i32, %arg1: memref<256x128xbf16, #tpu.memory_space<vmem>>, %arg2: memref<128x256xbf16, #tpu.memory_space<vmem>>, %arg3: memref<1x256xf32, #tpu.memory_space<vmem>>, %arg4: memref<256x784xbf16, #tpu.memory_space<vmem>>, %arg5: memref<1x784xf32, #tpu.memory_space<vmem>>, %arg6: memref<256x784xbf16, #tpu.memory_space<vmem>>) attributes {dimension_semantics = [#tpu.dimension_semantics<parallel>], iteration_bounds = array<i64: 4>, scalar_prefetch = 0 : i64, scratch_operands = 0 : i64, tpu.core_type = #tpu.core_type<tc>, window_params = [{transform_indices = @transform_0, window_bounds = array<i64: 256, 128>}, {pipeline_mode = #tpu.pipeline_mode<synchronous>, transform_indices = @transform_1, window_bounds = array<i64: 128, 256>}, {pipeline_mode = #tpu.pipeline_mode<synchronous>, transform_indices = @transform_2, window_bounds = array<i64: 1, 256>}, {pipeline_mode = #tpu.pipeline_mode<synchronous>, transform_indices = @transform_3, window_bounds = array<i64: 256, 784>}, {pipeline_mode = #tpu.pipeline_mode<synchronous>, transform_indices = @transform_4, window_bounds = array<i64: 1, 784>}, {transform_indices = @transform_5, window_bounds = array<i64: 256, 784>}]} {
    %c0 = arith.constant 0 : index
    %c0_0 = arith.constant 0 : index
    %0 = vector.load %arg1[%c0, %c0_0] : memref<256x128xbf16, #tpu.memory_space<vmem>>, vector<256x128xbf16>
    %c0_1 = arith.constant 0 : index
    %c0_2 = arith.constant 0 : index
    %1 = vector.load %arg2[%c0_1, %c0_2] : memref<128x256xbf16, #tpu.memory_space<vmem>>, vector<128x256xbf16>
    %cst = arith.constant dense<0.000000e+00> : vector<256x256xf32>
    %2 = tpu.matmul %0, %1, %cst {dimension_numbers = #tpu.dot_dimension_numbers<[1], [0], [0], [1], [0, 0, 1, 1], [], []>} : vector<256x128xbf16>, vector<128x256xbf16>, vector<256x256xf32> -> vector<256x256xf32>
    %c0_3 = arith.constant 0 : index
    %c0_4 = arith.constant 0 : index
    %3 = vector.load %arg3[%c0_3, %c0_4] : memref<1x256xf32, #tpu.memory_space<vmem>>, vector<1x256xf32>
    %4 = vector.broadcast %3 : vector<1x256xf32> to vector<256x256xf32>
    %5 = arith.addf %2, %4 : vector<256x256xf32>
    %cst_5 = arith.constant 2.000000e-01 : f32
    %6 = vector.broadcast %cst_5 : f32 to vector<256x256xf32>
    %7 = arith.mulf %6, %5 : vector<256x256xf32>
    %8 = arith.maximumf %5, %7 : vector<256x256xf32>
    %9 = arith.truncf %8 : vector<256x256xf32> to vector<256x256xbf16>
    %c0_6 = arith.constant 0 : index
    %c0_7 = arith.constant 0 : index
    %10 = vector.load %arg4[%c0_6, %c0_7] : memref<256x784xbf16, #tpu.memory_space<vmem>>, vector<256x784xbf16>
    %cst_8 = arith.constant dense<0.000000e+00> : vector<256x784xf32>
    %11 = tpu.matmul %9, %10, %cst_8 {dimension_numbers = #tpu.dot_dimension_numbers<[1], [0], [0], [1], [0, 0, 1, 1], [], []>} : vector<256x256xbf16>, vector<256x784xbf16>, vector<256x784xf32> -> vector<256x784xf32>
    %c0_9 = arith.constant 0 : index
    %c0_10 = arith.constant 0 : index
    %12 = vector.load %arg5[%c0_9, %c0_10] : memref<1x784xf32, #tpu.memory_space<vmem>>, vector<1x784xf32>
    %13 = vector.broadcast %12 : vector<1x784xf32> to vector<256x784xf32>
    %14 = arith.addf %11, %13 : vector<256x784xf32>
    %cst_11 = arith.constant 5.000000e-01 : f32
    %15 = vector.broadcast %cst_11 : f32 to vector<256x784xf32>
    %16 = arith.mulf %15, %14 : vector<256x784xf32>
    %17 = math.tanh %16 : vector<256x784xf32>
    %cst_12 = arith.constant 1.000000e+00 : f32
    %18 = vector.broadcast %cst_12 : f32 to vector<256x784xf32>
    %19 = arith.addf %17, %18 : vector<256x784xf32>
    %cst_13 = arith.constant 5.000000e-01 : f32
    %20 = vector.broadcast %cst_13 : f32 to vector<256x784xf32>
    %21 = arith.mulf %20, %19 : vector<256x784xf32>
    %22 = arith.truncf %21 : vector<256x784xf32> to vector<256x784xbf16>
    %c0_14 = arith.constant 0 : index
    %c0_15 = arith.constant 0 : index
    %23 = vector.load %arg6[%c0_14, %c0_15] : memref<256x784xbf16, #tpu.memory_space<vmem>>, vector<256x784xbf16>
    tpu.vector_store %arg6[%c0_14, %c0_15], %22 {strides = array<i32>} : memref<256x784xbf16, #tpu.memory_space<vmem>>, vector<256x784xbf16>,
    return
  }
  func.func @transform_0(%arg0: i32) -> (i32, i32) {
    %c0_i32 = arith.constant 0 : i32
    %c0_i32_0 = arith.constant 0 : i32
    return %arg0, %c0_i32 : i32, i32
  }
  func.func @transform_1(%arg0: i32) -> (i32, i32) {
    %c0_i32 = arith.constant 0 : i32
    %c0_i32_0 = arith.constant 0 : i32
    %c0_i32_1 = arith.constant 0 : i32
    return %c0_i32, %c0_i32_0 : i32, i32
  }
  func.func @transform_2(%arg0: i32) -> (i32, i32) {
    %c0_i32 = arith.constant 0 : i32
    %c0_i32_0 = arith.constant 0 : i32
    %c0_i32_1 = arith.constant 0 : i32
    return %c0_i32, %c0_i32_0 : i32, i32
  }
  func.func @transform_3(%arg0: i32) -> (i32, i32) {
    %c0_i32 = arith.constant 0 : i32
    %c0_i32_0 = arith.constant 0 : i32
    %c0_i32_1 = arith.constant 0 : i32
    return %c0_i32, %c0_i32_0 : i32, i32
  }
  func.func @transform_4(%arg0: i32) -> (i32, i32) {
    %c0_i32 = arith.constant 0 : i32
    %c0_i32_0 = arith.constant 0 : i32
    %c0_i32_1 = arith.constant 0 : i32
    return %c0_i32, %c0_i32_0 : i32, i32
  }
  func.func @transform_5(%arg0: i32) -> (i32, i32) {
    %c0_i32 = arith.constant 0 : i32
    %c0_i32_0 = arith.constant 0 : i32
    return %arg0, %c0_i32 : i32, i32
  }
}

</mosaic_0001>

<bundles_post_ra>
// kernel: generator_forward.1
= control target key start
LH: loop header
LB: loop body
LE: loop exit
PB: predicated region body
PF: predicated region fallthrough
CT: control target
= control target key end

     0   :  { %s5325_s18 = smov 0   ;;  %s7179_s0 = inlined_call_operand.vmem [shape: bf16[1024,128], index: 0, kind: input, shape index: {}]   ;;  %s7180_s1 = inlined_call_operand.vmem [shape: bf16[128,256], index: 1, kind: input, shape index: {}]   ;;  %s7181_s2 = inlined_call_operand.vmem [shape: f32[1,256], index: 2, kind: input, shape index: {}]   ;;  %s7182_s3 = inlined_call_operand.vmem [shape: bf16[256,784], index: 3, kind: input, shape index: {}]   ;;  %s7183_s4 = inlined_call_operand.vmem [shape: f32[1,784], index: 4, kind: input, shape index: {}]   ;;  %s7184_s5 = inlined_call_operand.vmem [shape: bf16[1024,784], index: 5, kind: output, shape index: {}]  }
   0x1 LB: > { %s4088_s19 = sadd.s32 4294967295, %s5292_s18   ;;  %p4092_p0 = scmp.ge.s32.totalorder %s5292_s18, 1  ;;  %s5292_s18 = sphi %s5325_s18, %s15_s18  }
   0x2   : > { %p188_p1 = scmp.lt.s32.totalorder %s5292_s18, 5 }
   0x4   : > { %p189_p2 = pnand %p4092_p0, %p188_p1 }
   0x6   : > { %192 = sbr.rel (%p189_p2) target bundleno = 788 (0x314), region = 40 }
   0xb   : > { %v4637_v0 = vld [vmem:[%s7180_s1 + $0x74] ss:$8 sps:$4 sm:$0xff]   ;;  %s4093_s22 = sshll.u32 %s4088_s19, 5  ;;  %v4639_v1 = vld [vmem:[%s7180_s1 + $0x70] ss:$8 sps:$4 sm:$0xff]   ;;  %v5294_v2 = vmov 0  }
   0xc   : > { %499 = vmatprep.mubr.bf16.mxu0 %v5294_v2  ;;  %p218_p3 = scmp.lt.s32.totalorder %s4093_s22, 127  ;;  %579 = vmatprep.mubr.bf16.mxu1 %v5294_v2  ;;  %v4640_v3 = vld [vmem:[%s7180_s1 + $0x64] ss:$8 sps:$4 sm:$0xff]   ;;  %v4642_v4 = vld [vmem:[%s7180_s1 + $0x60] ss:$8 sps:$4 sm:$0xff]   ;;  %vm3904_vm0 = vcmask 125952  }
   0xd   : > { %467 = vmatprep.subr.bf16.mxu0 %v4637_v0  ;;  %4611 = vmatprep.subr.bf16.mxu1 %v4637_v0  ;;  %v4643_v5 = vld [vmem:[%s7180_s1 + $0x54] ss:$8 sps:$4 sm:$0xff]   ;;  %v4645_v6 = vld [vmem:[%s7180_s1 + $0x50] ss:$8 sps:$4 sm:$0xff]   ;;  %v4646_v7 = vld [vmem:[%s7180_s1 + $0x44] ss:$8 sps:$4 sm:$0xff]  }
   0xe   : > { %468 = vmatpush1.bf16.msra.mxu0 %v4639_v1  ;;  %s7212_s22 = smov (!%p218_p3, %s4093_s22), 127  ;;  %4619 = vmatpush1.bf16.msra.mxu1 %v4639_v1  ;;  %v4648_v8 = vld [vmem:[%s7180_s1 + $0x40] ss:$8 sps:$4 sm:$0xff]   ;;  %v4649_v9 = vld [vmem:[%s7180_s1 + $0x34] ss:$8 sps:$4 sm:$0xff]  }
   0xf   : > { %469 = vmatprep.subr.bf16.mxu0 %v4640_v3  ;;  %4612 = vmatprep.subr.bf16.mxu1 %v4640_v3  ;;  %s4094_s6 = sshll.u32 %s7212_s22, 2  ;;  %v4651_v10 = vld [vmem:[%s7180_s1 + $0x30] ss:$8 sps:$4 sm:$0xff]   ;;  %v4652_v11 = vld [vmem:[%s7180_s1 + $0x24] ss:$8 sps:$4 sm:$0xff]   ;;  %s4627_s11 = smul.u32 28, %s7212_s22 }
  0x10   : > { %s5362_s13 = scalar_lea.vmem %s7179_s0, %s4094_s6  ;;  %v4654_v12 = vld [vmem:[%s7180_s1 + $0x20] ss:$8 sps:$4 sm:$0xff]   ;;  %v4655_v13 = vld [vmem:[%s7180_s1 + $0x14] ss:$8 sps:$4 sm:$0xff]   ;;  %v4657_v14 = vld [vmem:[%s7180_s1 + $0x10] ss:$8 sps:$4 sm:$0xff]  }
  0x11   : > { %v4658_v15 = vld [vmem:[%s7180_s1 + $0x4] ss:$8 sps:$4 sm:$0xff]   ;;  %v4660_v16 = vld [vmem:[%s7180_s1] ss:$8 sps:$4 sm:$0xff]   ;;  %v4679_v17 = vld [vmem:[%s7182_s3 + $0x194] ss:$28 sps:$4 sm:$0xff]   ;;  %s6124_s14 = scalar_lea.vmem %s7184_s5, %s4627_s11 }
  0x12   : > { %470 = vmatpush1.bf16.msra.mxu0 %v4642_v4  ;;  %4620 = vmatpush1.bf16.msra.mxu1 %v4642_v4  ;;  %v4682_v18 = vld [vmem:[%s7182_s3 + $0x18c] ss:$28 sps:$4 sm:$0xff]   ;;  %v4661_v19 = vld [vmem:[%s5362_s13] sm:$0xff]   ;;  %v4685_v23 = vld [vmem:[%s7182_s3 + $0x15c] ss:$28 sps:$4 sm:$0xff]  }
  0x13   : > { %471 = vmatprep.subr.bf16.mxu0 %v4643_v5  ;;  %4613 = vmatprep.subr.bf16.mxu1 %v4643_v5  ;;  %v4669_v20 = vld [vmem:[%s5362_s13 + $0x40] sm:$0xff]   ;;  %v4677_v21 = vld [vmem:[%s7182_s3 + $0x190] ss:$28 sps:$4 sm:$0xff]   ;;  %v4683_v25 = vld [vmem:[%s7182_s3 + $0x158] ss:$28 sps:$4 sm:$0xff]  }
  0x14   : > { %v4680_v22 = vld [vmem:[%s7182_s3 + $0x188] ss:$28 sps:$4 sm:$0xff]   ;;  %v4688_v24 = vld [vmem:[%s7182_s3 + $0x154] ss:$28 sps:$4 sm:$0xff]   ;;  %v4694_v28 = vld [vmem:[%s7182_s3 + $0x11c] ss:$28 sps:$4 sm:$0xff]  }
  0x15   : > { %v4686_v26 = vld [vmem:[%s7182_s3 + $0x150] ss:$28 sps:$4 sm:$0xff]   ;;  %v4691_v27 = vld [vmem:[%s7182_s3 + $0x124] ss:$28 sps:$4 sm:$0xff]   ;;  %v4692_v32 = vld [vmem:[%s7182_s3 + $0x118] ss:$28 sps:$4 sm:$0xff]  }
  0x16   : > { %472 = vmatpush1.bf16.msra.mxu0 %v4645_v6  ;;  %4621 = vmatpush1.bf16.msra.mxu1 %v4645_v6  ;;  %v4662_v29 = vld [vmem:[%s5362_s13 + $0x8] sm:$0xff]   ;;  %v4689_v31 = vld [vmem:[%s7182_s3 + $0x120] ss:$28 sps:$4 sm:$0xff]   ;;  %v4703_v37 = vld [vmem:[%s7182_s3 + $0xb4] ss:$28 sps:$4 sm:$0xff]  }
  0x17   : > { %473 = vmatprep.subr.bf16.mxu0 %v4646_v7  ;;  %4614 = vmatprep.subr.bf16.mxu1 %v4646_v7  ;;  %v4670_v30 = vld [vmem:[%s5362_s13 + $0x48] sm:$0xff]   ;;  %v4700_v34 = vld [vmem:[%s7182_s3 + $0xe4] ss:$28 sps:$4 sm:$0xff]   ;;  %v4663_v39 = vld [vmem:[%s5362_s13 + $0x10] sm:$0xff]  }
  0x18   : > { %v4697_v33 = vld [vmem:[%s7182_s3 + $0xec] ss:$28 sps:$4 sm:$0xff]   ;;  %v4698_v36 = vld [vmem:[%s7182_s3 + $0xe0] ss:$28 sps:$4 sm:$0xff]   ;;  %v4671_v40 = vld [vmem:[%s5362_s13 + $0x50] sm:$0xff]  }
  0x19   : > { %v4695_v35 = vld [vmem:[%s7182_s3 + $0xe8] ss:$28 sps:$4 sm:$0xff]   ;;  %v4701_v41 = vld [vmem:[%s7182_s3 + $0xb0] ss:$28 sps:$4 sm:$0xff]   ;;  %v4709_v43 = vld [vmem:[%s7182_s3 + $0x7c] ss:$28 sps:$4 sm:$0xff]  }
  0x1a   : > { %474 = vmatpush1.bf16.msra.mxu0 %v4648_v8  ;;  %4622 = vmatpush1.bf16.msra.mxu1 %v4648_v8  ;;  %v4706_v38 = vld [vmem:[%s7182_s3 + $0xac] ss:$28 sps:$4 sm:$0xff]   ;;  %v4712_v44 = vld [vmem:[%s7182_s3 + $0x74] ss:$28 sps:$4 sm:$0xff]   ;;  %v4715_v47 = vld [vmem:[%s7182_s3 + $0x44] ss:$28 sps:$4 sm:$0xff]  }
  0x1b   : > { %475 = vmatprep.subr.bf16.mxu0 %v4649_v9  ;;  %4615 = vmatprep.subr.bf16.mxu1 %v4649_v9  ;;  %v4704_v42 = vld [vmem:[%s7182_s3 + $0xa8] ss:$28 sps:$4 sm:$0xff]   ;;  %v4707_v45 = vld [vmem:[%s7182_s3 + $0x78] ss:$28 sps:$4 sm:$0xff]   ;;  %v4710_v46 = vld [vmem:[%s7182_s3 + $0x70] ss:$28 sps:$4 sm:$0xff]  }
  0x1c   : > { %v4718_v48 = vld [vmem:[%s7182_s3 + $0x3c] ss:$28 sps:$4 sm:$0xff]   ;;  %v4721_v53 = vld [vmem:[%s7182_s3 + $0xc] ss:$28 sps:$4 sm:$0xff]   ;;  %v4724_v54 = vld [vmem:[%s7182_s3 + $0x4] ss:$28 sps:$4 sm:$0xff]  }
  0x1d   : > { %v4664_v49 = vld [vmem:[%s5362_s13 + $0x18] sm:$0xff]   ;;  %v4719_v55 = vld [vmem:[%s7182_s3 + $0x8] ss:$28 sps:$4 sm:$0xff]   ;;  %v4727_v57 = vld [vmem:[%s7182_s3 + $0x354] ss:$28 sps:$4 sm:$0xff]  }
  0x1e   : > { %476 = vmatpush1.bf16.msra.mxu0 %v4651_v10  ;;  %4623 = vmatpush1.bf16.msra.mxu1 %v4651_v10  ;;  %v4672_v50 = vld [vmem:[%s5362_s13 + $0x58] sm:$0xff]   ;;  %v4665_v58 = vld [vmem:[%s5362_s13 + $0x20] sm:$0xff]   ;;  %v4730_v60 = vld [vmem:[%s7182_s3 + $0x34c] ss:$28 sps:$4 sm:$0xff]  }
  0x1f   : > { %477 = vmatprep.subr.bf16.mxu0 %v4652_v11  ;;  %4616 = vmatprep.subr.bf16.mxu1 %v4652_v11  ;;  %v4713_v51 = vld [vmem:[%s7182_s3 + $0x40] ss:$28 sps:$4 sm:$0xff]   ;;  %v4716_v52 = vld [vmem:[%s7182_s3 + $0x38] ss:$28 sps:$4 sm:$0xff]   ;;  %v4725_v61 = vld [vmem:[%s7182_s3 + $0x350] ss:$28 sps:$4 sm:$0xff]  }
  0x20   : > { %v4722_v56 = vld [vmem:[%s7182_s3] ss:$28 sps:$4 sm:$0xff]   ;;  %v4728_v62 = vld [vmem:[%s7182_s3 + $0x348] ss:$28 sps:$4 sm:$0xff]   ;;  %v4736_v0 = vld [vmem:[%s7182_s3 + $0x314] ss:$28 sps:$4 sm:$0xff]  }
  0x21   : > { %v4673_v59 = vld [vmem:[%s5362_s13 + $0x60] sm:$0xff]   ;;  %v4733_v63 = vld [vmem:[%s7182_s3 + $0x31c] ss:$28 sps:$4 sm:$0xff]   ;;  %v4734_v3 = vld [vmem:[%s7182_s3 + $0x310] ss:$28 sps:$4 sm:$0xff]  }
  0x22   : > { %478 = vmatpush1.bf16.msra.mxu0 %v4654_v12  ;;  %4624 = vmatpush1.bf16.msra.mxu1 %v4654_v12  ;;  %v4731_v1 = vld [vmem:[%s7182_s3 + $0x318] ss:$28 sps:$4 sm:$0xff]   ;;  %v4739_v4 = vld [vmem:[%s7182_s3 + $0x2e4] ss:$28 sps:$4 sm:$0xff]   ;;  %v4666_v6 = vld [vmem:[%s5362_s13 + $0x28] sm:$0xff]  }
  0x23   : > { %479 = vmatprep.subr.bf16.mxu0 %v4655_v13  ;;  %4617 = vmatprep.subr.bf16.mxu1 %v4655_v13  ;;  %v4742_v5 = vld [vmem:[%s7182_s3 + $0x2dc] ss:$28 sps:$4 sm:$0xff]   ;;  %v4674_v7 = vld [vmem:[%s5362_s13 + $0x68] sm:$0xff]   ;;  %v4748_v11 = vld [vmem:[%s7182_s3 + $0x2a4] ss:$28 sps:$4 sm:$0xff]  }
  0x24   : > { %v4737_v8 = vld [vmem:[%s7182_s3 + $0x2e0] ss:$28 sps:$4 sm:$0xff]   ;;  %v4740_v9 = vld [vmem:[%s7182_s3 + $0x2d8] ss:$28 sps:$4 sm:$0xff]   ;;  %v4745_v10 = vld [vmem:[%s7182_s3 + $0x2ac] ss:$28 sps:$4 sm:$0xff]  }
  0x25   : > { %v4743_v12 = vld [vmem:[%s7182_s3 + $0x2a8] ss:$28 sps:$4 sm:$0xff]   ;;  %v4746_v13 = vld [vmem:[%s7182_s3 + $0x2a0] ss:$28 sps:$4 sm:$0xff]  }
  0x26   : > { %480 = vmatpush1.bf16.msra.mxu0 %v4657_v14  ;;  %4625 = vmatpush1.bf16.msra.mxu1 %v4657_v14  ;;  %v4751_v14 = vld [vmem:[%s7182_s3 + $0x274] ss:$28 sps:$4 sm:$0xff]  }
  0x27   : > { %481 = vmatprep.subr.bf16.mxu0 %v4658_v15  ;;  %4618 = vmatprep.subr.bf16.mxu1 %v4658_v15  ;;  %v4667_v15 = vld [vmem:[%s5362_s13 + $0x30] sm:$0xff]  }
  0x2a   : > { %482 = vmatpush1.bf16.msra.mxu0 %v4660_v16  ;;  %4626 = vmatpush1.bf16.msra.mxu1 %v4660_v16  ;;  %v4675_v16 = vld [vmem:[%s5362_s13 + $0x70] sm:$0xff]  }
  0x2b   : > { %1754 = vmatprep.subr.bf16.mxu0 %v4679_v17  ;;  %1561 = vmatprep.subr.bf16.mxu1 %v4682_v18  ;;  %v4749_v17 = vld [vmem:[%s7182_s3 + $0x270] ss:$28 sps:$4 sm:$0xff]   ;;  %v4668_v18 = vld [vmem:[%s5362_s13 + $0x38] sm:$0xff]  }
  0x2d   : > { %500 = vmatmul.mubr.bf16.vlgmr.msra.gmra.mxu0 %v4661_v19  ;;  %580 = vmatmul.mubr.bf16.vlgmr.msra.gmra.mxu1 %v4669_v20  ;;  %v4676_v19 = vld [vmem:[%s5362_s13 + $0x78] sm:$0xff]   ;;  %v4754_v20 = vld [vmem:[%s7182_s3 + $0x26c] ss:$28 sps:$4 sm:$0xff]  }
  0x2e   : > { %509 = vmatprep.mubr.bf16.mxu0 %v5294_v2  ;;  %589 = vmatprep.mubr.bf16.mxu1 %v5294_v2 }
  0x2f   : > { %1755 = vmatpush1.bf16.msra.mxu0 %v4677_v21  ;;  %1562 = vmatpush1.bf16.msra.mxu1 %v4680_v22  ;;  %v4752_v21 = vld [vmem:[%s7182_s3 + $0x268] ss:$28 sps:$4 sm:$0xff]   ;;  %v4757_v22 = vld [vmem:[%s7182_s3 + $0x23c] ss:$28 sps:$4 sm:$0xff]  }
  0x30   : > { %1756 = vmatprep.subr.bf16.mxu0 %v4685_v23  ;;  %1563 = vmatprep.subr.bf16.mxu1 %v4688_v24  ;;  %v4755_v23 = vld [vmem:[%s7182_s3 + $0x238] ss:$28 sps:$4 sm:$0xff]   ;;  %v4758_v24 = vld [vmem:[%s7182_s3 + $0x230] ss:$28 sps:$4 sm:$0xff]  }
  0x33   : > { %1757 = vmatpush1.bf16.msra.mxu0 %v4683_v25  ;;  %1564 = vmatpush1.bf16.msra.mxu1 %v4686_v26  ;;  %v4763_v25 = vld [vmem:[%s7182_s3 + $0x204] ss:$28 sps:$4 sm:$0xff]   ;;  %v4766_v26 = vld [vmem:[%s7182_s3 + $0x1fc] ss:$28 sps:$4 sm:$0xff]  }
  0x34   : > { %1758 = vmatprep.subr.bf16.mxu0 %v4691_v27  ;;  %1565 = vmatprep.subr.bf16.mxu1 %v4694_v28  ;;  %v4761_v27 = vld [vmem:[%s7182_s3 + $0x200] ss:$28 sps:$4 sm:$0xff]   ;;  %v4764_v28 = vld [vmem:[%s7182_s3 + $0x1f8] ss:$28 sps:$4 sm:$0xff]  }
  0x35   : > { %510 = vmatmul.mubr.bf16.gmra.mxu0 %v4662_v29  ;;  %590 = vmatmul.mubr.bf16.gmra.mxu1 %v4670_v30  ;;  %v4769_v29 = vld [vmem:[%s7182_s3 + $0x1cc] ss:$28 sps:$4 sm:$0xff]   ;;  %v4772_v30 = vld [vmem:[%s7182_s3 + $0x1c4] ss:$28 sps:$4 sm:$0xff]  }
  0x36   : > { %519 = vmatprep.mubr.bf16.mxu0 %v5294_v2  ;;  %599 = vmatprep.mubr.bf16.mxu1 %v5294_v2 }
  0x37   : > { %1759 = vmatpush1.bf16.msra.mxu0 %v4689_v31  ;;  %1566 = vmatpush1.bf16.msra.mxu1 %v4692_v32  ;;  %v4767_v31 = vld [vmem:[%s7182_s3 + $0x1c8] ss:$28 sps:$4 sm:$0xff]   ;;  %v4770_v32 = vld [vmem:[%s7182_s3 + $0x1c0] ss:$28 sps:$4 sm:$0xff]  }
  0x38   : > { %1760 = vmatprep.subr.bf16.mxu0 %v4697_v33  ;;  %1567 = vmatprep.subr.bf16.mxu1 %v4700_v34  ;;  %v4773_v33 = vld [vmem:[%s7182_s3 + $0x360] ss:$28 sps:$4 sm:$0xff]  }
  0x39   : > { %v4777_v34 = vld [vmem:[%s7182_s3 + $0x19c] ss:$28 sps:$4 sm:$0xff]  }
  0x3b   : > { %1761 = vmatpush1.bf16.msra.mxu0 %v4695_v35  ;;  %1568 = vmatpush1.bf16.msra.mxu1 %v4698_v36  ;;  %v281_v35 = vlaneseq }
  0x3c   : > { %1762 = vmatprep.subr.bf16.mxu0 %v4703_v37  ;;  %1569 = vmatprep.subr.bf16.mxu1 %v4706_v38 }
  0x3d   : > { %520 = vmatmul.mubr.bf16.gmra.mxu0 %v4663_v39  ;;  %600 = vmatmul.mubr.bf16.gmra.mxu1 %v4671_v40  ;;  %v5619_v36 = vshrl.u32 %v281_v35, 7  ;;  %v279_v39 = vld [vmem:[%s7181_s2] sm:$0x3] }
  0x3e   : > { %529 = vmatprep.mubr.bf16.mxu0 %v5294_v2  ;;  %609 = vmatprep.mubr.bf16.mxu1 %v5294_v2 }
  0x3f   : > { %1763 = vmatpush1.bf16.msra.mxu0 %v4701_v41  ;;  %1570 = vmatpush1.bf16.msra.mxu1 %v4704_v42  ;;  %v287_v37 = vsub.s32 1, %v5619_v36  ;;  %v283_v38 = vsub.s32 0, %v5619_v36 }
  0x40   : > { %1764 = vmatprep.subr.bf16.mxu0 %v4709_v43  ;;  %1571 = vmatprep.subr.bf16.mxu1 %v4712_v44 }
  0x41   : > { %v5628_v40 = vrot.slane %v279_v39, %v287_v37  ;;  %v5632_v41 = vrot.slane %v279_v39, %v283_v38  ;;  %v4783_v39 = vld [vmem:[%s7182_s3 + $0x128] ss:$28 sps:$4 sm:$0xff]  }
  0x43   : > { %1765 = vmatpush1.bf16.msra.mxu0 %v4707_v45  ;;  %1572 = vmatpush1.bf16.msra.mxu1 %v4710_v46 }
  0x44   : > { %1766 = vmatprep.subr.bf16.mxu0 %v4715_v47  ;;  %1573 = vmatprep.subr.bf16.mxu1 %v4718_v48 }
  0x45   : > { %530 = vmatmul.mubr.bf16.gmra.mxu0 %v4664_v49  ;;  %610 = vmatmul.mubr.bf16.gmra.mxu1 %v4672_v50 }
  0x46   : > { %539 = vmatprep.mubr.bf16.mxu0 %v5294_v2  ;;  %619 = vmatprep.mubr.bf16.mxu1 %v5294_v2 }
  0x47   : > { %1767 = vmatpush1.bf16.msra.mxu0 %v4713_v51  ;;  %1574 = vmatpush1.bf16.msra.mxu1 %v4716_v52 }
  0x48   : > { %1768 = vmatprep.subr.bf16.mxu0 %v4721_v53  ;;  %1575 = vmatprep.subr.bf16.mxu1 %v4724_v54 }
  0x4b   : > { %1769 = vmatpush1.bf16.msra.mxu0 %v4719_v55  ;;  %1576 = vmatpush1.bf16.msra.mxu1 %v4722_v56 }
  0x4c   : > { %1770 = vmatprep.subr.bf16.mxu0 %v4727_v57  ;;  %1577 = vmatprep.subr.bf16.mxu1 %v4730_v60 }
  0x4d   : > { %540 = vmatmul.mubr.bf16.gmra.mxu0 %v4665_v58  ;;  %620 = vmatmul.mubr.bf16.gmra.mxu1 %v4673_v59 }
  0x4e   : > { %549 = vmatprep.mubr.bf16.mxu0 %v5294_v2  ;;  %629 = vmatprep.mubr.bf16.mxu1 %v5294_v2 }
  0x4f   : > { %1771 = vmatpush2.bf16.msra.mxu0 %v4725_v61  ;;  %1578 = vmatpush2.bf16.msra.mxu1 %v4728_v62 }
  0x50   : > { %1772 = vmatprep.subr.bf16.mxu0 %v4733_v63  ;;  %1579 = vmatprep.subr.bf16.mxu1 %v4736_v0 }
  0x53   : > { %1773 = vmatpush2.bf16.msra.mxu0 %v4731_v1  ;;  %1580 = vmatpush2.bf16.msra.mxu1 %v4734_v3 }
  0x54   : > { %1774 = vmatprep.subr.bf16.mxu0 %v4739_v4  ;;  %1581 = vmatprep.subr.bf16.mxu1 %v4742_v5 }
  0x55   : > { %550 = vmatmul.mubr.bf16.gmra.mxu0 %v4666_v6  ;;  %630 = vmatmul.mubr.bf16.gmra.mxu1 %v4674_v7 }
  0x56   : > { %559 = vmatprep.mubr.bf16.mxu0 %v5294_v2  ;;  %639 = vmatprep.mubr.bf16.mxu1 %v5294_v2 }
  0x57   : > { %1775 = vmatpush2.bf16.msra.mxu0 %v4737_v8  ;;  %1582 = vmatpush2.bf16.msra.mxu1 %v4740_v9  ;;  %v4774_v9 = vld [vmem:[%s7182_s3 + $0x1a0] ss:$28 sps:$4 sm:$0xff]  }
  0x58   : > { %1776 = vmatprep.subr.bf16.mxu0 %v4745_v10  ;;  %1583 = vmatprep.subr.bf16.mxu1 %v4748_v11  ;;  %v4775_v10 = vld [vmem:[%s7182_s3 + $0x198] ss:$28 sps:$4 sm:$0xff]  }
  0x5b   : > { %1777 = vmatpush2.bf16.msra.mxu0 %v4743_v12  ;;  %1584 = vmatpush2.bf16.msra.mxu1 %v4746_v13  ;;  %v4780_v13 = vld [vmem:[%s7182_s3 + $0x164] ss:$28 sps:$4 sm:$0xff]  }
  0x5c   : > { %1778 = vmatprep.subr.bf16.mxu0 %v4751_v14  ;;  %1585 = vmatprep.subr.bf16.mxu1 %v4754_v20  ;;  %v4781_v14 = vld [vmem:[%s7182_s3 + $0x328] ss:$28 sps:$4 sm:$0xff]  }
  0x5d   : > { %560 = vmatmul.mubr.bf16.gmra.mxu0 %v4667_v15  ;;  %640 = vmatmul.mubr.bf16.gmra.mxu1 %v4675_v16 }
  0x5e   : > { %569 = vmatprep.mubr.bf16.mxu0 %v5294_v2  ;;  %649 = vmatprep.mubr.bf16.mxu1 %v5294_v2  ;;  %v4760_v2 = vld [vmem:[%s7182_s3 + $0x234] ss:$28 sps:$4 sm:$0xff]  }
  0x5f   : > { %1779 = vmatpush2.bf16.msra.mxu0 %v4749_v17  ;;  %1586 = vmatpush2.bf16.msra.mxu1 %v4752_v21 }
  0x60   : > { %1780 = vmatprep.subr.bf16.mxu0 %v4757_v22  ;;  %1587 = vmatprep.subr.bf16.mxu1 %v4760_v2  ;;  %v4778_v22 = vld [vmem:[%s7182_s3 + $0x160] ss:$28 sps:$4 sm:$0xff]   ;;  %v4782_v2 = vld [vmem:[%s7182_s3 + $0x168] ss:$28 sps:$4 sm:$0xff]  }
  0x63   : > { %1781 = vmatpush2.bf16.msra.mxu0 %v4755_v23  ;;  %1588 = vmatpush2.bf16.msra.mxu1 %v4758_v24 }
  0x64   : > { %1782 = vmatprep.subr.bf16.mxu0 %v4763_v25  ;;  %1589 = vmatprep.subr.bf16.mxu1 %v4766_v26  ;;  %v4785_v25 = vld [vmem:[%s7182_s3 + $0x12c] ss:$28 sps:$4 sm:$0xff]  }
  0x65   : > { %570 = vmatmul.mubr.bf16.gmra.mxu0 %v4668_v18  ;;  %650 = vmatmul.mubr.bf16.gmra.mxu1 %v4676_v19  ;;  %v4789_v26 = vld [vmem:[%s7182_s3 + $0x2f0] ss:$28 sps:$4 sm:$0xff]  }
  0x67   : > { %1783 = vmatpush2.bf16.msra.mxu0 %v4761_v27  ;;  %1590 = vmatpush2.bf16.msra.mxu1 %v4764_v28 }
  0x68   : > { %1784 = vmatprep.subr.bf16.mxu0 %v4769_v29  ;;  %1591 = vmatprep.subr.bf16.mxu1 %v4772_v30 }
  0x6b   : > { %1785 = vmatpush2.bf16.msra.mxu0 %v4767_v31  ;;  %1592 = vmatpush2.bf16.msra.mxu1 %v4770_v32 }
  0x6c   : > { %4499 = vmatprep.subr.bf16.mxu0 %v4773_v33  ;;  %1947 = vmatprep.subr.bf16.mxu1 %v4777_v34 }
  0xed   : > { %v501_v42 = vpop.f32.mrf.mxu0  ;;  %v5634_v43 = vpop.f32.mrf.mxu1 }
  0xee   : > { %v502_v47 = vadd.f32 %v501_v42, %v5632_v41  ;;  %v4790_v42 = vld [vmem:[%s7182_s3 + $0x130] ss:$28 sps:$4 sm:$0xff]  }
  0xef   : > { %v503_v44 = vpop.f32.mrf.mxu0  ;;  %v5636_v45 = vpop.f32.mrf.mxu1 }
  0xf0   : > { %v504_v46 = vadd.f32 %v503_v44, %v5628_v40  ;;  %v660_v56 = vmul.f32 0.2, %v502_v47 }
  0xf1   : > { %v505_v48 = vpop.f32.mrf.mxu0  ;;  %v5640_v49 = vpop.f32.mrf.mxu1 }
  0xf2   : > { %v506_v50 = vadd.f32 %v505_v48, %v5632_v41  ;;  %v661_v53 = vmul.f32 0.2, %v504_v46  ;;  %v724_v3 = vmax.f32 %v502_v47, %v660_v56  ;;  %v4788_v47 = vld [vmem:[%s7182_s3 + $0xf4] ss:$28 sps:$4 sm:$0xff]  }
  0xf3   : > { %v507_v51 = vpop.f32.mrf.mxu0  ;;  %v5643_v52 = vpop.f32.mrf.mxu1  ;;  %v4797_v48 = vld [vmem:[%s7182_s3 + $0x2b8] ss:$28 sps:$4 sm:$0xff]  }
  0xf4   : > { %v662_v54 = vmul.f32 0.2, %v506_v50  ;;  %v508_v55 = vadd.f32 %v507_v51, %v5628_v40  ;;  %v725_v63 = vmax.f32 %v504_v46, %v661_v53 }
  0xf5   : > { %v511_v57 = vpop.f32.mrf.mxu0  ;;  %v5646_v58 = vpop.f32.mrf.mxu1 }
  0xf6   : > { %v663_v59 = vmul.f32 0.2, %v508_v55  ;;  %v726_v60 = vmax.f32 %v506_v50, %v662_v54  ;;  %v512_v4 = vadd.f32 %v511_v57, %v5632_v41 }
  0xf7   : > { %v513_v61 = vpop.f32.mrf.mxu0  ;;  %v5648_v62 = vpop.f32.mrf.mxu1 }
  0xf8   : > { %v727_v0 = vmax.f32 %v508_v55, %v663_v59  ;;  %v514_v1 = vadd.f32 %v513_v61, %v5628_v40  ;;  %v5663_v11 = vpack.c.bf16 %v726_v60, %v724_v3  ;;  %v664_v18 = vmul.f32 0.2, %v512_v4  ;;  %v4786_v59 = vld [vmem:[%s7182_s3 + $0xf0] ss:$28 sps:$4 sm:$0xff]   ;;  %v4798_v60 = vld [vmem:[%s7182_s3 + $0xf8] ss:$28 sps:$4 sm:$0xff]  }
  0xf9   : > { %v515_v5 = vpop.f32.mrf.mxu0  ;;  %v5652_v6 = vpop.f32.mrf.mxu1 }
  0xfa   : > { %v5654_v7 = vpack.c.bf16 %v727_v0, %v725_v63  ;;  %v516_v8 = vadd.f32 %v515_v5, %v5632_v41  ;;  %v665_v15 = vmul.f32 0.2, %v514_v1  ;;  %v728_v30 = vmax.f32 %v512_v4, %v664_v18  ;;  %v4793_v0 = vld [vmem:[%s7182_s3 + $0xbc] ss:$28 sps:$4 sm:$0xff]  }
  0xfb   : > { %v517_v12 = vpop.f32.mrf.mxu0  ;;  %v5676_v20 = vpop.f32.mrf.mxu1 }
  0xfc   : > { %v666_v16 = vmul.f32 0.2, %v516_v8  ;;  %v518_v17 = vadd.f32 %v517_v12, %v5628_v40  ;;  %1593 = vmatprep.mubr.bf16.mxu1 %v5654_v7  ;;  %1786 = vmatprep.mubr.bf16.mxu0 %v5654_v7  ;;  %v729_v27 = vmax.f32 %v514_v1, %v665_v15  ;;  %v4805_v1 = vld [vmem:[%s7182_s3 + $0x280] ss:$28 sps:$4 sm:$0xff]   ;;  %v4791_v15 = vld [vmem:[%s7182_s3 + $0xb8] ss:$28 sps:$4 sm:$0xff]  }
  0xfd   : > { %v521_v19 = vpop.f32.mrf.mxu0  ;;  %1594 = vmatmul.mubr.bf16.vlgmr.msra.gmra.mxu1 %v5663_v11  ;;  %1787 = vmatmul.mubr.bf16.vlgmr.msra.gmra.mxu0 %v5663_v11  ;;  %v5692_v33 = vpop.f32.mrf.mxu1 }
  0xfe   : > { %v667_v21 = vmul.f32 0.2, %v518_v17  ;;  %4500 = vmatpush3.bf16.msra.mxu0 %v4774_v9  ;;  %1948 = vmatpush1.bf16.msra.mxu1 %v4775_v10  ;;  %v730_v23 = vmax.f32 %v516_v8, %v666_v16  ;;  %v522_v31 = vadd.f32 %v521_v19, %v5632_v41  ;;  %v4806_v16 = vld [vmem:[%s7182_s3 + $0xc0] ss:$28 sps:$4 sm:$0xff]  }
  0xff   : > { %v523_v24 = vpop.f32.mrf.mxu0  ;;  %1949 = vmatprep.subr.bf16.mxu1 %v4780_v13  ;;  %4501 = vmatprep.subr.bf16.mxu0 %v4781_v14  ;;  %v5716_v56 = vpop.f32.mrf.mxu1  ;;  %v4796_v19 = vld [vmem:[%s7182_s3 + $0x84] ss:$28 sps:$4 sm:$0xff]  }
 0x100   : > { %v731_v28 = vmax.f32 %v518_v17, %v667_v21  ;;  %v524_v29 = vadd.f32 %v523_v24, %v5628_v40  ;;  %v5703_v44 = vpack.c.bf16 %v730_v23, %v728_v30  ;;  %v668_v54 = vmul.f32 0.2, %v522_v31  ;;  %v4813_v21 = vld [vmem:[%s7182_s3 + $0x248] ss:$28 sps:$4 sm:$0xff]  }
 0x101   : > { %v525_v32 = vpop.f32.mrf.mxu0  ;;  %v5732_v12 = vpop.f32.mrf.mxu1 }
 0x102   : > { %v5694_v34 = vpack.c.bf16 %v731_v28, %v729_v27  ;;  %v526_v35 = vadd.f32 %v525_v32, %v5632_v41  ;;  %1950 = vmatpush1.bf16.msra.mxu1 %v4778_v22  ;;  %4502 = vmatpush3.bf16.msra.mxu0 %v4782_v2  ;;  %v669_v50 = vmul.f32 0.2, %v524_v29  ;;  %v732_v8 = vmax.f32 %v522_v31, %v668_v54  ;;  %v4794_v28 = vld [vmem:[%s7182_s3 + $0x80] ss:$28 sps:$4 sm:$0xff]   ;;  %v4801_v32 = vld [vmem:[%s7182_s3 + $0x4c] ss:$28 sps:$4 sm:$0xff]  }
 0x103   : > { %v527_v46 = vpop.f32.mrf.mxu0  ;;  %1951 = vmatprep.subr.bf16.mxu1 %v4785_v25  ;;  %4503 = vmatprep.subr.bf16.mxu0 %v4789_v26  ;;  %v5756_v26 = vpop.f32.mrf.mxu1 }
 0x104   : > { %v670_v51 = vmul.f32 0.2, %v526_v35  ;;  %v528_v53 = vadd.f32 %v527_v46, %v5628_v40  ;;  %1603 = vmatprep.mubr.bf16.mxu1 %v5694_v34  ;;  %1796 = vmatprep.mubr.bf16.mxu0 %v5694_v34  ;;  %v733_v3 = vmax.f32 %v524_v29, %v669_v50  ;;  %v4814_v29 = vld [vmem:[%s7182_s3 + $0x88] ss:$28 sps:$4 sm:$0xff]  }
 0x105   : > { %v531_v55 = vpop.f32.mrf.mxu0  ;;  %1604 = vmatmul.mubr.bf16.gmra.mxu1 %v5703_v44  ;;  %1797 = vmatmul.mubr.bf16.gmra.mxu0 %v5703_v44 }
 0x106   : > { %v671_v57 = vmul.f32 0.2, %v528_v53  ;;  %1952 = vmatpush1.bf16.msra.mxu1 %v4783_v39  ;;  %4504 = vmatpush3.bf16.msra.mxu0 %v4790_v42  ;;  %v734_v61 = vmax.f32 %v526_v35, %v670_v51  ;;  %v532_v9 = vadd.f32 %v531_v55, %v5632_v41  ;;  %v4821_v35 = vld [vmem:[%s7182_s3 + $0x210] ss:$28 sps:$4 sm:$0xff]   ;;  %v5772_v51 = vpop.f32.mrf.mxu1  ;;  %v4799_v55 = vld [vmem:[%s7182_s3 + $0x48] ss:$28 sps:$4 sm:$0xff]  }
 0x107   : > { %v533_v63 = vpop.f32.mrf.mxu0  ;;  %1953 = vmatprep.subr.bf16.mxu1 %v4788_v47  ;;  %4505 = vmatprep.subr.bf16.mxu0 %v4797_v48 }
 0x108   : > { %v735_v4 = vmax.f32 %v528_v53, %v671_v57  ;;  %v534_v5 = vadd.f32 %v533_v63, %v5628_v40  ;;  %v5743_v17 = vpack.c.bf16 %v734_v61, %v732_v8  ;;  %v672_v24 = vmul.f32 0.2, %v532_v9  ;;  %v4822_v57 = vld [vmem:[%s7182_s3 + $0x50] ss:$28 sps:$4 sm:$0xff]   ;;  %v4829_v63 = vld [vmem:[%s7182_s3 + $0x1d8] ss:$28 sps:$4 sm:$0xff]   ;;  %v5796_v8 = vpop.f32.mrf.mxu1 }
 0x109   : > { %v535_v10 = vpop.f32.mrf.mxu0  ;;  %v4804_v61 = vld [vmem:[%s7182_s3 + $0x14] ss:$28 sps:$4 sm:$0xff]  }
 0x10a   : > { %v5734_v13 = vpack.c.bf16 %v735_v4, %v733_v3  ;;  %v536_v14 = vadd.f32 %v535_v10, %v5632_v41  ;;  %1954 = vmatpush1.bf16.msra.mxu1 %v4786_v59  ;;  %4506 = vmatpush3.bf16.msra.mxu0 %v4798_v60  ;;  %v673_v22 = vmul.f32 0.2, %v534_v5  ;;  %v736_v47 = vmax.f32 %v532_v9, %v672_v24  ;;  %v4802_v10 = vld [vmem:[%s7182_s3 + $0x10] ss:$28 sps:$4 sm:$0xff]  }
 0x10b   : > { %v537_v18 = vpop.f32.mrf.mxu0  ;;  %1955 = vmatprep.subr.bf16.mxu1 %v4793_v0  ;;  %4507 = vmatprep.subr.bf16.mxu0 %v4805_v1 }
 0x10c   : > { %v674_v2 = vmul.f32 0.2, %v536_v14  ;;  %v538_v23 = vadd.f32 %v537_v18, %v5628_v40  ;;  %1613 = vmatprep.mubr.bf16.mxu1 %v5734_v13  ;;  %1806 = vmatprep.mubr.bf16.mxu0 %v5734_v13  ;;  %v737_v39 = vmax.f32 %v534_v5, %v673_v22  ;;  %v4809_v18 = vld [vmem:[%s7182_s3 + $0x35c] ss:$28 sps:$4 sm:$0xff]  }
 0x10d   : > { %v541_v25 = vpop.f32.mrf.mxu0  ;;  %1614 = vmatmul.mubr.bf16.gmra.mxu1 %v5743_v17  ;;  %1807 = vmatmul.mubr.bf16.gmra.mxu0 %v5743_v17 }
 0x10e   : > { %v675_v27 = vmul.f32 0.2, %v538_v23  ;;  %1956 = vmatpush1.bf16.msra.mxu1 %v4791_v15  ;;  %4508 = vmatpush3.bf16.msra.mxu0 %v4806_v16  ;;  %v738_v30 = vmax.f32 %v536_v14, %v674_v2  ;;  %v542_v48 = vadd.f32 %v541_v25, %v5632_v41  ;;  %v4830_v14 = vld [vmem:[%s7182_s3 + $0x18] ss:$28 sps:$4 sm:$0xff]   ;;  %v5809_v25 = vpop.f32.mrf.mxu1 }
 0x10f   : > { %v543_v31 = vpop.f32.mrf.mxu0  ;;  %1957 = vmatprep.subr.bf16.mxu1 %v4796_v19  ;;  %4509 = vmatprep.subr.bf16.mxu0 %v4813_v21 }
 0x110   : > { %v739_v42 = vmax.f32 %v538_v23, %v675_v27  ;;  %v544_v46 = vadd.f32 %v543_v31, %v5628_v40  ;;  %v5783_v59 = vpack.c.bf16 %v738_v30, %v736_v47  ;;  %v676_v4 = vmul.f32 0.2, %v542_v48 }
 0x111   : > { %v545_v50 = vpop.f32.mrf.mxu0 }
 0x112   : > { %v5774_v53 = vpack.c.bf16 %v739_v42, %v737_v39  ;;  %v546_v54 = vadd.f32 %v545_v50, %v5632_v41  ;;  %1958 = vmatpush1.bf16.msra.mxu1 %v4794_v28  ;;  %4510 = vmatpush3.bf16.msra.mxu0 %v4814_v29  ;;  %v677_v0 = vmul.f32 0.2, %v544_v46  ;;  %v740_v2 = vmax.f32 %v542_v48, %v676_v4  ;;  %v4807_v29 = vld [vmem:[%s7182_s3 + $0x358] ss:$28 sps:$4 sm:$0xff]   ;;  %v5827_v48 = vpop.f32.mrf.mxu1 }
 0x113   : > { %v547_v60 = vpop.f32.mrf.mxu0  ;;  %1959 = vmatprep.subr.bf16.mxu1 %v4801_v32  ;;  %4511 = vmatprep.subr.bf16.mxu0 %v4821_v35  ;;  %v4812_v32 = vld [vmem:[%s7182_s3 + $0x324] ss:$28 sps:$4 sm:$0xff]  }
 0x114   : > { %v678_v1 = vmul.f32 0.2, %v546_v54  ;;  %v548_v3 = vadd.f32 %v547_v60, %v5628_v40  ;;  %1623 = vmatprep.mubr.bf16.mxu1 %v5774_v53  ;;  %1816 = vmatprep.mubr.bf16.mxu0 %v5774_v53  ;;  %v741_v19 = vmax.f32 %v544_v46, %v677_v0  ;;  %v4817_v60 = vld [vmem:[%s7182_s3 + $0x2ec] ss:$28 sps:$4 sm:$0xff]  }
 0x115   : > { %v551_v5 = vpop.f32.mrf.mxu0  ;;  %1624 = vmatmul.mubr.bf16.gmra.mxu1 %v5783_v59  ;;  %1817 = vmatmul.mubr.bf16.gmra.mxu0 %v5783_v59 }
 0x116   : > { %v679_v9 = vmul.f32 0.2, %v548_v3  ;;  %1960 = vmatpush1.bf16.msra.mxu1 %v4799_v55  ;;  %4512 = vmatpush3.bf16.msra.mxu0 %v4822_v57  ;;  %v742_v15 = vmax.f32 %v546_v54, %v678_v1  ;;  %v552_v23 = vadd.f32 %v551_v5, %v5632_v41  ;;  %v4810_v54 = vld [vmem:[%s7182_s3 + $0x320] ss:$28 sps:$4 sm:$0xff]   ;;  %v5837_v5 = vpop.f32.mrf.mxu1 }
 0x117   : > { %v553_v16 = vpop.f32.mrf.mxu0  ;;  %1961 = vmatprep.subr.bf16.mxu1 %v4804_v61  ;;  %4513 = vmatprep.subr.bf16.mxu0 %v4829_v63 }
 0x118   : > { %v743_v21 = vmax.f32 %v548_v3, %v679_v9  ;;  %v554_v22 = vadd.f32 %v553_v16, %v5628_v40  ;;  %v5817_v30 = vpack.c.bf16 %v742_v15, %v740_v2  ;;  %v680_v46 = vmul.f32 0.2, %v552_v23 }
 0x119   : > { %v555_v24 = vpop.f32.mrf.mxu0 }
 0x11a   : > { %v5811_v27 = vpack.c.bf16 %v743_v21, %v741_v19  ;;  %v556_v28 = vadd.f32 %v555_v24, %v5632_v41  ;;  %1962 = vmatpush1.bf16.msra.mxu1 %v4802_v10  ;;  %4514 = vmatpush3.bf16.msra.mxu0 %v4830_v14  ;;  %v681_v35 = vmul.f32 0.2, %v554_v22  ;;  %v744_v1 = vmax.f32 %v552_v23, %v680_v46  ;;  %v4815_v14 = vld [vmem:[%s7182_s3 + $0x2e8] ss:$28 sps:$4 sm:$0xff]   ;;  %v5855_v24 = vpop.f32.mrf.mxu1 }
 0x11b   : > { %v557_v31 = vpop.f32.mrf.mxu0  ;;  %1963 = vmatprep.subr.bf16.mxu1 %v4809_v18  ;;  %v4820_v18 = vld [vmem:[%s7182_s3 + $0x2b4] ss:$28 sps:$4 sm:$0xff]  }
 0x11c   : > { %v682_v39 = vmul.f32 0.2, %v556_v28  ;;  %v558_v42 = vadd.f32 %v557_v31, %v5628_v40  ;;  %1633 = vmatprep.mubr.bf16.mxu1 %v5811_v27  ;;  %1826 = vmatprep.mubr.bf16.mxu0 %v5811_v27  ;;  %v745_v61 = vmax.f32 %v554_v22, %v681_v35  ;;  %v584_v35 = vadd.f32 %v5636_v45, %v5628_v40 }
 0x11d   : > { %v561_v47 = vpop.f32.mrf.mxu0  ;;  %1634 = vmatmul.mubr.bf16.gmra.mxu1 %v5817_v30  ;;  %1827 = vmatmul.mubr.bf16.gmra.mxu0 %v5817_v30 }
 0x11e   : > { %v683_v50 = vmul.f32 0.2, %v558_v42  ;;  %1964 = vmatpush2.bf16.msra.mxu1 %v4807_v29  ;;  %v746_v55 = vmax.f32 %v556_v28, %v682_v39  ;;  %v562_v3 = vadd.f32 %v561_v47, %v5632_v41  ;;  %v4818_v29 = vld [vmem:[%s7182_s3 + $0x2b0] ss:$28 sps:$4 sm:$0xff]   ;;  %v588_v39 = vadd.f32 %v5643_v52, %v5628_v40  ;;  %v4823_v52 = vld [vmem:[%s7182_s3 + $0x278] ss:$28 sps:$4 sm:$0xff]  }
 0x11f   : > { %v563_v57 = vpop.f32.mrf.mxu0  ;;  %1965 = vmatprep.subr.bf16.mxu1 %v4812_v32 }
 0x120   : > { %v747_v63 = vmax.f32 %v558_v42, %v683_v50  ;;  %v564_v0 = vadd.f32 %v563_v57, %v5628_v40  ;;  %v5845_v15 = vpack.c.bf16 %v746_v55, %v744_v1  ;;  %v684_v2 = vmul.f32 0.2, %v562_v3  ;;  %v4825_v42 = vld [vmem:[%s7182_s3 + $0x27c] ss:$28 sps:$4 sm:$0xff]  }
 0x121   : > { %v565_v4 = vpop.f32.mrf.mxu0 }
 0x122   : > { %v5839_v9 = vpack.c.bf16 %v747_v63, %v745_v61  ;;  %v566_v10 = vadd.f32 %v565_v4, %v5632_v41  ;;  %1966 = vmatpush2.bf16.msra.mxu1 %v4810_v54  ;;  %v685_v19 = vmul.f32 0.2, %v564_v0  ;;  %v748_v54 = vmax.f32 %v562_v3, %v684_v2  ;;  %v4828_v3 = vld [vmem:[%s7182_s3 + $0x244] ss:$28 sps:$4 sm:$0xff]  }
 0x123   : > { %v567_v16 = vpop.f32.mrf.mxu0  ;;  %1967 = vmatprep.subr.bf16.mxu1 %v4817_v60  ;;  %v5869_v60 = vpop.f32.mrf.mxu1  ;;  %v695_v4 = vmul.f32 0.2, %v588_v39  ;;  %v4826_v2 = vld [vmem:[%s7182_s3 + $0x240] ss:$28 sps:$4 sm:$0xff]  }
 0x124   : > { %v686_v21 = vmul.f32 0.2, %v566_v10  ;;  %v568_v22 = vadd.f32 %v567_v16, %v5628_v40  ;;  %1643 = vmatprep.mubr.bf16.mxu1 %v5839_v9  ;;  %1836 = vmatprep.mubr.bf16.mxu0 %v5839_v9  ;;  %v749_v46 = vmax.f32 %v564_v0, %v685_v19  ;;  %v693_v0 = vmul.f32 0.2, %v584_v35 }
 0x125   : > { %v571_v23 = vpop.f32.mrf.mxu0  ;;  %1644 = vmatmul.mubr.bf16.gmra.mxu1 %v5845_v15  ;;  %1837 = vmatmul.mubr.bf16.gmra.mxu0 %v5845_v15  ;;  %v5887_v19 = vpop.f32.mrf.mxu1 }
 0x126   : > { %v687_v28 = vmul.f32 0.2, %v568_v22  ;;  %1968 = vmatpush2.bf16.msra.mxu1 %v4815_v14  ;;  %v750_v31 = vmax.f32 %v566_v10, %v686_v21  ;;  %v572_v55 = vadd.f32 %v571_v23, %v5632_v41  ;;  %v582_v21 = vadd.f32 %v5634_v43, %v5632_v41 }
 0x127   : > { %v573_v32 = vpop.f32.mrf.mxu0  ;;  %1969 = vmatprep.subr.bf16.mxu1 %v4820_v18  ;;  %v757_v23 = vmax.f32 %v584_v35, %v693_v0  ;;  %v594_v43 = vadd.f32 %v5648_v62, %v5628_v40  ;;  %v5903_v35 = vpop.f32.mrf.mxu1 }
 0x128   : > { %v751_v47 = vmax.f32 %v568_v22, %v687_v28  ;;  %v574_v50 = vadd.f32 %v573_v32, %v5628_v40  ;;  %v5877_v63 = vpack.c.bf16 %v750_v31, %v748_v54  ;;  %v688_v18 = vmul.f32 0.2, %v572_v55  ;;  %v4833_v32 = vld [vmem:[%s7182_s3 + $0x20c] ss:$28 sps:$4 sm:$0xff]  }
 0x129   : > { %v575_v57 = vpop.f32.mrf.mxu0  ;;  %v759_v31 = vmax.f32 %v588_v39, %v695_v4  ;;  %v697_v62 = vmul.f32 0.2, %v594_v43 }
 0x12a   : > { %v5871_v61 = vpack.c.bf16 %v751_v47, %v749_v46  ;;  %v576_v45 = vadd.f32 %v575_v57, %v5632_v41  ;;  %1970 = vmatpush2.bf16.msra.mxu1 %v4818_v29  ;;  %v689_v10 = vmul.f32 0.2, %v574_v50  ;;  %v586_v29 = vadd.f32 %v5640_v49, %v5632_v41 }
 0x12b   : > { %v577_v1 = vpop.f32.mrf.mxu0  ;;  %1971 = vmatprep.subr.bf16.mxu1 %v4825_v42  ;;  %v598_v47 = vadd.f32 %v5676_v20, %v5628_v40  ;;  %v752_v54 = vmax.f32 %v572_v55, %v688_v18  ;;  %v692_v49 = vmul.f32 0.2, %v582_v21  ;;  %v4836_v20 = vld [vmem:[%s7182_s3 + $0x1d4] ss:$28 sps:$4 sm:$0xff]   ;;  %v5921_v55 = vpop.f32.mrf.mxu1 }
 0x12c   : > { %v690_v14 = vmul.f32 0.2, %v576_v45  ;;  %v578_v16 = vadd.f32 %v577_v1, %v5628_v40  ;;  %1653 = vmatprep.mubr.bf16.mxu1 %v5871_v61  ;;  %1846 = vmatprep.mubr.bf16.mxu0 %v5871_v61  ;;  %v753_v42 = vmax.f32 %v574_v50, %v689_v10  ;;  %v4831_v50 = vld [vmem:[%s7182_s3 + $0x208] ss:$28 sps:$4 sm:$0xff]   ;;  %v596_v10 = vadd.f32 %v5652_v6, %v5632_v41 }
 0x12d   : > { %1654 = vmatmul.mubr.bf16.gmra.mxu1 %v5877_v63  ;;  %1847 = vmatmul.mubr.bf16.gmra.mxu0 %v5877_v63  ;;  %v699_v0 = vmul.f32 0.2, %v598_v47  ;;  %v756_v1 = vmax.f32 %v582_v21, %v692_v49  ;;  %v608_v21 = vadd.f32 %v5756_v26, %v5628_v40  ;;  %v618_v49 = vadd.f32 %v5827_v48, %v5628_v40 }
 0x12e   : > { %v691_v22 = vmul.f32 0.2, %v578_v16  ;;  %1972 = vmatpush2.bf16.msra.mxu1 %v4823_v52  ;;  %v754_v28 = vmax.f32 %v576_v45, %v690_v14  ;;  %v694_v45 = vmul.f32 0.2, %v586_v29  ;;  %v5912_v52 = vpack.c.bf16 %v759_v31, %v757_v23  ;;  %v4834_v14 = vld [vmem:[%s7182_s3 + $0x1d0] ss:$28 sps:$4 sm:$0xff]  }
 0x12f   : > { %1973 = vmatprep.subr.bf16.mxu1 %v4828_v3  ;;  %v592_v3 = vadd.f32 %v5646_v58, %v5632_v41  ;;  %v763_v18 = vmax.f32 %v598_v47, %v699_v0  ;;  %v698_v6 = vmul.f32 0.2, %v596_v10  ;;  %v703_v31 = vmul.f32 0.2, %v608_v21 }
 0x130   : > { %v755_v46 = vmax.f32 %v578_v16, %v691_v22  ;;  %v5907_v39 = vpack.c.bf16 %v754_v28, %v752_v54  ;;  %v758_v4 = vmax.f32 %v586_v29, %v694_v45  ;;  %v761_v16 = vmax.f32 %v594_v43, %v697_v62 }
 0x131   : > { %v604_v22 = vadd.f32 %v5716_v56, %v5628_v40  ;;  %v696_v23 = vmul.f32 0.2, %v592_v3  ;;  %v767_v47 = vmax.f32 %v608_v21, %v703_v31  ;;  %v614_v54 = vadd.f32 %v5796_v8, %v5628_v40 }
 0x132   : > { %v5905_v57 = vpack.c.bf16 %v755_v46, %v753_v42  ;;  %1974 = vmatpush2.bf16.msra.mxu1 %v4826_v2  ;;  %v5936_v2 = vpop.f32.mrf.mxu1  ;;  %v5938_v58 = vpack.c.bf16 %v758_v4, %v756_v1  ;;  %v5940_v28 = vpack.c.bf16 %v763_v18, %v761_v16  ;;  %v602_v42 = vadd.f32 %v5692_v33, %v5632_v41 }
 0x133   : > { %1975 = vmatprep.subr.bf16.mxu1 %v4833_v32  ;;  %v701_v29 = vmul.f32 0.2, %v604_v22  ;;  %v760_v26 = vmax.f32 %v592_v3, %v696_v23  ;;  %v762_v32 = vmax.f32 %v596_v10, %v698_v6  ;;  %v606_v46 = vadd.f32 %v5732_v12, %v5632_v41 }
 0x134   : > { %1663 = vmatprep.mubr.bf16.mxu1 %v5905_v57  ;;  %1856 = vmatprep.mubr.bf16.mxu0 %v5905_v57  ;;  %v637_v56 = vpop.f32.mrf.mxu1  ;;  %v700_v62 = vmul.f32 0.2, %v602_v42  ;;  %v705_v33 = vmul.f32 0.2, %v614_v54  ;;  %v707_v1 = vmul.f32 0.2, %v618_v49  ;;  %v612_v4 = vadd.f32 %v5772_v51, %v5632_v41 }
 0x135   : > { %1664 = vmatmul.mubr.bf16.gmra.mxu1 %v5907_v39  ;;  %1857 = vmatmul.mubr.bf16.gmra.mxu0 %v5907_v39  ;;  %v765_v43 = vmax.f32 %v604_v22, %v701_v29  ;;  %v702_v0 = vmul.f32 0.2, %v606_v46  ;;  %v616_v3 = vadd.f32 %v5809_v25, %v5632_v41  ;;  %v624_v16 = vadd.f32 %v5855_v24, %v5628_v40 }
 0x136   : > { %1673 = vmatprep.mubr.bf16.mxu1 %v5912_v52  ;;  %1866 = vmatprep.mubr.bf16.mxu0 %v5912_v52  ;;  %v5954_v45 = vpop.f32.mrf.mxu1  ;;  %v764_v8 = vmax.f32 %v602_v42, %v700_v62  ;;  %v769_v10 = vmax.f32 %v614_v54, %v705_v33  ;;  %v628_v18 = vadd.f32 %v5887_v19, %v5628_v40  ;;  %v704_v23 = vmul.f32 0.2, %v612_v4 }
 0x137   : > { %1976 = vmatpush2.bf16.msra.mxu1 %v4831_v50  ;;  %v5956_v50 = vpack.c.bf16 %v762_v32, %v760_v26  ;;  %v766_v48 = vmax.f32 %v606_v46, %v702_v0  ;;  %v706_v6 = vmul.f32 0.2, %v616_v3  ;;  %v709_v31 = vmul.f32 0.2, %v624_v16 }
 0x138   : > { %1977 = vmatprep.subr.bf16.mxu1 %v4836_v20  ;;  %v5958_v20 = vpack.c.bf16 %v767_v47, %v765_v43  ;;  %v643_v12 = vpop.f32.mrf.mxu1  ;;  %v711_v51 = vmul.f32 0.2, %v628_v18  ;;  %v768_v24 = vmax.f32 %v612_v4, %v704_v23  ;;  %v622_v26 = vadd.f32 %v5837_v5, %v5632_v41 }
 0x139   : > { %v5972_v21 = vpack.c.bf16 %v766_v48, %v764_v8  ;;  %v770_v19 = vmax.f32 %v616_v3, %v706_v6  ;;  %v626_v32 = vadd.f32 %v5869_v60, %v5632_v41  ;;  %v773_v42 = vmax.f32 %v624_v16, %v709_v31 }
 0x13a   : > { %v645_v22 = vpop.f32.mrf.mxu1  ;;  %v775_v46 = vmax.f32 %v628_v18, %v711_v51  ;;  %v634_v43 = vadd.f32 %v5921_v55, %v5628_v40  ;;  %v638_v47 = vadd.f32 %v637_v56, %v5628_v40  ;;  %v708_v62 = vmul.f32 0.2, %v622_v26 }
 0x13b   : > { %1978 = vmatpush2.bf16.msra.mxu1 %v4834_v14  ;;  %v771_v14 = vmax.f32 %v618_v49, %v707_v1  ;;  %v5987_v49 = vpack.c.bf16 %v770_v19, %v768_v24  ;;  %v710_v0 = vmul.f32 0.2, %v626_v32  ;;  %v632_v56 = vadd.f32 %v5903_v35, %v5632_v41 }
 0x13c   : > { %v647_v25 = vpop.f32.mrf.mxu1  ;;  %v5989_v33 = vpack.c.bf16 %v775_v46, %v773_v42  ;;  %v713_v1 = vmul.f32 0.2, %v634_v43  ;;  %v715_v8 = vmul.f32 0.2, %v638_v47  ;;  %v772_v60 = vmax.f32 %v622_v26, %v708_v62 }
 0x13d   : > { %1674 = vmatmul.mubr.bf16.gmra.mxu1 %v5938_v58  ;;  %1867 = vmatmul.mubr.bf16.gmra.mxu0 %v5938_v58  ;;  %v5974_v29 = vpack.c.bf16 %v771_v14, %v769_v10  ;;  %v774_v55 = vmax.f32 %v626_v32, %v710_v0  ;;  %v636_v48 = vadd.f32 %v5936_v2, %v5632_v41  ;;  %v712_v23 = vmul.f32 0.2, %v632_v56 }
 0x13e   : > { %1683 = vmatprep.mubr.bf16.mxu1 %v5940_v28  ;;  %1876 = vmatprep.mubr.bf16.mxu0 %v5940_v28  ;;  %v651_v54 = vpop.f32.mrf.mxu1  ;;  %v777_v4 = vmax.f32 %v634_v43, %v713_v1  ;;  %v779_v3 = vmax.f32 %v638_v47, %v715_v8  ;;  %v644_v10 = vadd.f32 %v643_v12, %v5628_v40 }
 0x13f   : > { %v648_v14 = vadd.f32 %v647_v25, %v5628_v40  ;;  %v6001_v18 = vpack.c.bf16 %v774_v55, %v772_v60  ;;  %v714_v6 = vmul.f32 0.2, %v636_v48  ;;  %v776_v2 = vmax.f32 %v632_v56, %v712_v23 }
 0x140   : > { %v653_v5 = vpop.f32.mrf.mxu1  ;;  %v6003_v31 = vpack.c.bf16 %v779_v3, %v777_v4  ;;  %v717_v51 = vmul.f32 0.2, %v644_v10  ;;  %v642_v25 = vadd.f32 %v5954_v45, %v5632_v41  ;;  %v646_v19 = vadd.f32 %v645_v22, %v5632_v41 }
 0x141   : > { %v719_v24 = vmul.f32 0.2, %v648_v14  ;;  %v778_v12 = vmax.f32 %v636_v48, %v714_v6  ;;  %v654_v42 = vadd.f32 %v653_v5, %v5628_v40 }
 0x142   : > { %v655_v16 = vpop.f32.mrf.mxu1  ;;  %v781_v26 = vmax.f32 %v644_v10, %v717_v51  ;;  %v716_v47 = vmul.f32 0.2, %v642_v25  ;;  %v718_v62 = vmul.f32 0.2, %v646_v19 }
 0x143   : > { %v783_v32 = vmax.f32 %v648_v14, %v719_v24  ;;  %v6014_v43 = vpack.c.bf16 %v778_v12, %v776_v2  ;;  %v721_v1 = vmul.f32 0.2, %v654_v42  ;;  %v656_v5 = vadd.f32 %v655_v16, %v5632_v41 }
 0x144   : > { %v657_v35 = vpop.f32.mrf.mxu1  ;;  %v780_v45 = vmax.f32 %v642_v25, %v716_v47  ;;  %v782_v22 = vmax.f32 %v646_v19, %v718_v62 }
 0x145   : > { %1684 = vmatmul.mubr.bf16.gmra.mxu1 %v5956_v50  ;;  %1877 = vmatmul.mubr.bf16.gmra.mxu0 %v5956_v50  ;;  %v658_v46 = vadd.f32 %v657_v35, %v5628_v40  ;;  %v6016_v0 = vpack.c.bf16 %v783_v32, %v781_v26  ;;  %v652_v40 = vadd.f32 %v651_v54, %v5632_v41  ;;  %v722_v4 = vmul.f32 0.2, %v656_v5 }
 0x146   : > { %1693 = vmatprep.mubr.bf16.mxu1 %v5958_v20  ;;  %1886 = vmatprep.mubr.bf16.mxu0 %v5958_v20  ;;  %v785_v60 = vmax.f32 %v654_v42, %v721_v1  ;;  %v6024_v56 = vpack.c.bf16 %v782_v22, %v780_v45  ;;  %v960_v41 = vsub.s32 2, %v5619_v36 }
 0x147   : > { %v723_v8 = vmul.f32 0.2, %v658_v46  ;;  %v720_v48 = vmul.f32 0.2, %v652_v40  ;;  %v786_v54 = vmax.f32 %v656_v5, %v722_v4 }
 0x149   : > { %v787_v55 = vmax.f32 %v658_v46, %v723_v8  ;;  %v784_v10 = vmax.f32 %v652_v40, %v720_v48 }
 0x14b   : > { %v6026_v3 = vpack.c.bf16 %v787_v55, %v785_v60  ;;  %v6032_v14 = vpack.c.bf16 %v786_v54, %v784_v10 }
 0x14d   : > { %1694 = vmatmul.mubr.bf16.gmra.mxu1 %v5972_v21  ;;  %1887 = vmatmul.mubr.bf16.gmra.mxu0 %v5972_v21 }
 0x14e   : > { %1703 = vmatprep.mubr.bf16.mxu1 %v5974_v29  ;;  %1896 = vmatprep.mubr.bf16.mxu0 %v5974_v29 }
 0x155   : > { %1704 = vmatmul.mubr.bf16.gmra.mxu1 %v5987_v49  ;;  %1897 = vmatmul.mubr.bf16.gmra.mxu0 %v5987_v49 }
 0x156   : > { %1713 = vmatprep.mubr.bf16.mxu1 %v5989_v33  ;;  %1906 = vmatprep.mubr.bf16.mxu0 %v5989_v33 }
 0x15d   : > { %1714 = vmatmul.mubr.bf16.gmra.mxu1 %v6001_v18  ;;  %1907 = vmatmul.mubr.bf16.gmra.mxu0 %v6001_v18 }
 0x15e   : > { %1723 = vmatprep.mubr.bf16.mxu1 %v6003_v31  ;;  %1916 = vmatprep.mubr.bf16.mxu0 %v6003_v31 }
 0x165   : > { %1724 = vmatmul.mubr.bf16.gmra.mxu1 %v6014_v43  ;;  %1917 = vmatmul.mubr.bf16.gmra.mxu0 %v6014_v43 }
 0x166   : > { %1733 = vmatprep.mubr.bf16.mxu1 %v6016_v0  ;;  %1926 = vmatprep.mubr.bf16.mxu0 %v6016_v0 }
 0x16d   : > { %1734 = vmatmul.mubr.bf16.gmra.mxu1 %v6024_v56  ;;  %1927 = vmatmul.mubr.bf16.gmra.mxu0 %v6024_v56 }
 0x16e   : > { %1743 = vmatprep.mubr.bf16.mxu1 %v6026_v3  ;;  %1936 = vmatprep.mubr.bf16.mxu0 %v6026_v3 }
 0x175   : > { %1744 = vmatmul.mubr.bf16.gmra.mxu1 %v6032_v14  ;;  %1937 = vmatmul.mubr.bf16.gmra.mxu0 %v6032_v14 }
 0x176   : > { %1979 = vmatprep.mubr.bf16.mxu1 %v5654_v7  ;;  %2172 = vmatprep.mubr.bf16.mxu0 %v5654_v7  ;;  %v948_v7 = vld [vmem:[%s7183_s4] sm:$0x7f] }
 0x17d   : > { %1980 = vmatmul.mubr.bf16.vlgmr.msra.gmra.mxu1 %v5663_v11  ;;  %2173 = vmatmul.mubr.bf16.vlgmr.msra.gmra.mxu0 %v5663_v11  ;;  %v964_v11 = vsub.s32 3, %v5619_v36 }
 0x17e   : > { %1989 = vmatprep.mubr.bf16.mxu1 %v5694_v34  ;;  %2180 = vmatprep.mubr.bf16.mxu0 %v5694_v34  ;;  %v6077_v34 = vrot.slane %v948_v7, %v283_v38 }
 0x185   : > { %1990 = vmatmul.mubr.bf16.gmra.mxu1 %v5703_v44  ;;  %2181 = vmatmul.mubr.bf16.gmra.mxu0 %v5703_v44  ;;  %v6079_v44 = vrot.slane %v948_v7, %v960_v41 }
 0x186   : > { %1999 = vmatprep.mubr.bf16.mxu1 %v5734_v13  ;;  %2188 = vmatprep.mubr.bf16.mxu0 %v5734_v13  ;;  %v6083_v13 = vrot.slane %v948_v7, %v287_v37 }
 0x18d   : > { %2000 = vmatmul.mubr.bf16.gmra.mxu1 %v5743_v17  ;;  %2189 = vmatmul.mubr.bf16.gmra.mxu0 %v5743_v17  ;;  %v6085_v17 = vrot.slane %v948_v7, %v964_v11 }
 0x18e   : > { %2009 = vmatprep.mubr.bf16.mxu1 %v5774_v53  ;;  %2196 = vmatprep.mubr.bf16.mxu0 %v5774_v53 }
 0x195   : > { %2010 = vmatmul.mubr.bf16.gmra.mxu1 %v5783_v59  ;;  %2197 = vmatmul.mubr.bf16.gmra.mxu0 %v5783_v59 }
 0x196   : > { %2019 = vmatprep.mubr.bf16.mxu1 %v5811_v27  ;;  %2204 = vmatprep.mubr.bf16.mxu0 %v5811_v27 }
 0x19d   : > { %2020 = vmatmul.mubr.bf16.gmra.mxu1 %v5817_v30  ;;  %2205 = vmatmul.mubr.bf16.gmra.mxu0 %v5817_v30 }
 0x19e   : > { %2029 = vmatprep.mubr.bf16.mxu1 %v5839_v9  ;;  %2212 = vmatprep.mubr.bf16.mxu0 %v5839_v9 }
 0x1a5   : > { %2030 = vmatmul.mubr.bf16.gmra.mxu1 %v5845_v15  ;;  %2213 = vmatmul.mubr.bf16.gmra.mxu0 %v5845_v15 }
 0x1a6   : > { %2039 = vmatprep.mubr.bf16.mxu1 %v5871_v61  ;;  %2220 = vmatprep.mubr.bf16.mxu0 %v5871_v61 }
 0x1ad   : > { %2040 = vmatmul.mubr.bf16.gmra.mxu1 %v5877_v63  ;;  %2221 = vmatmul.mubr.bf16.gmra.mxu0 %v5877_v63 }
 0x1ae   : > { %2049 = vmatprep.mubr.bf16.mxu1 %v5905_v57  ;;  %2228 = vmatprep.mubr.bf16.mxu0 %v5905_v57 }
 0x1b5   : > { %2050 = vmatmul.mubr.bf16.gmra.mxu1 %v5907_v39  ;;  %2229 = vmatmul.mubr.bf16.gmra.mxu0 %v5907_v39 }
 0x1b6   : > { %2059 = vmatprep.mubr.bf16.mxu1 %v5912_v52  ;;  %2236 = vmatprep.mubr.bf16.mxu0 %v5912_v52 }
 0x1bd   : > { %v1595_v53 = vpop.f32.mrf.mxu1  ;;  %v1788_v59 = vpop.f32.mrf.mxu0  ;;  %2060 = vmatmul.mubr.bf16.gmra.mxu1 %v5938_v58  ;;  %2237 = vmatmul.mubr.bf16.gmra.mxu0 %v5938_v58 }
 0x1be   : > { %v1596_v27 = vadd.f32 %v1595_v53, %v6077_v34  ;;  %v1789_v30 = vadd.f32 %v1788_v59, %v6079_v44  ;;  %2069 = vmatprep.mubr.bf16.mxu1 %v5940_v28  ;;  %2244 = vmatprep.mubr.bf16.mxu0 %v5940_v28 }
 0x1bf   : > { %v1597_v38 = vpop.f32.mrf.mxu1  ;;  %v1790_v9 = vpop.f32.mrf.mxu0 }
 0x1c0   : > { %v2301_v37 = vmul.f32 0.5, %v1596_v27  ;;  %v2303_v15 = vmul.f32 0.5, %v1789_v30  ;;  %v1598_v61 = vadd.f32 %v1597_v38, %v6083_v13  ;;  %v1791_v63 = vadd.f32 %v1790_v9, %v6085_v17 }
 0x1c1   : > { %v1599_v57 = vpop.f32.mrf.mxu1  ;;  %v1792_v39 = vpop.f32.mrf.mxu0 }
 0x1c2   : > { %4837 = vtanh.f32 %v2301_v37  ;;  %v2302_v52 = vmul.f32 0.5, %v1598_v61  ;;  %v2304_v58 = vmul.f32 0.5, %v1791_v63  ;;  %v1600_v16 = vadd.f32 %v1599_v57, %v6077_v34 }
 0x1c3   : > { %4839 = vtanh.f32 %v2303_v15  ;;  %v1793_v23 = vadd.f32 %v1792_v39, %v6079_v44  ;;  %v1601_v6 = vpop.f32.mrf.mxu1  ;;  %v1794_v28 = vpop.f32.mrf.mxu0 }
 0x1c4   : > { %4841 = vtanh.f32 %v2302_v52  ;;  %v2308_v51 = vmul.f32 0.5, %v1600_v16  ;;  %v1602_v24 = vadd.f32 %v1601_v6, %v6083_v13  ;;  %v1795_v35 = vadd.f32 %v1794_v28, %v6085_v17 }
 0x1c5   : > { %4843 = vtanh.f32 %v2304_v58  ;;  %v2310_v2 = vmul.f32 0.5, %v1793_v23  ;;  %v1605_v12 = vpop.f32.mrf.mxu1  ;;  %v1798_v25 = vpop.f32.mrf.mxu0  ;;  %2070 = vmatmul.mubr.bf16.gmra.mxu1 %v5956_v50  ;;  %2245 = vmatmul.mubr.bf16.gmra.mxu0 %v5956_v50 }
 0x1c6   : > { %4845 = vtanh.f32 %v2308_v51  ;;  %v2309_v19 = vmul.f32 0.5, %v1602_v24  ;;  %v2311_v26 = vmul.f32 0.5, %v1795_v35  ;;  %v1606_v32 = vadd.f32 %v1605_v12, %v6077_v34  ;;  %2079 = vmatprep.mubr.bf16.mxu1 %v5958_v20  ;;  %2252 = vmatprep.mubr.bf16.mxu0 %v5958_v20 }
 0x1c7   : > { %4847 = vtanh.f32 %v2310_v2  ;;  %v1799_v42 = vadd.f32 %v1798_v25, %v6079_v44  ;;  %v1607_v46 = vpop.f32.mrf.mxu1  ;;  %v1800_v47 = vpop.f32.mrf.mxu0 }
 0x1c8   : > { %4849 = vtanh.f32 %v2309_v19  ;;  %v2315_v62 = vmul.f32 0.5, %v1606_v32  ;;  %v1608_v1 = vadd.f32 %v1607_v46, %v6083_v13  ;;  %v1801_v50 = vadd.f32 %v1800_v47, %v6085_v17 }
 0x1c9   : > { %4851 = vtanh.f32 %v2311_v26  ;;  %v2317_v8 = vmul.f32 0.5, %v1799_v42  ;;  %v1609_v45 = vpop.f32.mrf.mxu1  ;;  %v1802_v22 = vpop.f32.mrf.mxu0 }
 0x1ca   : > { %4853 = vtanh.f32 %v2315_v62  ;;  %v2316_v40 = vmul.f32 0.5, %v1608_v1  ;;  %v2318_v5 = vmul.f32 0.5, %v1801_v50  ;;  %v1610_v20 = vadd.f32 %v1609_v45, %v6077_v34 }
 0x1cb   : > { %4855 = vtanh.f32 %v2317_v8  ;;  %v1803_v60 = vadd.f32 %v1802_v22, %v6079_v44  ;;  %v1611_v55 = vpop.f32.mrf.mxu1  ;;  %v1804_v48 = vpop.f32.mrf.mxu0 }
 0x1cc   : > { %4857 = vtanh.f32 %v2316_v40  ;;  %v2322_v4 = vmul.f32 0.5, %v1610_v20  ;;  %v1612_v10 = vadd.f32 %v1611_v55, %v6083_v13  ;;  %v1805_v54 = vadd.f32 %v1804_v48, %v6085_v17 }
 0x1cd   : > { %4859 = vtanh.f32 %v2318_v5  ;;  %v2324_v41 = vmul.f32 0.5, %v1803_v60  ;;  %v1615_v7 = vpop.f32.mrf.mxu1  ;;  %v1808_v11 = vpop.f32.mrf.mxu0  ;;  %2080 = vmatmul.mubr.bf16.gmra.mxu1 %v5972_v21  ;;  %2253 = vmatmul.mubr.bf16.gmra.mxu0 %v5972_v21 }
 0x1ce   : > { %4861 = vtanh.f32 %v2322_v4  ;;  %v2323_v53 = vmul.f32 0.5, %v1612_v10  ;;  %v2325_v59 = vmul.f32 0.5, %v1805_v54  ;;  %v1616_v27 = vadd.f32 %v1615_v7, %v6077_v34  ;;  %2089 = vmatprep.mubr.bf16.mxu1 %v5974_v29  ;;  %2260 = vmatprep.mubr.bf16.mxu0 %v5974_v29 }
 0x1cf   : > { %v4838_v30 = vpop.eup %4837  ;;  %4863 = vtanh.f32 %v2324_v41  ;;  %v1809_v38 = vadd.f32 %v1808_v11, %v6079_v44  ;;  %v1617_v9 = vpop.f32.mrf.mxu1 }
 0x1d0   : > { %v1810_v37 = vpop.f32.mrf.mxu0  ;;  %v4840_v15 = vpop.eup %4839  ;;  %v2749_v61 = vadd.f32 1.0, %v4838_v30  ;;  %4865 = vtanh.f32 %v2323_v53  ;;  %v2329_v21 = vmul.f32 0.5, %v1616_v27  ;;  %v1618_v63 = vadd.f32 %v1617_v9, %v6083_v13 }
 0x1d1   : > { %v4842_v57 = vpop.eup %4841  ;;  %v2751_v39 = vadd.f32 1.0, %v4840_v15  ;;  %4867 = vtanh.f32 %v2325_v59  ;;  %v2331_v52 = vmul.f32 0.5, %v1809_v38  ;;  %v1811_v58 = vadd.f32 %v1810_v37, %v6085_v17  ;;  %v1619_v29 = vpop.f32.mrf.mxu1 }
 0x1d2   : > { %v1812_v16 = vpop.f32.mrf.mxu0  ;;  %v4844_v23 = vpop.eup %4843  ;;  %v2973_v6 = vmul.f32 0.5, %v2749_v61  ;;  %v2750_v28 = vadd.f32 1.0, %v4842_v57  ;;  %4869 = vtanh.f32 %v2329_v21  ;;  %v2330_v51 = vmul.f32 0.5, %v1618_v63 }
 0x1d3   : > { %v4846_v24 = vpop.eup %4845  ;;  %v2975_v35 = vmul.f32 0.5, %v2751_v39  ;;  %v2752_v2 = vadd.f32 1.0, %v4844_v23  ;;  %4871 = vtanh.f32 %v2331_v52  ;;  %v2332_v12 = vmul.f32 0.5, %v1811_v58  ;;  %v1621_v25 = vpop.f32.mrf.mxu1 }
 0x1d4   : > { %v1814_v19 = vpop.f32.mrf.mxu0  ;;  %v4848_v26 = vpop.eup %4847  ;;  %v2974_v32 = vmul.f32 0.5, %v2750_v28  ;;  %v2756_v42 = vadd.f32 1.0, %v4846_v24  ;;  %4873 = vtanh.f32 %v2330_v51  ;;  %v1620_v46 = vadd.f32 %v1619_v29, %v6077_v34 }
 0x1d5   : > { %v4850_v47 = vpop.eup %4849  ;;  %v2976_v62 = vmul.f32 0.5, %v2752_v2  ;;  %v2758_v1 = vadd.f32 1.0, %v4848_v26  ;;  %4875 = vtanh.f32 %v2332_v12  ;;  %v1813_v50 = vadd.f32 %v1812_v16, %v6079_v44  ;;  %v1625_v8 = vpop.f32.mrf.mxu1  ;;  %2090 = vmatmul.mubr.bf16.gmra.mxu1 %v5987_v49  ;;  %2261 = vmatmul.mubr.bf16.gmra.mxu0 %v5987_v49 }
 0x1d6   : > { %v1818_v45 = vpop.f32.mrf.mxu0  ;;  %v4852_v22 = vpop.eup %4851  ;;  %v4371_v40 = vpack.c.bf16 %v2974_v32, %v2973_v6  ;;  %v2980_v5 = vmul.f32 0.5, %v2756_v42  ;;  %v2757_v20 = vadd.f32 1.0, %v4850_v47  ;;  %v2336_v60 = vmul.f32 0.5, %v1620_v46  ;;  %2099 = vmatprep.mubr.bf16.mxu1 %v5989_v33  ;;  %2268 = vmatprep.mubr.bf16.mxu0 %v5989_v33 }
 0x1d7   : > { %v4854_v55 = vpop.eup %4853  ;;  %v4372_v48 = vpack.c.bf16 %v2976_v62, %v2975_v35  ;;  %v2982_v4 = vmul.f32 0.5, %v2758_v1  ;;  %v2759_v10 = vadd.f32 1.0, %v4852_v22  ;;  %v2338_v54 = vmul.f32 0.5, %v1813_v50  ;;  %v6131_v41 = vpop.f32.mrf.mxu1 }
 0x1d8   : > { %v6133_v7 = vpop.f32.mrf.mxu0  ;;  %v4856_v49 = vpop.eup %4855  ;;  %3901 = vst [vmem:[%s6124_s14] sm:$0xff] %v4371_v40  ;;  %v2981_v11 = vmul.f32 0.5, %v2757_v20  ;;  %v2763_v53 = vadd.f32 1.0, %v4854_v55  ;;  %4877 = vtanh.f32 %v2336_v60  ;;  %v1622_v59 = vadd.f32 %v1621_v25, %v6083_v13 }
 0x1d9   : > { %v4858_v27 = vpop.eup %4857  ;;  %3902 = vst [vmem:[%s6124_s14 + $0x8] sm:$0xff] %v4372_v48  ;;  %v2983_v30 = vmul.f32 0.5, %v2759_v10  ;;  %v2765_v33 = vadd.f32 1.0, %v4856_v49  ;;  %4879 = vtanh.f32 %v2338_v54  ;;  %v1815_v38 = vadd.f32 %v1814_v19, %v6085_v17  ;;  %v6139_v9 = vpop.f32.mrf.mxu1 }
 0x1da   : > { %v6141_v37 = vpop.f32.mrf.mxu0  ;;  %v4860_v15 = vpop.eup %4859  ;;  %v4375_v61 = vpack.c.bf16 %v2981_v11, %v2980_v5  ;;  %v2987_v21 = vmul.f32 0.5, %v2763_v53  ;;  %v2764_v63 = vadd.f32 1.0, %v4858_v27  ;;  %v2337_v57 = vmul.f32 0.5, %v1622_v59 }
 0x1db   : > { %v4862_v39 = vpop.eup %4861  ;;  %v4376_v52 = vpack.c.bf16 %v2983_v30, %v2982_v4  ;;  %v2989_v58 = vmul.f32 0.5, %v2765_v33  ;;  %v2766_v29 = vadd.f32 1.0, %v4860_v15  ;;  %v2339_v16 = vmul.f32 0.5, %v1815_v38  ;;  %v6143_v23 = vpop.f32.mrf.mxu1 }
 0x1dc   : > { %v6145_v6 = vpop.f32.mrf.mxu0  ;;  %v4864_v28 = vpop.eup %4863  ;;  %3906 = vst [vmem:[%s6124_s14 + $0x1c] sm:$0xff] %v4375_v61  ;;  %v2988_v51 = vmul.f32 0.5, %v2764_v63  ;;  %v2770_v24 = vadd.f32 1.0, %v4862_v39  ;;  %4881 = vtanh.f32 %v2337_v57  ;;  %v1626_v35 = vadd.f32 %v1625_v8, %v6077_v34 }
 0x1dd   : > { %v4866_v2 = vpop.eup %4865  ;;  %3907 = vst [vmem:[%s6124_s14 + $0x24] sm:$0xff] %v4376_v52  ;;  %v2990_v12 = vmul.f32 0.5, %v2766_v29  ;;  %v2772_v25 = vadd.f32 1.0, %v4864_v28  ;;  %4883 = vtanh.f32 %v2339_v16  ;;  %v1819_v19 = vadd.f32 %v1818_v45, %v6079_v44  ;;  %v6151_v26 = vpop.f32.mrf.mxu1  ;;  %2100 = vmatmul.mubr.bf16.gmra.mxu1 %v6001_v18  ;;  %2269 = vmatmul.mubr.bf16.gmra.mxu0 %v6001_v18 }
 0x1de   : > { %v6153_v32 = vpop.f32.mrf.mxu0  ;;  %v4868_v42 = vpop.eup %4867  ;;  %v4379_v46 = vpack.c.bf16 %v2988_v51, %v2987_v21  ;;  %v2994_v47 = vmul.f32 0.5, %v2770_v24  ;;  %v2771_v62 = vadd.f32 1.0, %v4866_v2  ;;  %v2343_v1 = vmul.f32 0.5, %v1626_v35  ;;  %2109 = vmatprep.mubr.bf16.mxu1 %v6003_v31  ;;  %2276 = vmatprep.mubr.bf16.mxu0 %v6003_v31 }
 0x1df   : > { %v4870_v50 = vpop.eup %4869  ;;  %v4380_v8 = vpack.c.bf16 %v2990_v12, %v2989_v58  ;;  %v2996_v45 = vmul.f32 0.5, %v2772_v25  ;;  %v2773_v22 = vadd.f32 1.0, %v4868_v42  ;;  %v2345_v40 = vmul.f32 0.5, %v1819_v19  ;;  %v6159_v5 = vpop.f32.mrf.mxu1 }
 0x1e0   : > { %v6161_v20 = vpop.f32.mrf.mxu0  ;;  %v4872_v18 = vpop.eup %4871  ;;  %3910 = vst [vmem:[%s6124_s14 + $0x38] sm:$0xff] %v4379_v46  ;;  %v2995_v60 = vmul.f32 0.5, %v2771_v62  ;;  %v2777_v55 = vadd.f32 1.0, %v4870_v50  ;;  %4885 = vtanh.f32 %v2343_v1  ;;  %v1628_v48 = vadd.f32 %v6131_v41, %v6083_v13 }
 0x1e1   : > { %v4874_v4 = vpop.eup %4873  ;;  %3911 = vst [vmem:[%s6124_s14 + $0x40] sm:$0xff] %v4380_v8  ;;  %v2997_v31 = vmul.f32 0.5, %v2773_v22  ;;  %v2779_v10 = vadd.f32 1.0, %v4872_v18  ;;  %4887 = vtanh.f32 %v2345_v40  ;;  %v1821_v54 = vadd.f32 %v6133_v7, %v6085_v17  ;;  %v6169_v49 = vpop.f32.mrf.mxu1 }
 0x1e2   : > { %v6171_v11 = vpop.f32.mrf.mxu0  ;;  %v4876_v53 = vpop.eup %4875  ;;  %v4383_v59 = vpack.c.bf16 %v2995_v60, %v2994_v47  ;;  %v3001_v27 = vmul.f32 0.5, %v2777_v55  ;;  %v2778_v30 = vadd.f32 1.0, %v4874_v4  ;;  %v2344_v33 = vmul.f32 0.5, %v1628_v48 }
 0x1e3   : > { %v4384_v41 = vpack.c.bf16 %v2997_v31, %v2996_v45  ;;  %v3003_v38 = vmul.f32 0.5, %v2779_v10  ;;  %v2780_v15 = vadd.f32 1.0, %v4876_v53  ;;  %v2346_v61 = vmul.f32 0.5, %v1821_v54  ;;  %v1641_v21 = vpop.f32.mrf.mxu1 }
 0x1e4   : > { %v1834_v63 = vpop.f32.mrf.mxu0  ;;  %3914 = vst [vmem:[%s6124_s14 + $0x54] sm:$0xff] %v4383_v59  ;;  %v3002_v57 = vmul.f32 0.5, %v2778_v30  ;;  %4889 = vtanh.f32 %v2344_v33  ;;  %v1630_v7 = vadd.f32 %v6139_v9, %v6077_v34  ;;  %v1823_v39 = vadd.f32 %v6141_v37, %v6079_v44 }
 0x1e5   : > { %v4878_v52 = vpop.eup %4877  ;;  %3915 = vst [vmem:[%s6124_s14 + $0x5c] sm:$0xff] %v4384_v41  ;;  %v3004_v58 = vmul.f32 0.5, %v2780_v15  ;;  %4891 = vtanh.f32 %v2346_v61  ;;  %v1632_v29 = vadd.f32 %v6143_v23, %v6083_v13  ;;  %v1825_v16 = vadd.f32 %v6145_v6, %v6085_v17  ;;  %v6183_v28 = vpop.f32.mrf.mxu1  ;;  %2110 = vmatmul.mubr.bf16.gmra.mxu1 %v6014_v43  ;;  %2277 = vmatmul.mubr.bf16.gmra.mxu0 %v6014_v43 }
 0x1e6   : > { %v6185_v51 = vpop.f32.mrf.mxu0  ;;  %v4880_v9 = vpop.eup %4879  ;;  %v4387_v37 = vpack.c.bf16 %v3002_v57, %v3001_v27  ;;  %v2784_v24 = vadd.f32 1.0, %v4878_v52  ;;  %v2350_v35 = vmul.f32 0.5, %v1630_v7  ;;  %v2352_v2 = vmul.f32 0.5, %v1823_v39  ;;  %2119 = vmatprep.mubr.bf16.mxu1 %v6016_v0  ;;  %2284 = vmatprep.mubr.bf16.mxu0 %v6016_v0 }
 0x1e7   : > { %v4388_v23 = vpack.c.bf16 %v3004_v58, %v3003_v38  ;;  %v2786_v6 = vadd.f32 1.0, %v4880_v9  ;;  %v2351_v12 = vmul.f32 0.5, %v1632_v29  ;;  %v2353_v25 = vmul.f32 0.5, %v1825_v16  ;;  %v6191_v19 = vpop.f32.mrf.mxu1 }
 0x1e8   : > { %v6193_v42 = vpop.f32.mrf.mxu0  ;;  %3918 = vst [vmem:[%s6124_s14 + $0x70] sm:$0xff] %v4387_v37  ;;  %v3008_v43 = vmul.f32 0.5, %v2784_v24  ;;  %4893 = vtanh.f32 %v2350_v35  ;;  %v1636_v46 = vadd.f32 %v6151_v26, %v6077_v34  ;;  %v1829_v47 = vadd.f32 %v6153_v32, %v6079_v44 }
 0x1e9   : > { %v4882_v62 = vpop.eup %4881  ;;  %3919 = vst [vmem:[%s6124_s14 + $0x78] sm:$0xff] %v4388_v23  ;;  %v3010_v0 = vmul.f32 0.5, %v2786_v6  ;;  %4895 = vtanh.f32 %v2352_v2  ;;  %v1638_v1 = vadd.f32 %v6159_v5, %v6083_v13  ;;  %v1831_v50 = vadd.f32 %v6161_v20, %v6085_v17  ;;  %v6205_v8 = vpop.f32.mrf.mxu1 }
 0x1ea   : > { %v6207_v45 = vpop.f32.mrf.mxu0  ;;  %v4884_v22 = vpop.eup %4883  ;;  %v2785_v40 = vadd.f32 1.0, %v4882_v62  ;;  %4897 = vtanh.f32 %v2351_v12  ;;  %v2357_v26 = vmul.f32 0.5, %v1636_v46  ;;  %v2359_v18 = vmul.f32 0.5, %v1829_v47 }
 0x1eb   : > { %v2787_v32 = vadd.f32 1.0, %v4884_v22  ;;  %4899 = vtanh.f32 %v2353_v25  ;;  %v2358_v60 = vmul.f32 0.5, %v1638_v1  ;;  %v2360_v55 = vmul.f32 0.5, %v1831_v50  ;;  %v1651_v48 = vpop.f32.mrf.mxu1 }
 0x1ec   : > { %v6209_v4 = vpop.f32.mrf.mxu0  ;;  %v3009_v5 = vmul.f32 0.5, %v2785_v40  ;;  %4901 = vtanh.f32 %v2357_v26  ;;  %v1640_v20 = vadd.f32 %v6169_v49, %v6077_v34  ;;  %v1833_v31 = vadd.f32 %v6171_v11, %v6079_v44 }
 0x1ed   : > { %v4886_v10 = vpop.eup %4885  ;;  %v3011_v54 = vmul.f32 0.5, %v2787_v32  ;;  %4903 = vtanh.f32 %v2359_v18  ;;  %v1642_v53 = vadd.f32 %v1641_v21, %v6083_v13  ;;  %v1835_v59 = vadd.f32 %v1834_v63, %v6085_v17  ;;  %v6217_v27 = vpop.f32.mrf.mxu1  ;;  %2120 = vmatmul.mubr.bf16.gmra.mxu1 %v6024_v56  ;;  %2285 = vmatmul.mubr.bf16.gmra.mxu0 %v6024_v56 }
 0x1ee   : > { %v6219_v30 = vpop.f32.mrf.mxu0  ;;  %v4888_v49 = vpop.eup %4887  ;;  %v4391_v33 = vpack.c.bf16 %v3009_v5, %v3008_v43  ;;  %v2791_v41 = vadd.f32 1.0, %v4886_v10  ;;  %4905 = vtanh.f32 %v2358_v60  ;;  %v2364_v11 = vmul.f32 0.5, %v1640_v20  ;;  %2129 = vmatprep.mubr.bf16.mxu1 %v6026_v3  ;;  %2292 = vmatprep.mubr.bf16.mxu0 %v6026_v3 }
 0x1ef   : > { %v4392_v38 = vpack.c.bf16 %v3011_v54, %v3010_v0  ;;  %v2793_v15 = vadd.f32 1.0, %v4888_v49  ;;  %4907 = vtanh.f32 %v2360_v55  ;;  %v2366_v61 = vmul.f32 0.5, %v1833_v31  ;;  %v6225_v21 = vpop.f32.mrf.mxu1 }
 0x1f0   : > { %v6227_v63 = vpop.f32.mrf.mxu0  ;;  %3922 = vst [vmem:[%s6124_s14 + $0x8c] sm:$0xff] %v4391_v33  ;;  %v3015_v56 = vmul.f32 0.5, %v2791_v41  ;;  %4909 = vtanh.f32 %v2364_v11  ;;  %v2365_v57 = vmul.f32 0.5, %v1642_v53  ;;  %v2367_v7 = vmul.f32 0.5, %v1835_v59 }
 0x1f1   : > { %v4890_v39 = vpop.eup %4889  ;;  %3923 = vst [vmem:[%s6124_s14 + $0x94] sm:$0xff] %v4392_v38  ;;  %v3017_v52 = vmul.f32 0.5, %v2793_v15  ;;  %4911 = vtanh.f32 %v2366_v61  ;;  %v1646_v3 = vadd.f32 %v6183_v28, %v6077_v34  ;;  %v1839_v58 = vadd.f32 %v6185_v51, %v6079_v44  ;;  %v6235_v29 = vpop.f32.mrf.mxu1 }
 0x1f2   : > { %v6237_v16 = vpop.f32.mrf.mxu0  ;;  %v4892_v9 = vpop.eup %4891  ;;  %v2792_v37 = vadd.f32 1.0, %v4890_v39  ;;  %4913 = vtanh.f32 %v2365_v57  ;;  %v1648_v24 = vadd.f32 %v6191_v19, %v6083_v13  ;;  %v1841_v35 = vadd.f32 %v6193_v42, %v6085_v17 }
 0x1f3   : > { %v2794_v2 = vadd.f32 1.0, %v4892_v9  ;;  %4915 = vtanh.f32 %v2367_v7  ;;  %v2371_v23 = vmul.f32 0.5, %v1646_v3  ;;  %v2373_v28 = vmul.f32 0.5, %v1839_v58  ;;  %v6243_v6 = vpop.f32.mrf.mxu1 }
 0x1f4   : > { %v6245_v51 = vpop.f32.mrf.mxu0  ;;  %v3016_v12 = vmul.f32 0.5, %v2792_v37  ;;  %v2372_v25 = vmul.f32 0.5, %v1648_v24  ;;  %v2374_v43 = vmul.f32 0.5, %v1841_v35  ;;  %v1650_v46 = vadd.f32 %v6205_v8, %v6077_v34 }
 0x1f5   : > { %v4894_v47 = vpop.eup %4893  ;;  %v3018_v62 = vmul.f32 0.5, %v2794_v2  ;;  %4917 = vtanh.f32 %v2371_v23  ;;  %v1843_v19 = vadd.f32 %v6207_v45, %v6079_v44  ;;  %v1652_v42 = vadd.f32 %v1651_v48, %v6083_v13  ;;  %v6252_v0 = vpop.f32.mrf.mxu1  ;;  %2130 = vmatmul.mubr.bf16.gmra.mxu1 %v6032_v14  ;;  %2293 = vmatmul.mubr.bf16.gmra.mxu0 %v6032_v14 }
 0x1f6   : > { %v6254_v1 = vpop.f32.mrf.mxu0  ;;  %v4896_v50 = vpop.eup %4895  ;;  %v4395_v22 = vpack.c.bf16 %v3016_v12, %v3015_v56  ;;  %v2798_v8 = vadd.f32 1.0, %v4894_v47  ;;  %4919 = vtanh.f32 %v2373_v28  ;;  %v2378_v40 = vmul.f32 0.5, %v1650_v46 }
 0x1f7   : > { %v4898_v26 = vpop.eup %4897  ;;  %v4396_v18 = vpack.c.bf16 %v3018_v62, %v3017_v52  ;;  %v2800_v45 = vadd.f32 1.0, %v4896_v50  ;;  %4921 = vtanh.f32 %v2372_v25  ;;  %v2380_v32 = vmul.f32 0.5, %v1843_v19  ;;  %v6258_v60 = vpop.f32.mrf.mxu1 }
 0x1f8   : > { %v6260_v55 = vpop.f32.mrf.mxu0  ;;  %v4900_v48 = vpop.eup %4899  ;;  %3926 = vst [vmem:[%s6124_s14 + $0xa8] sm:$0xff] %v4395_v22  ;;  %v3022_v5 = vmul.f32 0.5, %v2798_v8  ;;  %v2799_v20 = vadd.f32 1.0, %v4898_v26  ;;  %4923 = vtanh.f32 %v2374_v43  ;;  %v2379_v14 = vmul.f32 0.5, %v1652_v42 }
 0x1f9   : > { %v4902_v31 = vpop.eup %4901  ;;  %3927 = vst [vmem:[%s6124_s14 + $0xb0] sm:$0xff] %v4396_v18  ;;  %v3024_v10 = vmul.f32 0.5, %v2800_v45  ;;  %v2801_v54 = vadd.f32 1.0, %v4900_v48  ;;  %4925 = vtanh.f32 %v2378_v40  ;;  %v1845_v53 = vadd.f32 %v6209_v4, %v6085_v17  ;;  %v6266_v59 = vpop.f32.mrf.mxu1 }
 0x1fa   : > { %v6268_v49 = vpop.f32.mrf.mxu0  ;;  %v4904_v33 = vpop.eup %4903  ;;  %v3023_v41 = vmul.f32 0.5, %v2799_v20  ;;  %v2805_v11 = vadd.f32 1.0, %v4902_v31  ;;  %4927 = vtanh.f32 %v2380_v32  ;;  %v1656_v38 = vadd.f32 %v6217_v27, %v6077_v34 }
 0x1fb   : > { %v4906_v15 = vpop.eup %4905  ;;  %v3025_v61 = vmul.f32 0.5, %v2801_v54  ;;  %v2807_v56 = vadd.f32 1.0, %v4904_v33  ;;  %4929 = vtanh.f32 %v2379_v14  ;;  %v2381_v57 = vmul.f32 0.5, %v1845_v53  ;;  %v6272_v7 = vpop.f32.mrf.mxu1 }
 0x1fc   : > { %v6274_v4 = vpop.f32.mrf.mxu0  ;;  %v4908_v39 = vpop.eup %4907  ;;  %v4399_v52 = vpack.c.bf16 %v3023_v41, %v3022_v5  ;;  %v3029_v3 = vmul.f32 0.5, %v2805_v11  ;;  %v2806_v58 = vadd.f32 1.0, %v4906_v15  ;;  %v2385_v9 = vmul.f32 0.5, %v1656_v38 }
 0x1fd   : > { %v4910_v37 = vpop.eup %4909  ;;  %v4400_v24 = vpack.c.bf16 %v3025_v61, %v3024_v10  ;;  %v3031_v35 = vmul.f32 0.5, %v2807_v56  ;;  %v2808_v27 = vadd.f32 1.0, %v4908_v39  ;;  %4931 = vtanh.f32 %v2381_v57  ;;  %v6276_v2 = vpop.f32.mrf.mxu1 }
 0x1fe   : > { %v6278_v23 = vpop.f32.mrf.mxu0  ;;  %v4912_v28 = vpop.eup %4911  ;;  %3930 = vst [vmem:[%s6124_s14 + $0xc4] sm:$0xff] %v4399_v52  ;;  %v3030_v12 = vmul.f32 0.5, %v2806_v58  ;;  %v2812_v25 = vadd.f32 1.0, %v4910_v37  ;;  %4933 = vtanh.f32 %v2385_v9  ;;  %v1849_v43 = vadd.f32 %v6219_v30, %v6079_v44 }
 0x1ff   : > { %v4914_v46 = vpop.eup %4913  ;;  %3931 = vst [vmem:[%s6124_s14 + $0xcc] sm:$0xff] %v4400_v24  ;;  %v3032_v47 = vmul.f32 0.5, %v2808_v27  ;;  %v2814_v62 = vadd.f32 1.0, %v4912_v28  ;;  %v1658_v19 = vadd.f32 %v6225_v21, %v6083_v13  ;;  %v1851_v42 = vadd.f32 %v6227_v63, %v6085_v17  ;;  %v6288_v50 = vpop.f32.mrf.mxu1 }
 0x200   : > { %v6290_v22 = vpop.f32.mrf.mxu0  ;;  %v4916_v8 = vpop.eup %4915  ;;  %v4403_v40 = vpack.c.bf16 %v3030_v12, %v3029_v3  ;;  %v3036_v26 = vmul.f32 0.5, %v2812_v25  ;;  %v2813_v30 = vadd.f32 1.0, %v4914_v46  ;;  %v2387_v18 = vmul.f32 0.5, %v1849_v43 }
 0x201   : > { %v4404_v45 = vpack.c.bf16 %v3032_v47, %v3031_v35  ;;  %v3038_v32 = vmul.f32 0.5, %v2814_v62  ;;  %v2815_v48 = vadd.f32 1.0, %v4916_v8  ;;  %v2386_v5 = vmul.f32 0.5, %v1658_v19  ;;  %v6292_v20 = vpop.f32.mrf.mxu1 }
 0x202   : > { %v6294_v21 = vpop.f32.mrf.mxu0  ;;  %v4918_v14 = vpop.eup %4917  ;;  %3934 = vst [vmem:[%s6124_s14 + $0xe0] sm:$0xff] %v4403_v40  ;;  %v3037_v63 = vmul.f32 0.5, %v2813_v30  ;;  %4935 = vtanh.f32 %v2387_v18  ;;  %v2388_v31 = vmul.f32 0.5, %v1851_v42  ;;  %v1660_v10 = vadd.f32 %v6235_v29, %v6077_v34 }
 0x203   : > { %v4920_v54 = vpop.eup %4919  ;;  %3935 = vst [vmem:[%s6124_s14 + $0xe8] sm:$0xff] %v4404_v45  ;;  %v3039_v53 = vmul.f32 0.5, %v2815_v48  ;;  %v2819_v33 = vadd.f32 1.0, %v4918_v14  ;;  %4937 = vtanh.f32 %v2386_v5  ;;  %v1853_v41 = vadd.f32 %v6237_v16, %v6079_v44  ;;  %v6302_v11 = vpop.f32.mrf.mxu1 }
 0x204   : > { %v6304_v38 = vpop.f32.mrf.mxu0  ;;  %v4922_v15 = vpop.eup %4921  ;;  %v4407_v61 = vpack.c.bf16 %v3037_v63, %v3036_v26  ;;  %v2821_v56 = vadd.f32 1.0, %v4920_v54  ;;  %4939 = vtanh.f32 %v2388_v31  ;;  %v2392_v57 = vmul.f32 0.5, %v1660_v10 }
 0x205   : > { %v4924_v29 = vpop.eup %4923  ;;  %v4408_v39 = vpack.c.bf16 %v3039_v53, %v3038_v32  ;;  %v3043_v52 = vmul.f32 0.5, %v2819_v33  ;;  %v2820_v3 = vadd.f32 1.0, %v4922_v15  ;;  %v2394_v58 = vmul.f32 0.5, %v1853_v41  ;;  %v6306_v9 = vpop.f32.mrf.mxu1 }
 0x206   : > { %v6308_v37 = vpop.f32.mrf.mxu0  ;;  %v4926_v16 = vpop.eup %4925  ;;  %3938 = vst [vmem:[%s6124_s14 + $0xfc] sm:$0xff] %v4407_v61  ;;  %v3045_v24 = vmul.f32 0.5, %v2821_v56  ;;  %v2822_v35 = vadd.f32 1.0, %v4924_v29  ;;  %4941 = vtanh.f32 %v2392_v57  ;;  %v1662_v27 = vadd.f32 %v6243_v6, %v6083_v13 }
 0x207   : > { %v4928_v28 = vpop.eup %4927  ;;  %3939 = vst [vmem:[%s6124_s14 + $0x104] sm:$0xff] %v4408_v39  ;;  %v3044_v12 = vmul.f32 0.5, %v2820_v3  ;;  %v2826_v25 = vadd.f32 1.0, %v4926_v16  ;;  %4943 = vtanh.f32 %v2394_v58  ;;  %v1855_v43 = vadd.f32 %v6245_v51, %v6085_v17  ;;  %v6316_v46 = vpop.f32.mrf.mxu1 }
 0x208   : > { %v6318_v47 = vpop.f32.mrf.mxu0  ;;  %v4930_v62 = vpop.eup %4929  ;;  %v3046_v19 = vmul.f32 0.5, %v2822_v35  ;;  %v2828_v42 = vadd.f32 1.0, %v4928_v28  ;;  %v2393_v8 = vmul.f32 0.5, %v1662_v27  ;;  %v1666_v6 = vadd.f32 %v6252_v0, %v6077_v34 }
 0x209   : > { %v4411_v40 = vpack.c.bf16 %v3044_v12, %v3043_v52  ;;  %v3050_v26 = vmul.f32 0.5, %v2826_v25  ;;  %v2827_v30 = vadd.f32 1.0, %v4930_v62  ;;  %v2395_v18 = vmul.f32 0.5, %v1855_v43  ;;  %v6322_v45 = vpop.f32.mrf.mxu1 }
 0x20a   : > { %v6324_v51 = vpop.f32.mrf.mxu0  ;;  %v4932_v32 = vpop.eup %4931  ;;  %v4412_v48 = vpack.c.bf16 %v3046_v19, %v3045_v24  ;;  %v3052_v5 = vmul.f32 0.5, %v2828_v42  ;;  %4945 = vtanh.f32 %v2393_v8  ;;  %v2399_v14 = vmul.f32 0.5, %v1666_v6 }
 0x20b   : > { %v4934_v63 = vpop.eup %4933  ;;  %3942 = vst [vmem:[%s6124_s14 + $0x118] sm:$0xff] %v4411_v40  ;;  %v3051_v31 = vmul.f32 0.5, %v2827_v30  ;;  %v2829_v10 = vadd.f32 1.0, %v4932_v32  ;;  %4947 = vtanh.f32 %v2395_v18  ;;  %v1859_v0 = vadd.f32 %v6254_v1, %v6079_v44  ;;  %v6329_v54 = vpop.f32.mrf.mxu1 }
 0x20c   : > { %v6331_v53 = vpop.f32.mrf.mxu0  ;;  %3943 = vst [vmem:[%s6124_s14 + $0x120] sm:$0xff] %v4412_v48  ;;  %v2833_v33 = vadd.f32 1.0, %v4934_v63  ;;  %4949 = vtanh.f32 %v2399_v14  ;;  %v1668_v41 = vadd.f32 %v6258_v60, %v6083_v13  ;;  %v1861_v15 = vadd.f32 %v6260_v55, %v6085_v17 }
 0x20d   : > { %v4415_v61 = vpack.c.bf16 %v3051_v31, %v3050_v26  ;;  %v3053_v56 = vmul.f32 0.5, %v2829_v10  ;;  %v2401_v57 = vmul.f32 0.5, %v1859_v0  ;;  %v1670_v1 = vadd.f32 %v6266_v59, %v6077_v34  ;;  %v6340_v29 = vpop.f32.mrf.mxu1 }
 0x20e   : > { %v6342_v39 = vpop.f32.mrf.mxu0  ;;  %v3057_v52 = vmul.f32 0.5, %v2833_v33  ;;  %v2400_v3 = vmul.f32 0.5, %v1668_v41  ;;  %v2402_v58 = vmul.f32 0.5, %v1861_v15  ;;  %v1863_v60 = vadd.f32 %v6268_v49, %v6079_v44 }
 0x20f   : > { %v4936_v16 = vpop.eup %4935  ;;  %3946 = vst [vmem:[%s6124_s14 + $0x134] sm:$0xff] %v4415_v61  ;;  %v4416_v55 = vpack.c.bf16 %v3053_v56, %v3052_v5  ;;  %4951 = vtanh.f32 %v2401_v57  ;;  %v2406_v24 = vmul.f32 0.5, %v1670_v1  ;;  %v1672_v35 = vadd.f32 %v6272_v7, %v6083_v13  ;;  %v6349_v59 = vpop.f32.mrf.mxu1 }
 0x210   : > { %v6351_v27 = vpop.f32.mrf.mxu0  ;;  %v4938_v28 = vpop.eup %4937  ;;  %v2835_v12 = vadd.f32 1.0, %v4936_v16  ;;  %4953 = vtanh.f32 %v2400_v3  ;;  %v2408_v25 = vmul.f32 0.5, %v1863_v60  ;;  %v1865_v43 = vadd.f32 %v6274_v4, %v6085_v17 }
 0x211   : > { %v4940_v49 = vpop.eup %4939  ;;  %3947 = vst [vmem:[%s6124_s14 + $0x13c] sm:$0xff] %v4416_v55  ;;  %v2834_v62 = vadd.f32 1.0, %v4938_v28  ;;  %4955 = vtanh.f32 %v2402_v58  ;;  %v2407_v19 = vmul.f32 0.5, %v1672_v35  ;;  %v1676_v42 = vadd.f32 %v6276_v2, %v6077_v34  ;;  %v6358_v7 = vpop.f32.mrf.mxu1 }
 0x212   : > { %v6360_v8 = vpop.f32.mrf.mxu0  ;;  %v3059_v6 = vmul.f32 0.5, %v2835_v12  ;;  %v2836_v40 = vadd.f32 1.0, %v4940_v49  ;;  %4957 = vtanh.f32 %v2406_v24  ;;  %v2409_v26 = vmul.f32 0.5, %v1865_v43 }
 0x213   : > { %v4942_v30 = vpop.eup %4941  ;;  %v3058_v18 = vmul.f32 0.5, %v2834_v62  ;;  %4959 = vtanh.f32 %v2408_v25  ;;  %v2413_v4 = vmul.f32 0.5, %v1676_v42  ;;  %v1869_v32 = vadd.f32 %v6278_v23, %v6079_v44  ;;  %v6364_v48 = vpop.f32.mrf.mxu1 }
 0x214   : > { %v6366_v5 = vpop.f32.mrf.mxu0  ;;  %v4944_v2 = vpop.eup %4943  ;;  %v3060_v14 = vmul.f32 0.5, %v2836_v40  ;;  %v2840_v63 = vadd.f32 1.0, %v4942_v30  ;;  %4961 = vtanh.f32 %v2407_v19  ;;  %v1678_v31 = vadd.f32 %v6288_v50, %v6083_v13 }
 0x215   : > { %v4419_v10 = vpack.c.bf16 %v3058_v18, %v3057_v52  ;;  %v2842_v0 = vadd.f32 1.0, %v4944_v2  ;;  %4963 = vtanh.f32 %v2409_v26  ;;  %v2415_v33 = vmul.f32 0.5, %v1869_v32  ;;  %v6370_v41 = vpop.f32.mrf.mxu1 }
 0x216   : > { %v6372_v23 = vpop.f32.mrf.mxu0  ;;  %v4420_v15 = vpack.c.bf16 %v3060_v14, %v3059_v6  ;;  %v3064_v61 = vmul.f32 0.5, %v2840_v63  ;;  %4965 = vtanh.f32 %v2413_v4  ;;  %v2414_v56 = vmul.f32 0.5, %v1678_v31 }
 0x217   : > { %v4946_v57 = vpop.eup %4945  ;;  %3950 = vst [vmem:[%s6124_s14 + $0x150] sm:$0xff] %v4419_v10  ;;  %v3066_v1 = vmul.f32 0.5, %v2842_v0  ;;  %4967 = vtanh.f32 %v2415_v33  ;;  %v1871_v50 = vadd.f32 %v6290_v22, %v6085_v17  ;;  %v1680_v52 = vadd.f32 %v6292_v20, %v6077_v34  ;;  %v6379_v3 = vpop.f32.mrf.mxu1 }
 0x218   : > { %v6381_v58 = vpop.f32.mrf.mxu0  ;;  %v4948_v60 = vpop.eup %4947  ;;  %3951 = vst [vmem:[%s6124_s14 + $0x158] sm:$0xff] %v4420_v15  ;;  %v2841_v16 = vadd.f32 1.0, %v4946_v57  ;;  %4969 = vtanh.f32 %v2414_v56  ;;  %v1873_v55 = vadd.f32 %v6294_v21, %v6079_v44  ;;  %v1682_v24 = vadd.f32 %v6302_v11, %v6083_v13 }
 0x219   : > { %v4950_v35 = vpop.eup %4949  ;;  %v2843_v28 = vadd.f32 1.0, %v4948_v60  ;;  %v2416_v22 = vmul.f32 0.5, %v1871_v50  ;;  %v2420_v12 = vmul.f32 0.5, %v1680_v52  ;;  %v1875_v20 = vadd.f32 %v6304_v38, %v6085_v17  ;;  %v6390_v25 = vpop.f32.mrf.mxu1 }
 0x21a   : > { %v6392_v43 = vpop.f32.mrf.mxu0  ;;  %v3065_v49 = vmul.f32 0.5, %v2841_v16  ;;  %v2847_v62 = vadd.f32 1.0, %v4950_v35  ;;  %v2422_v19 = vmul.f32 0.5, %v1873_v55  ;;  %v2421_v42 = vmul.f32 0.5, %v1682_v24 }
 0x21b   : > { %v3067_v6 = vmul.f32 0.5, %v2843_v28  ;;  %4971 = vtanh.f32 %v2416_v22  ;;  %v2423_v21 = vmul.f32 0.5, %v1875_v20  ;;  %v1686_v11 = vadd.f32 %v6306_v9, %v6077_v34  ;;  %v6396_v40 = vpop.f32.mrf.mxu1 }
 0x21c   : > { %v6398_v26 = vpop.f32.mrf.mxu0  ;;  %v4952_v38 = vpop.eup %4951  ;;  %v4423_v30 = vpack.c.bf16 %v3065_v49, %v3064_v61  ;;  %v3071_v18 = vmul.f32 0.5, %v2847_v62  ;;  %4973 = vtanh.f32 %v2420_v12  ;;  %v1879_v4 = vadd.f32 %v6308_v37, %v6079_v44 }
 0x21d   : > { %v4954_v32 = vpop.eup %4953  ;;  %v4424_v2 = vpack.c.bf16 %v3067_v6, %v3066_v1  ;;  %v2849_v14 = vadd.f32 1.0, %v4952_v38  ;;  %4975 = vtanh.f32 %v2422_v19  ;;  %v2427_v63 = vmul.f32 0.5, %v1686_v11  ;;  %v6402_v31 = vpop.f32.mrf.mxu1 }
 0x21e   : > { %v6404_v9 = vpop.f32.mrf.mxu0  ;;  %v4956_v10 = vpop.eup %4955  ;;  %3954 = vst [vmem:[%s6124_s14 + $0x16c] sm:$0xff] %v4423_v30  ;;  %v2848_v0 = vadd.f32 1.0, %v4954_v32  ;;  %4977 = vtanh.f32 %v2421_v42  ;;  %v2429_v33 = vmul.f32 0.5, %v1879_v4  ;;  %v1688_v15 = vadd.f32 %v6316_v46, %v6083_v13 }
 0x21f   : > { %v4958_v61 = vpop.eup %4957  ;;  %3955 = vst [vmem:[%s6124_s14 + $0x174] sm:$0xff] %v4424_v2  ;;  %v3073_v37 = vmul.f32 0.5, %v2849_v14  ;;  %v2850_v56 = vadd.f32 1.0, %v4956_v10  ;;  %4979 = vtanh.f32 %v2423_v21  ;;  %v1881_v57 = vadd.f32 %v6318_v47, %v6085_v17  ;;  %v6412_v1 = vpop.f32.mrf.mxu1 }
 0x220   : > { %v6414_v50 = vpop.f32.mrf.mxu0  ;;  %v4960_v52 = vpop.eup %4959  ;;  %v3072_v60 = vmul.f32 0.5, %v2848_v0  ;;  %v2854_v16 = vadd.f32 1.0, %v4958_v61  ;;  %4981 = vtanh.f32 %v2427_v63  ;;  %v2428_v55 = vmul.f32 0.5, %v1688_v15 }
 0x221   : > { %v4962_v24 = vpop.eup %4961  ;;  %v3074_v35 = vmul.f32 0.5, %v2850_v56  ;;  %v2856_v46 = vadd.f32 1.0, %v4960_v52  ;;  %4983 = vtanh.f32 %v2429_v33  ;;  %v2430_v28 = vmul.f32 0.5, %v1881_v57  ;;  %v6416_v22 = vpop.f32.mrf.mxu1 }
 0x222   : > { %v6418_v12 = vpop.f32.mrf.mxu0  ;;  %v4964_v47 = vpop.eup %4963  ;;  %v4427_v20 = vpack.c.bf16 %v3072_v60, %v3071_v18  ;;  %v3078_v49 = vmul.f32 0.5, %v2854_v16  ;;  %v2855_v62 = vadd.f32 1.0, %v4962_v24  ;;  %4985 = vtanh.f32 %v2428_v55 }
 0x223   : > { %v4966_v19 = vpop.eup %4965  ;;  %v4428_v42 = vpack.c.bf16 %v3074_v35, %v3073_v37  ;;  %v3080_v6 = vmul.f32 0.5, %v2856_v46  ;;  %v2857_v21 = vadd.f32 1.0, %v4964_v47  ;;  %4987 = vtanh.f32 %v2430_v28  ;;  %v6420_v11 = vpop.f32.mrf.mxu1 }
 0x224   : > { %v6422_v38 = vpop.f32.mrf.mxu0  ;;  %v4968_v30 = vpop.eup %4967  ;;  %3958 = vst [vmem:[%s6124_s14 + $0x188] sm:$0xff] %v4427_v20  ;;  %v3079_v4 = vmul.f32 0.5, %v2855_v62  ;;  %v2861_v32 = vadd.f32 1.0, %v4966_v19  ;;  %v1690_v18 = vadd.f32 %v6322_v45, %v6077_v34  ;;  %v1883_v2 = vadd.f32 %v6324_v51, %v6079_v44 }
 0x225   : > { %v4970_v14 = vpop.eup %4969  ;;  %3959 = vst [vmem:[%s6124_s14 + $0x190] sm:$0xff] %v4428_v42  ;;  %v3081_v63 = vmul.f32 0.5, %v2857_v21  ;;  %v2863_v10 = vadd.f32 1.0, %v4968_v30  ;;  %v1692_v0 = vadd.f32 %v6329_v54, %v6083_v13  ;;  %v1885_v33 = vadd.f32 %v6331_v53, %v6085_v17  ;;  %v6434_v15 = vpop.f32.mrf.mxu1 }
 0x226   : > { %v6436_v61 = vpop.f32.mrf.mxu0  ;;  %v4431_v37 = vpack.c.bf16 %v3079_v4, %v3078_v49  ;;  %v3085_v45 = vmul.f32 0.5, %v2861_v32  ;;  %v2862_v56 = vadd.f32 1.0, %v4970_v14  ;;  %v2434_v51 = vmul.f32 0.5, %v1690_v18 }
 0x227   : > { %v4432_v57 = vpack.c.bf16 %v3081_v63, %v3080_v6  ;;  %v3087_v52 = vmul.f32 0.5, %v2863_v10  ;;  %v2436_v60 = vmul.f32 0.5, %v1883_v2  ;;  %v2435_v16 = vmul.f32 0.5, %v1692_v0  ;;  %v6438_v55 = vpop.f32.mrf.mxu1 }
 0x228   : > { %v6440_v24 = vpop.f32.mrf.mxu0  ;;  %v4972_v54 = vpop.eup %4971  ;;  %3962 = vst [vmem:[%s6124_s14 + $0x1a4] sm:$0xff] %v4431_v37  ;;  %v3086_v53 = vmul.f32 0.5, %v2862_v56  ;;  %4989 = vtanh.f32 %v2434_v51  ;;  %v2437_v35 = vmul.f32 0.5, %v1885_v33  ;;  %v1696_v46 = vadd.f32 %v6340_v29, %v6077_v34 }
 0x229   : > { %v4974_v28 = vpop.eup %4973  ;;  %3963 = vst [vmem:[%s6124_s14 + $0x1ac] sm:$0xff] %v4432_v57  ;;  %v2864_v47 = vadd.f32 1.0, %v4972_v54  ;;  %4991 = vtanh.f32 %v2436_v60  ;;  %v1889_v20 = vadd.f32 %v6342_v39, %v6079_v44  ;;  %v1698_v49 = vadd.f32 %v6349_v59, %v6083_v13  ;;  %v6450_v62 = vpop.f32.mrf.mxu1 }
 0x22a   : > { %v6452_v19 = vpop.f32.mrf.mxu0  ;;  %v4976_v42 = vpop.eup %4975  ;;  %v4435_v6 = vpack.c.bf16 %v3086_v53, %v3085_v45  ;;  %v2868_v21 = vadd.f32 1.0, %v4974_v28  ;;  %4993 = vtanh.f32 %v2435_v16  ;;  %v2441_v29 = vmul.f32 0.5, %v1696_v46 }
 0x22b   : > { %v4978_v30 = vpop.eup %4977  ;;  %v3088_v4 = vmul.f32 0.5, %v2864_v47  ;;  %v2870_v32 = vadd.f32 1.0, %v4976_v42  ;;  %4995 = vtanh.f32 %v2437_v35  ;;  %v2443_v18 = vmul.f32 0.5, %v1889_v20  ;;  %v6454_v2 = vpop.f32.mrf.mxu1 }
 0x22c   : > { %v6456_v39 = vpop.f32.mrf.mxu0  ;;  %v4980_v59 = vpop.eup %4979  ;;  %3966 = vst [vmem:[%s6124_s14 + $0x1c0] sm:$0xff] %v4435_v6  ;;  %v3092_v14 = vmul.f32 0.5, %v2868_v21  ;;  %v2869_v63 = vadd.f32 1.0, %v4978_v30  ;;  %4997 = vtanh.f32 %v2441_v29  ;;  %v2442_v10 = vmul.f32 0.5, %v1698_v49 }
 0x22d   : > { %v4982_v0 = vpop.eup %4981  ;;  %v4436_v33 = vpack.c.bf16 %v3088_v4, %v3087_v52  ;;  %v3094_v37 = vmul.f32 0.5, %v2870_v32  ;;  %v2871_v45 = vadd.f32 1.0, %v4980_v59  ;;  %4999 = vtanh.f32 %v2443_v18  ;;  %v6459_v56 = vpop.f32.mrf.mxu1 }
 0x22e   : > { %v6461_v51 = vpop.f32.mrf.mxu0  ;;  %v4984_v57 = vpop.eup %4983  ;;  %v3093_v60 = vmul.f32 0.5, %v2869_v63  ;;  %v2875_v16 = vadd.f32 1.0, %v4982_v0  ;;  %5001 = vtanh.f32 %v2442_v10  ;;  %v1891_v54 = vadd.f32 %v6351_v27, %v6085_v17 }
 0x22f   : > { %v4986_v53 = vpop.eup %4985  ;;  %3967 = vst [vmem:[%s6124_s14 + $0x1c8] sm:$0xff] %v4436_v33  ;;  %v3095_v35 = vmul.f32 0.5, %v2871_v45  ;;  %v2877_v46 = vadd.f32 1.0, %v4984_v57  ;;  %v1700_v52 = vadd.f32 %v6358_v7, %v6077_v34  ;;  %v1893_v28 = vadd.f32 %v6360_v8, %v6079_v44  ;;  %v6470_v47 = vpop.f32.mrf.mxu1 }
 0x230   : > { %v6472_v20 = vpop.f32.mrf.mxu0  ;;  %v4988_v49 = vpop.eup %4987  ;;  %v4439_v42 = vpack.c.bf16 %v3093_v60, %v3092_v14  ;;  %v3099_v6 = vmul.f32 0.5, %v2875_v16  ;;  %v2876_v27 = vadd.f32 1.0, %v4986_v53  ;;  %v2444_v21 = vmul.f32 0.5, %v1891_v54 }
 0x231   : > { %v4440_v29 = vpack.c.bf16 %v3095_v35, %v3094_v37  ;;  %v3101_v30 = vmul.f32 0.5, %v2877_v46  ;;  %v2878_v4 = vadd.f32 1.0, %v4988_v49  ;;  %v2448_v32 = vmul.f32 0.5, %v1700_v52  ;;  %v6474_v18 = vpop.f32.mrf.mxu1 }
 0x232   : > { %v6476_v7 = vpop.f32.mrf.mxu0  ;;  %3970 = vst [vmem:[%s6124_s14 + $0x1dc] sm:$0xff] %v4439_v42  ;;  %v3100_v8 = vmul.f32 0.5, %v2876_v27  ;;  %5003 = vtanh.f32 %v2444_v21  ;;  %v2450_v59 = vmul.f32 0.5, %v1893_v28  ;;  %v1702_v63 = vadd.f32 %v6364_v48, %v6083_v13 }
 0x233   : > { %3971 = vst [vmem:[%s6124_s14 + $0x1e4] sm:$0xff] %v4440_v29  ;;  %v3102_v14 = vmul.f32 0.5, %v2878_v4  ;;  %5005 = vtanh.f32 %v2448_v32  ;;  %v1895_v10 = vadd.f32 %v6366_v5, %v6085_v17  ;;  %v1706_v0 = vadd.f32 %v6370_v41, %v6077_v34  ;;  %v6486_v33 = vpop.f32.mrf.mxu1 }
 0x234   : > { %v6488_v37 = vpop.f32.mrf.mxu0  ;;  %v4443_v45 = vpack.c.bf16 %v3100_v8, %v3099_v6  ;;  %5007 = vtanh.f32 %v2450_v59  ;;  %v2449_v57 = vmul.f32 0.5, %v1702_v63  ;;  %v1899_v48 = vadd.f32 %v6372_v23, %v6079_v44 }
 0x235   : > { %v4990_v60 = vpop.eup %4989  ;;  %v4444_v16 = vpack.c.bf16 %v3102_v14, %v3101_v30  ;;  %v2451_v54 = vmul.f32 0.5, %v1895_v10  ;;  %v2455_v53 = vmul.f32 0.5, %v1706_v0  ;;  %v1708_v5 = vadd.f32 %v6379_v3, %v6083_v13  ;;  %v6494_v35 = vpop.f32.mrf.mxu1 }
 0x236   : > { %v6496_v41 = vpop.f32.mrf.mxu0  ;;  %v4992_v46 = vpop.eup %4991  ;;  %3974 = vst [vmem:[%s6124_s14 + $0x1f8] sm:$0xff] %v4443_v45  ;;  %v2882_v52 = vadd.f32 1.0, %v4990_v60  ;;  %5009 = vtanh.f32 %v2449_v57  ;;  %v2457_v28 = vmul.f32 0.5, %v1899_v48  ;;  %v1901_v49 = vadd.f32 %v6381_v58, %v6085_v17 }
 0x237   : > { %v4994_v23 = vpop.eup %4993  ;;  %3975 = vst [vmem:[%s6124_s14 + $0x200] sm:$0xff] %v4444_v16  ;;  %v2884_v42 = vadd.f32 1.0, %v4992_v46  ;;  %5011 = vtanh.f32 %v2451_v54  ;;  %v2456_v6 = vmul.f32 0.5, %v1708_v5  ;;  %v1710_v3 = vadd.f32 %v6390_v25, %v6077_v34  ;;  %v6504_v27 = vpop.f32.mrf.mxu1 }
 0x238   : > { %v6506_v21 = vpop.f32.mrf.mxu0  ;;  %v4996_v29 = vpop.eup %4995  ;;  %v3106_v30 = vmul.f32 0.5, %v2882_v52  ;;  %v2883_v4 = vadd.f32 1.0, %v4994_v23  ;;  %5013 = vtanh.f32 %v2455_v53  ;;  %v2458_v32 = vmul.f32 0.5, %v1901_v49 }
 0x239   : > { %v4998_v8 = vpop.eup %4997  ;;  %v3108_v59 = vmul.f32 0.5, %v2884_v42  ;;  %v2885_v58 = vadd.f32 1.0, %v4996_v29  ;;  %5015 = vtanh.f32 %v2457_v28  ;;  %v2462_v63 = vmul.f32 0.5, %v1710_v3  ;;  %v6508_v14 = vpop.f32.mrf.mxu1 }
 0x23a   : > { %v6510_v10 = vpop.f32.mrf.mxu0  ;;  %v5000_v0 = vpop.eup %4999  ;;  %v3107_v25 = vmul.f32 0.5, %v2883_v4  ;;  %v2889_v45 = vadd.f32 1.0, %v4998_v8  ;;  %5017 = vtanh.f32 %v2456_v6  ;;  %v1903_v57 = vadd.f32 %v6392_v43, %v6079_v44 }
 0x23b   : > { %v5002_v48 = vpop.eup %5001  ;;  %v3109_v60 = vmul.f32 0.5, %v2885_v58  ;;  %v2891_v16 = vadd.f32 1.0, %v5000_v0  ;;  %5019 = vtanh.f32 %v2458_v32  ;;  %v1712_v54 = vadd.f32 %v6396_v40, %v6083_v13  ;;  %v6516_v53 = vpop.f32.mrf.mxu1 }
 0x23c   : > { %v6518_v5 = vpop.f32.mrf.mxu0  ;;  %v4447_v46 = vpack.c.bf16 %v3107_v25, %v3106_v30  ;;  %v3113_v52 = vmul.f32 0.5, %v2889_v45  ;;  %v2890_v28 = vadd.f32 1.0, %v5002_v48  ;;  %5021 = vtanh.f32 %v2462_v63 }
 0x23d   : > { %v4448_v49 = vpack.c.bf16 %v3109_v60, %v3108_v59  ;;  %v3115_v23 = vmul.f32 0.5, %v2891_v16  ;;  %v2464_v43 = vmul.f32 0.5, %v1903_v57  ;;  %v2463_v42 = vmul.f32 0.5, %v1712_v54  ;;  %v6520_v6 = vpop.f32.mrf.mxu1 }
 0x23e   : > { %v6522_v3 = vpop.f32.mrf.mxu0  ;;  %3978 = vst [vmem:[%s6124_s14 + $0x214] sm:$0xff] %v4447_v46  ;;  %v3114_v29 = vmul.f32 0.5, %v2890_v28  ;;  %v1905_v40 = vadd.f32 %v6398_v26, %v6085_v17  ;;  %v1716_v30 = vadd.f32 %v6402_v31, %v6077_v34  ;;  %v1909_v4 = vadd.f32 %v6404_v9, %v6079_v44 }
 0x23f   : > { %v5004_v32 = vpop.eup %5003  ;;  %3979 = vst [vmem:[%s6124_s14 + $0x21c] sm:$0xff] %v4448_v49  ;;  %5023 = vtanh.f32 %v2464_v43  ;;  %v1718_v8 = vadd.f32 %v6412_v1, %v6083_v13  ;;  %v1911_v59 = vadd.f32 %v6414_v50, %v6085_v17  ;;  %v1720_v58 = vadd.f32 %v6416_v22, %v6077_v34  ;;  %v6538_v26 = vpop.f32.mrf.mxu1 }
 0x240   : > { %v6540_v63 = vpop.f32.mrf.mxu0  ;;  %v5006_v31 = vpop.eup %5005  ;;  %v4451_v0 = vpack.c.bf16 %v3114_v29, %v3113_v52  ;;  %v2892_v9 = vadd.f32 1.0, %v5004_v32  ;;  %5025 = vtanh.f32 %v2463_v42  ;;  %v2465_v25 = vmul.f32 0.5, %v1905_v40 }
 0x241   : > { %v5008_v45 = vpop.eup %5007  ;;  %v2896_v57 = vadd.f32 1.0, %v5006_v31  ;;  %v2469_v48 = vmul.f32 0.5, %v1716_v30  ;;  %v2471_v1 = vmul.f32 0.5, %v1909_v4  ;;  %v2470_v60 = vmul.f32 0.5, %v1718_v8  ;;  %v6542_v16 = vpop.f32.mrf.mxu1 }
 0x242   : > { %v6544_v50 = vpop.f32.mrf.mxu0  ;;  %3982 = vst [vmem:[%s6124_s14 + $0x230] sm:$0xff] %v4451_v0  ;;  %v3116_v22 = vmul.f32 0.5, %v2892_v9  ;;  %v2898_v54 = vadd.f32 1.0, %v5008_v45  ;;  %5027 = vtanh.f32 %v2465_v25  ;;  %v2472_v46 = vmul.f32 0.5, %v1911_v59 }
 0x243   : > { %v5010_v28 = vpop.eup %5009  ;;  %v3120_v49 = vmul.f32 0.5, %v2896_v57  ;;  %5029 = vtanh.f32 %v2469_v48  ;;  %v2476_v52 = vmul.f32 0.5, %v1720_v58  ;;  %v1913_v43 = vadd.f32 %v6418_v12, %v6079_v44  ;;  %v6549_v42 = vpop.f32.mrf.mxu1 }
 0x244   : > { %v6551_v29 = vpop.f32.mrf.mxu0  ;;  %v5012_v40 = vpop.eup %5011  ;;  %v4452_v30 = vpack.c.bf16 %v3116_v22, %v3115_v23  ;;  %v3122_v4 = vmul.f32 0.5, %v2898_v54  ;;  %v2897_v32 = vadd.f32 1.0, %v5010_v28  ;;  %5031 = vtanh.f32 %v2471_v1 }
 0x245   : > { %v5014_v8 = vpop.eup %5013  ;;  %v2899_v31 = vadd.f32 1.0, %v5012_v40  ;;  %5033 = vtanh.f32 %v2470_v60  ;;  %v2478_v59 = vmul.f32 0.5, %v1913_v43  ;;  %v1722_v58 = vadd.f32 %v6420_v11, %v6083_v13  ;;  %v6555_v0 = vpop.f32.mrf.mxu1 }
 0x246   : > { %v6557_v12 = vpop.f32.mrf.mxu0  ;;  %v5016_v9 = vpop.eup %5015  ;;  %3983 = vst [vmem:[%s6124_s14 + $0x238] sm:$0xff] %v4452_v30  ;;  %v3121_v25 = vmul.f32 0.5, %v2897_v32  ;;  %v2903_v45 = vadd.f32 1.0, %v5014_v8  ;;  %5035 = vtanh.f32 %v2472_v46  ;;  %v1915_v23 = vadd.f32 %v6422_v38, %v6085_v17 }
 0x247   : > { %v5018_v57 = vpop.eup %5017  ;;  %v3123_v48 = vmul.f32 0.5, %v2899_v31  ;;  %v2905_v1 = vadd.f32 1.0, %v5016_v9  ;;  %5037 = vtanh.f32 %v2476_v52  ;;  %v2477_v60 = vmul.f32 0.5, %v1722_v58  ;;  %v6562_v22 = vpop.f32.mrf.mxu1 }
 0x248   : > { %v6564_v11 = vpop.f32.mrf.mxu0  ;;  %v5020_v54 = vpop.eup %5019  ;;  %v4455_v28 = vpack.c.bf16 %v3121_v25, %v3120_v49  ;;  %v3127_v43 = vmul.f32 0.5, %v2903_v45  ;;  %v2904_v40 = vadd.f32 1.0, %v5018_v57  ;;  %5039 = vtanh.f32 %v2478_v59 }
 0x249   : > { %v5022_v46 = vpop.eup %5021  ;;  %v4456_v30 = vpack.c.bf16 %v3123_v48, %v3122_v4  ;;  %v3129_v32 = vmul.f32 0.5, %v2905_v1  ;;  %v2906_v38 = vadd.f32 1.0, %v5020_v54  ;;  %5041 = vtanh.f32 %v2477_v60  ;;  %v6566_v8 = vpop.f32.mrf.mxu1 }
 0x24a   : > { %v6568_v52 = vpop.f32.mrf.mxu0  ;;  %3986 = vst [vmem:[%s6124_s14 + $0x24c] sm:$0xff] %v4455_v28  ;;  %v3128_v31 = vmul.f32 0.5, %v2904_v40  ;;  %v2910_v58 = vadd.f32 1.0, %v5022_v46  ;;  %v2479_v9 = vmul.f32 0.5, %v1915_v23  ;;  %v1726_v49 = vadd.f32 %v6434_v15, %v6077_v34 }
 0x24b   : > { %3987 = vst [vmem:[%s6124_s14 + $0x254] sm:$0xff] %v4456_v30  ;;  %v3130_v25 = vmul.f32 0.5, %v2906_v38  ;;  %v1919_v59 = vadd.f32 %v6436_v61, %v6079_v44  ;;  %v1728_v4 = vadd.f32 %v6438_v55, %v6083_v13  ;;  %v1921_v45 = vadd.f32 %v6440_v24, %v6085_v17  ;;  %v6580_v57 = vpop.f32.mrf.mxu1 }
 0x24c   : > { %v6582_v48 = vpop.f32.mrf.mxu0  ;;  %v5024_v23 = vpop.eup %5023  ;;  %v4459_v1 = vpack.c.bf16 %v3128_v31, %v3127_v43  ;;  %v3134_v60 = vmul.f32 0.5, %v2910_v58  ;;  %5043 = vtanh.f32 %v2479_v9  ;;  %v2483_v15 = vmul.f32 0.5, %v1726_v49 }
 0x24d   : > { %v5026_v54 = vpop.eup %5025  ;;  %v4460_v28 = vpack.c.bf16 %v3130_v25, %v3129_v32  ;;  %v2912_v61 = vadd.f32 1.0, %v5024_v23  ;;  %v2485_v40 = vmul.f32 0.5, %v1919_v59  ;;  %v2484_v46 = vmul.f32 0.5, %v1728_v4  ;;  %v6584_v55 = vpop.f32.mrf.mxu1 }
 0x24e   : > { %v6586_v30 = vpop.f32.mrf.mxu0  ;;  %3990 = vst [vmem:[%s6124_s14 + $0x268] sm:$0xff] %v4459_v1  ;;  %v2911_v24 = vadd.f32 1.0, %v5026_v54  ;;  %5045 = vtanh.f32 %v2483_v15  ;;  %v2486_v38 = vmul.f32 0.5, %v1921_v45  ;;  %v1730_v43 = vadd.f32 %v6450_v62, %v6077_v34 }
 0x24f   : > { %7185 = vst [vmem:[#allocation2_spill] sm:$0xff] %v6586_v30  ;;  %v5028_v31 = vpop.eup %5027  ;;  %3991 = vst [vmem:[%s6124_s14 + $0x270] sm:$0xff] %v4460_v28  ;;  %v3136_v58 = vmul.f32 0.5, %v2912_v61  ;;  %5047 = vtanh.f32 %v2485_v40  ;;  %v1923_v32 = vadd.f32 %v6452_v19, %v6079_v44  ;;  %v1732_v9 = vadd.f32 %v6454_v2, %v6083_v13  ;;  %v6596_v49 = vpop.f32.mrf.mxu1 }
 0x250   : > { %v6598_v25 = vpop.f32.mrf.mxu0  ;;  %v5030_v59 = vpop.eup %5029  ;;  %v3135_v4 = vmul.f32 0.5, %v2911_v24  ;;  %v2913_v45 = vadd.f32 1.0, %v5028_v31  ;;  %5049 = vtanh.f32 %v2484_v46  ;;  %v2490_v23 = vmul.f32 0.5, %v1730_v43 }
 0x251   : > { %7186 = vst [vmem:[#allocation3_spill] sm:$0xff] %v6598_v25  ;;  %v5032_v62 = vpop.eup %5031  ;;  %v2917_v1 = vadd.f32 1.0, %v5030_v59  ;;  %5051 = vtanh.f32 %v2486_v38  ;;  %v2492_v15 = vmul.f32 0.5, %v1923_v32  ;;  %v2491_v54 = vmul.f32 0.5, %v1732_v9  ;;  %v6600_v28 = vpop.f32.mrf.mxu1 }
 0x252   : > { %v6602_v19 = vpop.f32.mrf.mxu0  ;;  %v5034_v2 = vpop.eup %5033  ;;  %v4463_v61 = vpack.c.bf16 %v3135_v4, %v3134_v60  ;;  %v3137_v40 = vmul.f32 0.5, %v2913_v45  ;;  %v2919_v30 = vadd.f32 1.0, %v5032_v62  ;;  %5053 = vtanh.f32 %v2490_v23 }
 0x253   : > { %v5036_v25 = vpop.eup %5035  ;;  %v3141_v24 = vmul.f32 0.5, %v2917_v1  ;;  %v2918_v31 = vadd.f32 1.0, %v5034_v2  ;;  %5055 = vtanh.f32 %v2492_v15  ;;  %v1925_v46 = vadd.f32 %v6456_v39, %v6085_v17  ;;  %v6606_v38 = vpop.f32.mrf.mxu1 }
 0x254   : > { %v6608_v43 = vpop.f32.mrf.mxu0  ;;  %v5038_v32 = vpop.eup %5037  ;;  %3994 = vst [vmem:[%s6124_s14 + $0x284] sm:$0xff] %v4463_v61  ;;  %v4464_v9 = vpack.c.bf16 %v3137_v40, %v3136_v58  ;;  %v3143_v59 = vmul.f32 0.5, %v2919_v30  ;;  %v2920_v60 = vadd.f32 1.0, %v5036_v25  ;;  %5057 = vtanh.f32 %v2491_v54 }
 0x255   : > { %7187 = vst [vmem:[#allocation4_spill] sm:$0xff] %v6608_v43  ;;  %v5040_v4 = vpop.eup %5039  ;;  %v3142_v45 = vmul.f32 0.5, %v2918_v31  ;;  %v2924_v23 = vadd.f32 1.0, %v5038_v32  ;;  %v2493_v62 = vmul.f32 0.5, %v1925_v46  ;;  %v1736_v1 = vadd.f32 %v6459_v56, %v6077_v34  ;;  %v6613_v15 = vpop.f32.mrf.mxu1 }
 0x256   : > { %v6615_v39 = vpop.f32.mrf.mxu0  ;;  %v5042_v2 = vpop.eup %5041  ;;  %3995 = vst [vmem:[%s6124_s14 + $0x28c] sm:$0xff] %v4464_v9  ;;  %v3144_v43 = vmul.f32 0.5, %v2920_v60  ;;  %v2926_v61 = vadd.f32 1.0, %v5040_v4  ;;  %v1929_v30 = vadd.f32 %v6461_v51, %v6079_v44  ;;  %v1738_v58 = vadd.f32 %v6470_v47, %v6083_v13 }
 0x257   : > { %7188 = vst [vmem:[#allocation5_spill] sm:$0xff] %v6615_v39  ;;  %v4467_v25 = vpack.c.bf16 %v3142_v45, %v3141_v24  ;;  %v3148_v54 = vmul.f32 0.5, %v2924_v23  ;;  %v2925_v40 = vadd.f32 1.0, %v5042_v2  ;;  %5059 = vtanh.f32 %v2493_v62  ;;  %v6622_v56 = vpop.f32.mrf.mxu1 }
 0x258   : > { %v6624_v31 = vpop.f32.mrf.mxu0  ;;  %v4468_v46 = vpack.c.bf16 %v3144_v43, %v3143_v59  ;;  %v3150_v32 = vmul.f32 0.5, %v2926_v61  ;;  %v2497_v9 = vmul.f32 0.5, %v1736_v1  ;;  %v2499_v60 = vmul.f32 0.5, %v1929_v30 }
 0x259   : > { %v5044_v4 = vpop.eup %5043  ;;  %3998 = vst [vmem:[%s6124_s14 + $0x2a0] sm:$0xff] %v4467_v25  ;;  %v3149_v39 = vmul.f32 0.5, %v2925_v40  ;;  %v2498_v51 = vmul.f32 0.5, %v1738_v58  ;;  %v1931_v47 = vadd.f32 %v6472_v20, %v6085_v17  ;;  %v1740_v24 = vadd.f32 %v6474_v18, %v6077_v34  ;;  %v6631_v45 = vpop.f32.mrf.mxu1 }
 0x25a   : > { %v6633_v23 = vpop.f32.mrf.mxu0  ;;  %3999 = vst [vmem:[%s6124_s14 + $0x2a8] sm:$0xff] %v4468_v46  ;;  %v2927_v62 = vadd.f32 1.0, %v5044_v4  ;;  %5061 = vtanh.f32 %v2497_v9  ;;  %v1933_v43 = vadd.f32 %v6476_v7, %v6079_v44  ;;  %v1742_v59 = vadd.f32 %v6486_v33, %v6083_v13 }
 0x25b   : > { %v5046_v1 = vpop.eup %5045  ;;  %v4471_v2 = vpack.c.bf16 %v3149_v39, %v3148_v54  ;;  %5063 = vtanh.f32 %v2499_v60  ;;  %v2500_v20 = vmul.f32 0.5, %v1931_v47  ;;  %v2504_v61 = vmul.f32 0.5, %v1740_v24  ;;  %v6640_v18 = vpop.f32.mrf.mxu1 }
 0x25c   : > { %v6642_v30 = vpop.f32.mrf.mxu0  ;;  %v5048_v58 = vpop.eup %5047  ;;  %v3151_v25 = vmul.f32 0.5, %v2927_v62  ;;  %v2931_v40 = vadd.f32 1.0, %v5046_v1  ;;  %5065 = vtanh.f32 %v2498_v51  ;;  %v2506_v46 = vmul.f32 0.5, %v1933_v43 }
 0x25d   : > { %v5050_v9 = vpop.eup %5049  ;;  %4002 = vst [vmem:[%s6124_s14 + $0x2bc] sm:$0xff] %v4471_v2  ;;  %v2933_v7 = vadd.f32 1.0, %v5048_v58  ;;  %5067 = vtanh.f32 %v2500_v20  ;;  %v2505_v4 = vmul.f32 0.5, %v1742_v59  ;;  %v1935_v33 = vadd.f32 %v6488_v37, %v6085_v17  ;;  %v6647_v39 = vpop.f32.mrf.mxu1 }
 0x25e   : > { %7189 = vst [vmem:[#allocation6_spill] sm:$0xff] %v6647_v39  ;;  %v6649_v54 = vpop.f32.mrf.mxu0  ;;  %v5052_v60 = vpop.eup %5051  ;;  %v4472_v47 = vpack.c.bf16 %v3151_v25, %v3150_v32  ;;  %v3155_v24 = vmul.f32 0.5, %v2931_v40  ;;  %v2932_v62 = vadd.f32 1.0, %v5050_v9  ;;  %5069 = vtanh.f32 %v2504_v61 }
 0x25f   : > { %v5054_v51 = vpop.eup %5053  ;;  %v3157_v43 = vmul.f32 0.5, %v2933_v7  ;;  %v2934_v1 = vadd.f32 1.0, %v5052_v60  ;;  %5071 = vtanh.f32 %v2506_v46  ;;  %v2507_v2 = vmul.f32 0.5, %v1935_v33  ;;  %v6651_v20 = vpop.f32.mrf.mxu1 }
 0x260   : > { %v6653_v59 = vpop.f32.mrf.mxu0  ;;  %v5056_v37 = vpop.eup %5055  ;;  %4003 = vst [vmem:[%s6124_s14 + $0x2c4] sm:$0xff] %v4472_v47  ;;  %v3156_v58 = vmul.f32 0.5, %v2932_v62  ;;  %v2938_v39 = vadd.f32 1.0, %v5054_v51  ;;  %5073 = vtanh.f32 %v2505_v4  ;;  %v1746_v32 = vadd.f32 %v6494_v35, %v6077_v34 }
 0x261   : > { %v5058_v25 = vpop.eup %5057  ;;  %v3158_v40 = vmul.f32 0.5, %v2934_v1  ;;  %v2940_v61 = vadd.f32 1.0, %v5056_v37  ;;  %5075 = vtanh.f32 %v2507_v2  ;;  %v1939_v46 = vadd.f32 %v6496_v41, %v6079_v44  ;;  %v6660_v9 = vpop.f32.mrf.mxu1 }
 0x262   : > { %7190 = vst [vmem:[#allocation7_spill] sm:$0xff] %v6660_v9  ;;  %v6662_v7 = vpop.f32.mrf.mxu0  ;;  %v4475_v33 = vpack.c.bf16 %v3156_v58, %v3155_v24  ;;  %v3162_v60 = vmul.f32 0.5, %v2938_v39  ;;  %v2939_v47 = vadd.f32 1.0, %v5058_v25  ;;  %v2511_v4 = vmul.f32 0.5, %v1746_v32 }
 0x263   : > { %v4476_v62 = vpack.c.bf16 %v3158_v40, %v3157_v43  ;;  %v3164_v51 = vmul.f32 0.5, %v2940_v61  ;;  %v2513_v35 = vmul.f32 0.5, %v1939_v46  ;;  %v1748_v1 = vadd.f32 %v6504_v27, %v6083_v13  ;;  %v6666_v37 = vpop.f32.mrf.mxu1 }
 0x264   : > { %v6668_v2 = vpop.f32.mrf.mxu0  ;;  %v5060_v41 = vpop.eup %5059  ;;  %4006 = vst [vmem:[%s6124_s14 + $0x2d8] sm:$0xff] %v4475_v33  ;;  %v3163_v9 = vmul.f32 0.5, %v2939_v47  ;;  %5077 = vtanh.f32 %v2511_v4  ;;  %v1941_v24 = vadd.f32 %v6506_v21, %v6085_v17  ;;  %v1750_v39 = vadd.f32 %v6508_v14, %v6077_v34 }
 0x265   : > { %4007 = vst [vmem:[%s6124_s14 + $0x2e0] sm:$0xff] %v4476_v62  ;;  %v2941_v43 = vadd.f32 1.0, %v5060_v41  ;;  %5079 = vtanh.f32 %v2513_v35  ;;  %v2512_v58 = vmul.f32 0.5, %v1748_v1  ;;  %v1943_v27 = vadd.f32 %v6510_v10, %v6079_v44  ;;  %v6678_v32 = vpop.f32.mrf.mxu1 }
 0x266   : > { %v6680_v25 = vpop.f32.mrf.mxu0  ;;  %v4479_v40 = vpack.c.bf16 %v3163_v9, %v3162_v60  ;;  %v2514_v61 = vmul.f32 0.5, %v1941_v24  ;;  %v2518_v46 = vmul.f32 0.5, %v1750_v39  ;;  %v1752_v21 = vadd.f32 %v6516_v53, %v6083_v13 }
 0x267   : > { %v5062_v33 = vpop.eup %5061  ;;  %v3165_v34 = vmul.f32 0.5, %v2941_v43  ;;  %5081 = vtanh.f32 %v2512_v58  ;;  %v2520_v14 = vmul.f32 0.5, %v1943_v27  ;;  %v1945_v47 = vadd.f32 %v6518_v5, %v6085_v17  ;;  %v6686_v4 = vpop.f32.mrf.mxu1  ;;  %v5285_v43 = vld [vmem:[%s7183_s4] sm:$0x7f] }
 0x268   : > { %v6688_v44 = vpop.f32.mrf.mxu0  ;;  %v5064_v10 = vpop.eup %5063  ;;  %4010 = vst [vmem:[%s6124_s14 + $0x2f4] sm:$0xff] %v4479_v40  ;;  %v2945_v62 = vadd.f32 1.0, %v5062_v33  ;;  %5083 = vtanh.f32 %v2514_v61  ;;  %v2519_v9 = vmul.f32 0.5, %v1752_v21  ;;  %v968_v60 = vsub.s32 4, %v5619_v36 }
 0x269   : > { %v5066_v13 = vpop.eup %5065  ;;  %v4480_v53 = vpack.c.bf16 %v3165_v34, %v3164_v51  ;;  %v2947_v35 = vadd.f32 1.0, %v5064_v10  ;;  %5085 = vtanh.f32 %v2518_v46  ;;  %v2521_v1 = vmul.f32 0.5, %v1945_v47  ;;  %v6692_v41 = vpop.f32.mrf.mxu1 }
 0x26a   : > { %v6694_v17 = vpop.f32.mrf.mxu0  ;;  %v5068_v5 = vpop.eup %5067  ;;  %v3169_v24 = vmul.f32 0.5, %v2945_v62  ;;  %v2946_v39 = vadd.f32 1.0, %v5066_v13  ;;  %5087 = vtanh.f32 %v2520_v14  ;;  %v6699_v58 = vrot.slane %v5285_v43, %v968_v60 }
 0x26b   : > { %7191 = vst [vmem:[#allocation8_spill] sm:$0xff] %v6694_v17  ;;  %v5070_v27 = vpop.eup %5069  ;;  %4011 = vst [vmem:[%s6124_s14 + $0x2fc] sm:$0xff] %v4480_v53  ;;  %v3171_v51 = vmul.f32 0.5, %v2947_v35  ;;  %v2948_v40 = vadd.f32 1.0, %v5068_v5  ;;  %5089 = vtanh.f32 %v2519_v9  ;;  %v972_v61 = vsub.s32 5, %v5619_v36  ;;  %v6703_v46 = vpop.f32.mrf.mxu1 }
 0x26c   : > { %v6705_v21 = vpop.f32.mrf.mxu0  ;;  %v5072_v33 = vpop.eup %5071  ;;  %v3170_v34 = vmul.f32 0.5, %v2946_v39  ;;  %v2952_v14 = vadd.f32 1.0, %v5070_v27  ;;  %5091 = vtanh.f32 %v2521_v1  ;;  %v1982_v47 = vadd.f32 %v6520_v6, %v6699_v58 }
 0x26d   : > { %7192 = vst [vmem:[#allocation9_spill] sm:$0xff] %v6705_v21  ;;  %v5074_v10 = vpop.eup %5073  ;;  %v3172_v62 = vmul.f32 0.5, %v2948_v40  ;;  %v2954_v60 = vadd.f32 1.0, %v5072_v33  ;;  %v6709_v13 = vrot.slane %v5285_v43, %v972_v61  ;;  %v976_v9 = vsub.s32 6, %v5619_v36  ;;  %v6712_v53 = vpop.f32.mrf.mxu1 }
 0x26e   : > { %7193 = vst [vmem:[#allocation10_spill] sm:$0xff] %v6712_v53  ;;  %v6714_v35 = vpop.f32.mrf.mxu0  ;;  %v5076_v5 = vpop.eup %5075  ;;  %v4483_v39 = vpack.c.bf16 %v3170_v34, %v3169_v24  ;;  %v2953_v27 = vadd.f32 1.0, %v5074_v10  ;;  %v2305_v1 = vmul.f32 0.5, %v1982_v47  ;;  %v3176_v17 = vmul.f32 0.5, %v2952_v14 }
 0x26f   : > { %v4484_v21 = vpack.c.bf16 %v3172_v62, %v3171_v51  ;;  %v2955_v6 = vadd.f32 1.0, %v5076_v5  ;;  %v1984_v40 = vadd.f32 %v6538_v26, %v6709_v13  ;;  %v6718_v33 = vpop.f32.mrf.mxu1  ;;  %v6723_v53 = vrot.slane %v5285_v43, %v976_v9 }
 0x270   : > { %v6720_v61 = vpop.f32.mrf.mxu0  ;;  %4014 = vst [vmem:[%s6124_s14 + $0x310] sm:$0xff] %v4483_v39  ;;  %v3177_v36 = vmul.f32 0.5, %v2953_v27  ;;  %5093 = vtanh.f32 %v2305_v1  ;;  %v4517_v24 = vadd.f32 %v6540_v63, %v6522_v3  ;;  %v3178_v51 = vmul.f32 0.5, %v2954_v60 }
 0x271   : > { %v5078_v34 = vpop.eup %5077  ;;  %4015 = vst [vmem:[%s6124_s14 + $0x318] sm:$0xff] %v4484_v21  ;;  %v3179_v14 = vmul.f32 0.5, %v2955_v6  ;;  %v2306_v47 = vmul.f32 0.5, %v1984_v40  ;;  %v1986_v26 = vadd.f32 %v6542_v16, %v6699_v58  ;;  %v6730_v10 = vpop.f32.mrf.mxu1  ;;  %v1988_v3 = vadd.f32 %v6549_v42, %v6709_v13 }
 0x272   : > { %v6732_v62 = vpop.f32.mrf.mxu0  ;;  %v5080_v5 = vpop.eup %5079  ;;  %v4487_v39 = vpack.c.bf16 %v3177_v36, %v3176_v17  ;;  %v2959_v43 = vadd.f32 1.0, %v5078_v34  ;;  %v2175_v9 = vadd.f32 %v4517_v24, %v6723_v53  ;;  %v4520_v36 = vadd.f32 %v6551_v29, %v6544_v50 }
 0x273   : > { %v4488_v63 = vpack.c.bf16 %v3179_v14, %v3178_v51  ;;  %v2961_v21 = vadd.f32 1.0, %v5080_v5  ;;  %5095 = vtanh.f32 %v2306_v47  ;;  %v2312_v60 = vmul.f32 0.5, %v1986_v26  ;;  %v6737_v27 = vpop.f32.mrf.mxu1 }
 0x274   : > { %v6739_v16 = vpop.f32.mrf.mxu0  ;;  %v5082_v1 = vpop.eup %5081  ;;  %4018 = vst [vmem:[%s6124_s14 + $0x32c] sm:$0xff] %v4487_v39  ;;  %v3183_v6 = vmul.f32 0.5, %v2959_v43  ;;  %v2307_v40 = vmul.f32 0.5, %v2175_v9  ;;  %v2313_v17 = vmul.f32 0.5, %v1988_v3  ;;  %v1992_v51 = vadd.f32 %v6555_v0, %v6699_v58 }
 0x275   : > { %v5084_v24 = vpop.eup %5083  ;;  %4019 = vst [vmem:[%s6124_s14 + $0x334] sm:$0xff] %v4488_v63  ;;  %v3185_v34 = vmul.f32 0.5, %v2961_v21  ;;  %v2960_v42 = vadd.f32 1.0, %v5082_v1  ;;  %5097 = vtanh.f32 %v2312_v60  ;;  %v6747_v14 = vpop.f32.mrf.mxu1  ;;  %v2178_v39 = vadd.f32 %v4520_v36, %v6723_v53 }
 0x276   : > { %7194 = vst [vmem:[#allocation11_spill] sm:$0xff] %v6747_v14  ;;  %v6749_v47 = vpop.f32.mrf.mxu0  ;;  %v5086_v26 = vpop.eup %5085  ;;  %v2962_v5 = vadd.f32 1.0, %v5084_v24  ;;  %5099 = vtanh.f32 %v2307_v40  ;;  %v1994_v50 = vadd.f32 %v6562_v22, %v6709_v13  ;;  %v2319_v3 = vmul.f32 0.5, %v1992_v51 }
 0x277   : > { %7195 = vst [vmem:[#allocation12_spill] sm:$0xff] %v6749_v47  ;;  %v5088_v29 = vpop.eup %5087  ;;  %v3184_v43 = vmul.f32 0.5, %v2960_v42  ;;  %v2966_v9 = vadd.f32 1.0, %v5086_v26  ;;  %5101 = vtanh.f32 %v2313_v17  ;;  %v6754_v63 = vpop.f32.mrf.mxu1  ;;  %v2314_v24 = vmul.f32 0.5, %v2178_v39 }
 0x278   : > { %7196 = vst [vmem:[#allocation13_spill] sm:$0xff] %v6754_v63  ;;  %v6756_v0 = vpop.f32.mrf.mxu0  ;;  %v5090_v21 = vpop.eup %5089  ;;  %v3186_v60 = vmul.f32 0.5, %v2962_v5  ;;  %v2968_v1 = vadd.f32 1.0, %v5088_v29  ;;  %v2320_v40 = vmul.f32 0.5, %v1994_v50  ;;  %5103 = vtanh.f32 %v2319_v3 }
 0x279   : > { %7197 = vst [vmem:[#allocation14_spill] sm:$0xff] %v6756_v0  ;;  %v5092_v47 = vpop.eup %5091  ;;  %v4491_v36 = vpack.c.bf16 %v3184_v43, %v3183_v6  ;;  %v3190_v14 = vmul.f32 0.5, %v2966_v9  ;;  %v2967_v22 = vadd.f32 1.0, %v5090_v21  ;;  %v6758_v42 = vpop.f32.mrf.mxu1  ;;  %5105 = vtanh.f32 %v2314_v24 }
 0x27a   : > { %v6760_v17 = vpop.f32.mrf.mxu0  ;;  %v4492_v51 = vpack.c.bf16 %v3186_v60, %v3185_v34  ;;  %v3192_v26 = vmul.f32 0.5, %v2968_v1  ;;  %v2969_v63 = vadd.f32 1.0, %v5092_v47  ;;  %5107 = vtanh.f32 %v2320_v40 }
 0x27b   : > { %4022 = vst [vmem:[%s6124_s14 + $0x348] sm:$0xff] %v4491_v36  ;;  %v3191_v0 = vmul.f32 0.5, %v2967_v22  ;;  %v4523_v5 = vadd.f32 %v6564_v11, %v6557_v12  ;;  %v1996_v6 = vadd.f32 %v6566_v8, %v6699_v58  ;;  %v6767_v39 = vpop.f32.mrf.mxu1  ;;  %v1998_v34 = vadd.f32 %v6580_v57, %v6709_v13  ;;  %v7198_v22 = vld [vmem:[#allocation2_spill] sm:$0xff] }
 0x27c   : > { %v6769_v50 = vpop.f32.mrf.mxu0  ;;  %4023 = vst [vmem:[%s6124_s14 + $0x350] sm:$0xff] %v4492_v51  ;;  %v3193_v29 = vmul.f32 0.5, %v2969_v63  ;;  %v4526_v47 = vadd.f32 %v6582_v48, %v6568_v52  ;;  %v2002_v43 = vadd.f32 %v6584_v55, %v6699_v58  ;;  %v2004_v3 = vadd.f32 %v6596_v49, %v6709_v13  ;;  %v7199_v51 = vld [vmem:[#allocation3_spill] sm:$0xff] }
 0x27d   : > { %v5094_v12 = vpop.eup %5093  ;;  %v4495_v11 = vpack.c.bf16 %v3191_v0, %v3190_v14  ;;  %v2183_v8 = vadd.f32 %v4523_v5, %v6723_v53  ;;  %v2326_v9 = vmul.f32 0.5, %v1996_v6  ;;  %v6781_v21 = vpop.f32.mrf.mxu1  ;;  %v2327_v1 = vmul.f32 0.5, %v1998_v34 }
 0x27e   : > { %v6783_v63 = vpop.f32.mrf.mxu0  ;;  %v4496_v57 = vpack.c.bf16 %v3193_v29, %v3192_v26  ;;  %v2753_v60 = vadd.f32 1.0, %v5094_v12  ;;  %v2186_v52 = vadd.f32 %v4526_v47, %v6723_v53  ;;  %v2333_v55 = vmul.f32 0.5, %v2002_v43  ;;  %v7200_v12 = vld [vmem:[#allocation4_spill] sm:$0xff] }
 0x27f   : > { %4026 = vst [vmem:[%s6124_s14 + $0x364] sm:$0xff] %v4495_v11  ;;  %v2321_v48 = vmul.f32 0.5, %v2183_v8  ;;  %5109 = vtanh.f32 %v2326_v9  ;;  %v2334_v14 = vmul.f32 0.5, %v2004_v3  ;;  %v6787_v0 = vpop.f32.mrf.mxu1  ;;  %v4529_v26 = vadd.f32 %v7199_v51, %v7198_v22 }
 0x280   : > { %v6789_v24 = vpop.f32.mrf.mxu0  ;;  %v5096_v49 = vpop.eup %5095  ;;  %4027 = vst [vmem:[%s6124_s14 + $0x36c] sm:$0xff] %v4496_v57  ;;  %v2977_v40 = vmul.f32 0.5, %v2753_v60  ;;  %5111 = vtanh.f32 %v2327_v1  ;;  %v2328_v36 = vmul.f32 0.5, %v2186_v52  ;;  %v2006_v6 = vadd.f32 %v6600_v28, %v6699_v58 }
 0x281   : > { %v2754_v5 = vadd.f32 1.0, %v5096_v49  ;;  %5113 = vtanh.f32 %v2321_v48  ;;  %v2008_v29 = vadd.f32 %v6606_v38, %v6709_v13  ;;  %v6798_v34 = vpop.f32.mrf.mxu1  ;;  %v2191_v43 = vadd.f32 %v4529_v26, %v6723_v53 }
 0x282   : > { %v5098_v47 = vpop.eup %5097  ;;  %5115 = vtanh.f32 %v2328_v36  ;;  %v4532_v11 = vadd.f32 %v7200_v12, %v6602_v19  ;;  %v2012_v8 = vadd.f32 %v6613_v15, %v6699_v58  ;;  %v2340_v28 = vmul.f32 0.5, %v2006_v6  ;;  %v6805_v60 = vpop.f32.mrf.mxu0 }
 0x283   : > { %v5100_v9 = vpop.eup %5099  ;;  %v2978_v3 = vmul.f32 0.5, %v2754_v5  ;;  %v2760_v57 = vadd.f32 1.0, %v5098_v47  ;;  %5117 = vtanh.f32 %v2333_v55  ;;  %v6807_v38 = vpop.f32.mrf.mxu1  ;;  %v2335_v48 = vmul.f32 0.5, %v2191_v43 }
 0x284   : > { %v5102_v1 = vpop.eup %5101  ;;  %v2755_v52 = vadd.f32 1.0, %v5100_v9  ;;  %5119 = vtanh.f32 %v2334_v14  ;;  %v2341_v49 = vmul.f32 0.5, %v2008_v29  ;;  %v2194_v55 = vadd.f32 %v4532_v11, %v6723_v53  ;;  %v6813_v29 = vpop.f32.mrf.mxu0 }
 0x285   : > { %v4373_v36 = vpack.c.bf16 %v2978_v3, %v2977_v40  ;;  %v2984_v19 = vmul.f32 0.5, %v2760_v57  ;;  %v2761_v22 = vadd.f32 1.0, %v5102_v1  ;;  %5121 = vtanh.f32 %v2340_v28  ;;  %v5104_v15 = vpop.eup %5103  ;;  %v6815_v40 = vpop.f32.mrf.mxu1 }
 0x286   : > { %v2979_v51 = vmul.f32 0.5, %v2755_v52  ;;  %5123 = vtanh.f32 %v2335_v48  ;;  %v2347_v26 = vmul.f32 0.5, %v2012_v8  ;;  %v5106_v5 = vpop.eup %5105  ;;  %v2767_v47 = vadd.f32 1.0, %v5104_v15  ;;  %v7201_v52 = vld [vmem:[#allocation5_spill] sm:$0xff] }
 0x287   : > { %3903 = vst [vmem:[%s6124_s14 + $0x10] sm:$0xff] %v4373_v36  ;;  %v2985_v6 = vmul.f32 0.5, %v2761_v22  ;;  %5125 = vtanh.f32 %v2341_v49  ;;  %v2014_v14 = vadd.f32 %v6622_v56, %v6709_v13  ;;  %v5108_v43 = vpop.eup %5107  ;;  %v2762_v9 = vadd.f32 1.0, %v5106_v5  ;;  %v6828_v22 = vpop.f32.mrf.mxu0 }
 0x288   : > { %v4374_v12 = vpack.c.bf16 %v2979_v51, %v2979_v51  ;;  %v2342_v3 = vmul.f32 0.5, %v2194_v55  ;;  %5127 = vtanh.f32 %v2347_v26  ;;  %v2991_v8 = vmul.f32 0.5, %v2767_v47  ;;  %v6830_v15 = vpop.f32.mrf.mxu1  ;;  %v7202_v26 = vld [vmem:[#allocation6_spill] sm:$0xff] }
 0x289   : > { %v4377_v11 = vpack.c.bf16 %v2985_v6, %v2984_v19  ;;  %v2768_v57 = vadd.f32 1.0, %v5108_v43  ;;  %v2348_v28 = vmul.f32 0.5, %v2014_v14  ;;  %v2986_v1 = vmul.f32 0.5, %v2762_v9 }
 0x28a   : > { %3905 = vst.msk [vmem:[%s6124_s14 + $0x18] sm:$0xf] %vm3904_vm0, %v4374_v12  ;;  %5129 = vtanh.f32 %v2342_v3  ;;  %v4535_v56 = vadd.f32 %v6624_v31, %v7201_v52  ;;  %v2016_v48 = vadd.f32 %v6631_v45, %v6699_v58  ;;  %v2018_v36 = vadd.f32 %v6640_v18, %v6709_v13 }
 0x28b   : > { %3908 = vst [vmem:[%s6124_s14 + $0x2c] sm:$0xff] %v4377_v11  ;;  %v2992_v49 = vmul.f32 0.5, %v2768_v57  ;;  %5131 = vtanh.f32 %v2348_v28  ;;  %v4538_v19 = vadd.f32 %v6642_v30, %v6633_v23  ;;  %v4378_v55 = vpack.c.bf16 %v2986_v1, %v2986_v1  ;;  %v6839_v1 = vpop.f32.mrf.mxu0 }
 0x28c   : > { %v5110_v51 = vpop.eup %5109  ;;  %v2199_v31 = vadd.f32 %v4535_v56, %v6723_v53  ;;  %v2354_v45 = vmul.f32 0.5, %v2016_v48  ;;  %v2022_v5 = vadd.f32 %v7202_v26, %v6699_v58  ;;  %v2355_v18 = vmul.f32 0.5, %v2018_v36 }
 0x28d   : > { %v5112_v6 = vpop.eup %5111  ;;  %v4381_v47 = vpack.c.bf16 %v2992_v49, %v2991_v8  ;;  %v2774_v14 = vadd.f32 1.0, %v5110_v51  ;;  %v2202_v43 = vadd.f32 %v4538_v19, %v6723_v53  ;;  %3909 = vst.msk [vmem:[%s6124_s14 + $0x34] sm:$0xf] %vm3904_vm0, %v4378_v55  ;;  %v6841_v8 = vpop.f32.mrf.mxu1  ;;  %v2024_v49 = vadd.f32 %v6651_v20, %v6709_v13 }
 0x28e   : > { %v5114_v23 = vpop.eup %5113  ;;  %v2775_v30 = vadd.f32 1.0, %v5112_v6  ;;  %v2349_v12 = vmul.f32 0.5, %v2199_v31  ;;  %5133 = vtanh.f32 %v2354_v45  ;;  %v2361_v9 = vmul.f32 0.5, %v2022_v5 }
 0x28f   : > { %v5116_v3 = vpop.eup %5115  ;;  %3912 = vst [vmem:[%s6124_s14 + $0x48] sm:$0xff] %v4381_v47  ;;  %v2769_v11 = vadd.f32 1.0, %v5114_v23  ;;  %v2998_v57 = vmul.f32 0.5, %v2774_v14  ;;  %5135 = vtanh.f32 %v2355_v18  ;;  %v2356_v28 = vmul.f32 0.5, %v2202_v43  ;;  %v6847_v43 = vpop.f32.mrf.mxu0 }
 0x290   : > { %v5118_v52 = vpop.eup %5117  ;;  %v2999_v56 = vmul.f32 0.5, %v2775_v30  ;;  %v2776_v48 = vadd.f32 1.0, %v5116_v3  ;;  %5137 = vtanh.f32 %v2349_v12  ;;  %v4541_v55 = vadd.f32 %v6653_v59, %v6649_v54  ;;  %v6849_v23 = vpop.f32.mrf.mxu1 }
 0x291   : > { %v5120_v36 = vpop.eup %5119  ;;  %v2993_v19 = vmul.f32 0.5, %v2769_v11  ;;  %v2781_v51 = vadd.f32 1.0, %v5118_v52  ;;  %5139 = vtanh.f32 %v2356_v28  ;;  %v2362_v20 = vmul.f32 0.5, %v2024_v49  ;;  %v7203_v28 = vld [vmem:[#allocation7_spill] sm:$0xff] }
 0x292   : > { %v5122_v31 = vpop.eup %5121  ;;  %v4385_v45 = vpack.c.bf16 %v2999_v56, %v2998_v57  ;;  %v3000_v26 = vmul.f32 0.5, %v2776_v48  ;;  %v2782_v5 = vadd.f32 1.0, %v5120_v36  ;;  %5141 = vtanh.f32 %v2361_v9 }
 0x293   : > { %v5124_v6 = vpop.eup %5123  ;;  %v4382_v47 = vpack.c.bf16 %v2993_v19, %v2993_v19  ;;  %v3005_v14 = vmul.f32 0.5, %v2781_v51  ;;  %v2788_v18 = vadd.f32 1.0, %v5122_v31  ;;  %v2207_v3 = vadd.f32 %v4541_v55, %v6723_v53 }
 0x294   : > { %v5126_v30 = vpop.eup %5125  ;;  %3916 = vst [vmem:[%s6124_s14 + $0x64] sm:$0xff] %v4385_v45  ;;  %v4386_v12 = vpack.c.bf16 %v3000_v26, %v3000_v26  ;;  %v3006_v54 = vmul.f32 0.5, %v2782_v5  ;;  %v2783_v59 = vadd.f32 1.0, %v5124_v6  ;;  %5143 = vtanh.f32 %v2362_v20  ;;  %v6863_v26 = vpop.f32.mrf.mxu0 }
 0x295   : > { %v5128_v11 = vpop.eup %5127  ;;  %3913 = vst.msk [vmem:[%s6124_s14 + $0x50] sm:$0xf] %vm3904_vm0, %v4382_v47  ;;  %v3012_v9 = vmul.f32 0.5, %v2788_v18  ;;  %v2789_v57 = vadd.f32 1.0, %v5126_v30  ;;  %v2026_v52 = vadd.f32 %v7203_v28, %v6699_v58  ;;  %v2363_v36 = vmul.f32 0.5, %v2207_v3  ;;  %v6865_v5 = vpop.f32.mrf.mxu1 }
 0x296   : > { %3917 = vst.msk [vmem:[%s6124_s14 + $0x6c] sm:$0xf] %vm3904_vm0, %v4386_v12  ;;  %v4389_v56 = vpack.c.bf16 %v3006_v54, %v3005_v14  ;;  %v3007_v48 = vmul.f32 0.5, %v2783_v59  ;;  %v2795_v49 = vadd.f32 1.0, %v5128_v11  ;;  %v2028_v31 = vadd.f32 %v6666_v37, %v6709_v13 }
 0x297   : > { %v5130_v19 = vpop.eup %5129  ;;  %v3013_v51 = vmul.f32 0.5, %v2789_v57  ;;  %v2368_v55 = vmul.f32 0.5, %v2026_v52  ;;  %v4544_v45 = vadd.f32 %v6668_v2, %v6662_v7  ;;  %5145 = vtanh.f32 %v2363_v36  ;;  %v6880_v57 = vpop.f32.mrf.mxu0 }
 0x298   : > { %v5132_v6 = vpop.eup %5131  ;;  %3920 = vst [vmem:[%s6124_s14 + $0x80] sm:$0xff] %v4389_v56  ;;  %v4390_v47 = vpack.c.bf16 %v3007_v48, %v3007_v48  ;;  %v2790_v14 = vadd.f32 1.0, %v5130_v19  ;;  %v3019_v18 = vmul.f32 0.5, %v2795_v49  ;;  %v2369_v12 = vmul.f32 0.5, %v2028_v31  ;;  %v6882_v28 = vpop.f32.mrf.mxu1 }
 0x299   : > { %v4393_v20 = vpack.c.bf16 %v3013_v51, %v3012_v9  ;;  %v2796_v30 = vadd.f32 1.0, %v5132_v6  ;;  %5147 = vtanh.f32 %v2368_v55  ;;  %v2210_v7 = vadd.f32 %v4544_v45, %v6723_v53 }
 0x29a   : > { %3921 = vst.msk [vmem:[%s6124_s14 + $0x88] sm:$0xf] %vm3904_vm0, %v4390_v47  ;;  %v3014_v37 = vmul.f32 0.5, %v2790_v14  ;;  %v2032_v2 = vadd.f32 %v6678_v32, %v6699_v58  ;;  %v2034_v54 = vadd.f32 %v6686_v4, %v6709_v13  ;;  %5149 = vtanh.f32 %v2369_v12 }
 0x29b   : > { %v5134_v59 = vpop.eup %5133  ;;  %3924 = vst [vmem:[%s6124_s14 + $0x9c] sm:$0xff] %v4393_v20  ;;  %v3020_v3 = vmul.f32 0.5, %v2796_v30  ;;  %v4547_v11 = vadd.f32 %v6688_v44, %v6680_v25  ;;  %v2036_v9 = vadd.f32 %v6692_v41, %v6699_v58  ;;  %v2370_v4 = vmul.f32 0.5, %v2210_v7  ;;  %v6888_v20 = vpop.f32.mrf.mxu0 }
 0x29c   : > { %v5136_v52 = vpop.eup %5135  ;;  %v4394_v32 = vpack.c.bf16 %v3014_v37, %v3014_v37  ;;  %v2802_v56 = vadd.f32 1.0, %v5134_v59  ;;  %v2375_v48 = vmul.f32 0.5, %v2032_v2  ;;  %v2376_v51 = vmul.f32 0.5, %v2034_v54  ;;  %v7204_v54 = vld [vmem:[#allocation8_spill] sm:$0xff]  ;;  %v7205_v59 = vld [vmem:[#allocation9_spill] sm:$0xff] }
 0x29d   : > { %v5138_v49 = vpop.eup %5137  ;;  %v4397_v36 = vpack.c.bf16 %v3020_v3, %v3019_v18  ;;  %v2803_v19 = vadd.f32 1.0, %v5136_v52  ;;  %v2215_v55 = vadd.f32 %v4547_v11, %v6723_v53  ;;  %5151 = vtanh.f32 %v2370_v4  ;;  %v6890_v18 = vpop.f32.mrf.mxu1 }
 0x29e   : > { %v5140_v25 = vpop.eup %5139  ;;  %3925 = vst.msk [vmem:[%s6124_s14 + $0xa4] sm:$0xf] %vm3904_vm0, %v4394_v32  ;;  %v2797_v44 = vadd.f32 1.0, %v5138_v49  ;;  %v3026_v41 = vmul.f32 0.5, %v2802_v56  ;;  %v2382_v31 = vmul.f32 0.5, %v2036_v9  ;;  %5153 = vtanh.f32 %v2375_v48 }
 0x29f   : > { %v5142_v45 = vpop.eup %5141  ;;  %3928 = vst [vmem:[%s6124_s14 + $0xb8] sm:$0xff] %v4397_v36  ;;  %v3027_v6 = vmul.f32 0.5, %v2803_v19  ;;  %v2804_v47 = vadd.f32 1.0, %v5140_v25  ;;  %v2377_v14 = vmul.f32 0.5, %v2215_v55  ;;  %5155 = vtanh.f32 %v2376_v51  ;;  %v6900_v36 = vpop.f32.mrf.mxu0 }
 0x2a0   : > { %v3021_v30 = vmul.f32 0.5, %v2797_v44  ;;  %v2809_v12 = vadd.f32 1.0, %v5142_v45  ;;  %v2038_v37 = vadd.f32 %v6703_v46, %v6709_v13  ;;  %v4550_v3 = vadd.f32 %v7205_v59, %v7204_v54  ;;  %v7206_v46 = vld [vmem:[#allocation10_spill] sm:$0xff]  ;;  %v6902_v19 = vpop.f32.mrf.mxu1 }
 0x2a1   : > { %v4401_v7 = vpack.c.bf16 %v3027_v6, %v3026_v41  ;;  %v3028_v2 = vmul.f32 0.5, %v2804_v47  ;;  %5157 = vtanh.f32 %v2377_v14  ;;  %v5144_v11 = vpop.eup %5143  ;;  %v2042_v49 = vadd.f32 %v7206_v46, %v6699_v58 }
 0x2a2   : > { %v4398_v9 = vpack.c.bf16 %v3021_v30, %v3021_v30  ;;  %v3033_v52 = vmul.f32 0.5, %v2809_v12  ;;  %5159 = vtanh.f32 %v2382_v31  ;;  %v2383_v32 = vmul.f32 0.5, %v2038_v37  ;;  %v6917_v37 = vpop.f32.mrf.mxu0 }
 0x2a3   : > { %3932 = vst [vmem:[%s6124_s14 + $0xd4] sm:$0xff] %v4401_v7  ;;  %v4402_v56 = vpack.c.bf16 %v3028_v2, %v3028_v2  ;;  %v2810_v4 = vadd.f32 1.0, %v5144_v11  ;;  %v2218_v48 = vadd.f32 %v4550_v3, %v6723_v53  ;;  %v2044_v51 = vadd.f32 %v6718_v33, %v6709_v13  ;;  %v6919_v7 = vpop.f32.mrf.mxu1 }
 0x2a4   : > { %3929 = vst.msk [vmem:[%s6124_s14 + $0xc0] sm:$0xf] %vm3904_vm0, %v4398_v9  ;;  %5161 = vtanh.f32 %v2383_v32  ;;  %v4553_v55 = vadd.f32 %v6720_v61, %v6714_v35  ;;  %v2046_v25 = vadd.f32 %v6730_v10, %v6699_v58  ;;  %v5146_v44 = vpop.eup %5145  ;;  %v2389_v45 = vmul.f32 0.5, %v2042_v49  ;;  %v7207_v9 = vld [vmem:[#allocation11_spill] sm:$0xff] }
 0x2a5   : > { %3933 = vst.msk [vmem:[%s6124_s14 + $0xdc] sm:$0xf] %vm3904_vm0, %v4402_v56  ;;  %v3034_v41 = vmul.f32 0.5, %v2810_v4  ;;  %v2384_v31 = vmul.f32 0.5, %v2218_v48  ;;  %v2048_v6 = vadd.f32 %v6737_v27, %v6709_v13  ;;  %v2811_v14 = vadd.f32 1.0, %v5146_v44  ;;  %v7208_v4 = vld [vmem:[#allocation13_spill] sm:$0xff]  ;;  %v6933_v44 = vpop.f32.mrf.mxu1 }
 0x2a6   : > { %v5148_v47 = vpop.eup %5147  ;;  %v2390_v30 = vmul.f32 0.5, %v2044_v51  ;;  %v2223_v33 = vadd.f32 %v4553_v55, %v6723_v53  ;;  %v2396_v12 = vmul.f32 0.5, %v2046_v25  ;;  %v4556_v27 = vadd.f32 %v6739_v16, %v6732_v62  ;;  %v7209_v62 = vld [vmem:[#allocation12_spill] sm:$0xff]  ;;  %v7210_v16 = vld [vmem:[#allocation14_spill] sm:$0xff]  ;;  %v6931_v25 = vpop.f32.mrf.mxu0 }
 0x2a7   : > { %v4405_v35 = vpack.c.bf16 %v3034_v41, %v3033_v52  ;;  %v2816_v61 = vadd.f32 1.0, %v5148_v47  ;;  %5163 = vtanh.f32 %v2384_v31  ;;  %v2397_v10 = vmul.f32 0.5, %v2048_v6  ;;  %v5150_v2 = vpop.eup %5149 }
 0x2a8   : > { %v3035_v54 = vmul.f32 0.5, %v2811_v14  ;;  %5165 = vtanh.f32 %v2389_v45  ;;  %v2391_v59 = vmul.f32 0.5, %v2223_v33  ;;  %v2817_v11 = vadd.f32 1.0, %v5150_v2 }
 0x2a9   : > { %3936 = vst [vmem:[%s6124_s14 + $0xf0] sm:$0xff] %v4405_v35  ;;  %v3040_v3 = vmul.f32 0.5, %v2816_v61  ;;  %5167 = vtanh.f32 %v2390_v30  ;;  %v2052_v52 = vadd.f32 %v7207_v9, %v6699_v58  ;;  %v2226_v56 = vadd.f32 %v4556_v27, %v6723_v53 }
 0x2aa   : > { %v4406_v32 = vpack.c.bf16 %v3035_v54, %v3035_v54  ;;  %5169 = vtanh.f32 %v2391_v59  ;;  %v2054_v48 = vadd.f32 %v7208_v4, %v6709_v13  ;;  %v5152_v46 = vpop.eup %5151  ;;  %v3041_v49 = vmul.f32 0.5, %v2817_v11  ;;  %v6941_v11 = vpop.f32.mrf.mxu0 }
 0x2ab   : > { %5171 = vtanh.f32 %v2396_v12  ;;  %v2403_v51 = vmul.f32 0.5, %v2052_v52  ;;  %v4559_v55 = vadd.f32 %v7210_v16, %v7209_v62  ;;  %v5154_v41 = vpop.eup %5153  ;;  %v2818_v31 = vadd.f32 1.0, %v5152_v46 }
 0x2ac   : > { %3937 = vst.msk [vmem:[%s6124_s14 + $0xf8] sm:$0xf] %vm3904_vm0, %v4406_v32  ;;  %5173 = vtanh.f32 %v2397_v10  ;;  %v2398_v45 = vmul.f32 0.5, %v2226_v56  ;;  %v2404_v6 = vmul.f32 0.5, %v2054_v48  ;;  %v5156_v47 = vpop.eup %5155  ;;  %v4409_v14 = vpack.c.bf16 %v3041_v49, %v3040_v3  ;;  %v6943_v3 = vpop.f32.mrf.mxu1 }
 0x2ad   : > { %v2823_v30 = vadd.f32 1.0, %v5154_v41  ;;  %5175 = vtanh.f32 %v2403_v51  ;;  %v2231_v33 = vadd.f32 %v4559_v55, %v6723_v53  ;;  %v3042_v35 = vmul.f32 0.5, %v2818_v31 }
 0x2ae   : > { %v5158_v12 = vpop.eup %5157  ;;  %v2824_v61 = vadd.f32 1.0, %v5156_v47  ;;  %5177 = vtanh.f32 %v2398_v45  ;;  %v2056_v2 = vadd.f32 %v6758_v42, %v6699_v58  ;;  %3940 = vst [vmem:[%s6124_s14 + $0x10c] sm:$0xff] %v4409_v14  ;;  %v2058_v42 = vadd.f32 %v6767_v39, %v6709_v13  ;;  %v6954_v45 = vpop.f32.mrf.mxu0 }
 0x2af   : > { %v5160_v54 = vpop.eup %5159  ;;  %v3047_v59 = vmul.f32 0.5, %v2823_v30  ;;  %v2825_v10 = vadd.f32 1.0, %v5158_v12  ;;  %5179 = vtanh.f32 %v2404_v6  ;;  %v2405_v27 = vmul.f32 0.5, %v2231_v33  ;;  %v6956_v39 = vpop.f32.mrf.mxu1 }
 0x2b0   : > { %v4410_v9 = vpack.c.bf16 %v3042_v35, %v3042_v35  ;;  %v3048_v52 = vmul.f32 0.5, %v2824_v61  ;;  %v2830_v32 = vadd.f32 1.0, %v5160_v54  ;;  %v2410_v56 = vmul.f32 0.5, %v2056_v2 }
 0x2b1   : > { %v5162_v4 = vpop.eup %5161  ;;  %v3049_v48 = vmul.f32 0.5, %v2825_v10  ;;  %5181 = vtanh.f32 %v2405_v27  ;;  %v4562_v46 = vadd.f32 %v6769_v50, %v6760_v17  ;;  %v2411_v55 = vmul.f32 0.5, %v2058_v42  ;;  %v6970_v27 = vpop.f32.mrf.mxu1 }
 0x2b2   : > { %3941 = vst.msk [vmem:[%s6124_s14 + $0x114] sm:$0xf] %vm3904_vm0, %v4410_v9  ;;  %v4413_v49 = vpack.c.bf16 %v3048_v52, %v3047_v59  ;;  %v3054_v51 = vmul.f32 0.5, %v2830_v32  ;;  %v2831_v62 = vadd.f32 1.0, %v5162_v4  ;;  %5183 = vtanh.f32 %v2410_v56 }
 0x2b3   : > { %v4414_v16 = vpack.c.bf16 %v3049_v48, %v3049_v48  ;;  %v2234_v41 = vadd.f32 %v4562_v46, %v6723_v53  ;;  %v2062_v31 = vadd.f32 %v6781_v21, %v6699_v58  ;;  %v2064_v50 = vadd.f32 %v6787_v0, %v6709_v13 }
 0x2b4   : > { %v5164_v6 = vpop.eup %5163  ;;  %3944 = vst [vmem:[%s6124_s14 + $0x128] sm:$0xff] %v4413_v49  ;;  %v3055_v17 = vmul.f32 0.5, %v2831_v62  ;;  %v4565_v47 = vadd.f32 %v6789_v24, %v6783_v63  ;;  %v2066_v14 = vadd.f32 %v6798_v34, %v6699_v58  ;;  %5185 = vtanh.f32 %v2411_v55  ;;  %v6968_v34 = vpop.f32.mrf.mxu0 }
 0x2b5   : > { %v5166_v30 = vpop.eup %5165  ;;  %3945 = vst.msk [vmem:[%s6124_s14 + $0x130] sm:$0xf] %vm3904_vm0, %v4414_v16  ;;  %v2832_v21 = vadd.f32 1.0, %v5164_v6  ;;  %v2412_v33 = vmul.f32 0.5, %v2234_v41  ;;  %v2417_v12 = vmul.f32 0.5, %v2062_v31  ;;  %v2418_v54 = vmul.f32 0.5, %v2064_v50  ;;  %v6979_v50 = vpop.f32.mrf.mxu1 }
 0x2b6   : > { %v5168_v35 = vpop.eup %5167  ;;  %v4417_v61 = vpack.c.bf16 %v3055_v17, %v3054_v51  ;;  %v2837_v2 = vadd.f32 1.0, %v5166_v30  ;;  %v2239_v0 = vadd.f32 %v4565_v47, %v6723_v53  ;;  %v2424_v24 = vmul.f32 0.5, %v2066_v14  ;;  %v6977_v17 = vpop.f32.mrf.mxu0 }
 0x2b7   : > { %v5170_v59 = vpop.eup %5169  ;;  %v3056_v10 = vmul.f32 0.5, %v2832_v21  ;;  %v2838_v63 = vadd.f32 1.0, %v5168_v35  ;;  %5187 = vtanh.f32 %v2412_v33  ;;  %v2068_v16 = vadd.f32 %v6807_v38, %v6709_v13 }
 0x2b8   : > { %v5172_v9 = vpop.eup %5171  ;;  %3948 = vst [vmem:[%s6124_s14 + $0x144] sm:$0xff] %v4417_v61  ;;  %v3061_v52 = vmul.f32 0.5, %v2837_v2  ;;  %v2839_v32 = vadd.f32 1.0, %v5170_v59  ;;  %5189 = vtanh.f32 %v2417_v12  ;;  %v2419_v56 = vmul.f32 0.5, %v2239_v0 }
 0x2b9   : > { %v5174_v4 = vpop.eup %5173  ;;  %v4418_v48 = vpack.c.bf16 %v3056_v10, %v3056_v10  ;;  %v3062_v42 = vmul.f32 0.5, %v2838_v63  ;;  %v2844_v46 = vadd.f32 1.0, %v5172_v9  ;;  %5191 = vtanh.f32 %v2418_v54 }
 0x2ba   : > { %v5176_v49 = vpop.eup %5175  ;;  %v3063_v51 = vmul.f32 0.5, %v2839_v32  ;;  %v2845_v62 = vadd.f32 1.0, %v5174_v4  ;;  %5193 = vtanh.f32 %v2419_v56  ;;  %v2425_v33 = vmul.f32 0.5, %v2068_v16 }
 0x2bb   : > { %v5178_v55 = vpop.eup %5177  ;;  %3949 = vst.msk [vmem:[%s6124_s14 + $0x14c] sm:$0xf] %vm3904_vm0, %v4418_v48  ;;  %v4421_v41 = vpack.c.bf16 %v3062_v42, %v3061_v52  ;;  %v3068_v31 = vmul.f32 0.5, %v2844_v46  ;;  %v2851_v6 = vadd.f32 1.0, %v5176_v49  ;;  %5195 = vtanh.f32 %v2424_v24 }
 0x2bc   : > { %v5180_v47 = vpop.eup %5179  ;;  %v4422_v14 = vpack.c.bf16 %v3063_v51, %v3063_v51  ;;  %v3069_v30 = vmul.f32 0.5, %v2845_v62  ;;  %v2846_v21 = vadd.f32 1.0, %v5178_v55  ;;  %v4568_v35 = vadd.f32 %v6813_v29, %v6805_v60  ;;  %v6991_v60 = vpop.f32.mrf.mxu0 }
 0x2bd   : > { %3952 = vst [vmem:[%s6124_s14 + $0x160] sm:$0xff] %v4421_v41  ;;  %v3075_v12 = vmul.f32 0.5, %v2851_v6  ;;  %v2852_v38 = vadd.f32 1.0, %v5180_v47  ;;  %v2072_v61 = vadd.f32 %v6815_v40, %v6699_v58  ;;  %5197 = vtanh.f32 %v2425_v33  ;;  %v6993_v29 = vpop.f32.mrf.mxu1 }
 0x2be   : > { %v5182_v2 = vpop.eup %5181  ;;  %3953 = vst.msk [vmem:[%s6124_s14 + $0x168] sm:$0xf] %vm3904_vm0, %v4422_v14  ;;  %v4425_v54 = vpack.c.bf16 %v3069_v30, %v3068_v31  ;;  %v3070_v0 = vmul.f32 0.5, %v2846_v21  ;;  %v2074_v59 = vadd.f32 %v6830_v15, %v6709_v13  ;;  %v2242_v9 = vadd.f32 %v4568_v35, %v6723_v53 }
 0x2bf   : > { %v5184_v10 = vpop.eup %5183  ;;  %v3076_v63 = vmul.f32 0.5, %v2852_v38  ;;  %v2853_v24 = vadd.f32 1.0, %v5182_v2  ;;  %v2431_v52 = vmul.f32 0.5, %v2072_v61  ;;  %v4571_v4 = vadd.f32 %v6839_v1, %v6828_v22  ;;  %v7006_v1 = vpop.f32.mrf.mxu0 }
 0x2c0   : > { %3956 = vst [vmem:[%s6124_s14 + $0x17c] sm:$0xff] %v4425_v54  ;;  %v4426_v40 = vpack.c.bf16 %v3070_v0, %v3070_v0  ;;  %v2858_v32 = vadd.f32 1.0, %v5184_v10  ;;  %v2432_v56 = vmul.f32 0.5, %v2074_v59  ;;  %v2426_v42 = vmul.f32 0.5, %v2242_v9  ;;  %v7008_v41 = vpop.f32.mrf.mxu1 }
 0x2c1   : > { %v4429_v15 = vpack.c.bf16 %v3076_v63, %v3075_v12  ;;  %v3077_v48 = vmul.f32 0.5, %v2853_v24  ;;  %5199 = vtanh.f32 %v2431_v52  ;;  %v5186_v46 = vpop.eup %5185  ;;  %v2247_v51 = vadd.f32 %v4571_v4, %v6723_v53  ;;  %v7019_v0 = vpop.f32.mrf.mxu0 }
 0x2c2   : > { %3957 = vst.msk [vmem:[%s6124_s14 + $0x184] sm:$0xf] %vm3904_vm0, %v4426_v40  ;;  %v3082_v49 = vmul.f32 0.5, %v2858_v32  ;;  %5201 = vtanh.f32 %v2432_v56  ;;  %v2076_v62 = vadd.f32 %v6841_v8, %v6699_v58  ;;  %v2859_v55 = vadd.f32 1.0, %v5186_v46  ;;  %v7021_v59 = vpop.f32.mrf.mxu1 }
 0x2c3   : > { %3960 = vst [vmem:[%s6124_s14 + $0x198] sm:$0xff] %v4429_v15  ;;  %v4430_v16 = vpack.c.bf16 %v3077_v48, %v3077_v48  ;;  %5203 = vtanh.f32 %v2426_v42  ;;  %v2078_v22 = vadd.f32 %v6849_v23, %v6709_v13  ;;  %v2433_v6 = vmul.f32 0.5, %v2247_v51  ;;  %v7032_v51 = vpop.f32.mrf.mxu0 }
 0x2c4   : > { %v5188_v31 = vpop.eup %5187  ;;  %v2438_v47 = vmul.f32 0.5, %v2076_v62  ;;  %v4574_v14 = vadd.f32 %v6863_v26, %v6847_v43  ;;  %v2082_v8 = vadd.f32 %v6865_v5, %v6699_v58  ;;  %v3083_v21 = vmul.f32 0.5, %v2859_v55  ;;  %v7034_v62 = vpop.f32.mrf.mxu1 }
 0x2c5   : > { %v5190_v30 = vpop.eup %5189  ;;  %3961 = vst.msk [vmem:[%s6124_s14 + $0x1a0] sm:$0xf] %vm3904_vm0, %v4430_v16  ;;  %v2860_v33 = vadd.f32 1.0, %v5188_v31  ;;  %v2439_v12 = vmul.f32 0.5, %v2078_v22  ;;  %v2084_v23 = vadd.f32 %v6882_v28, %v6709_v13  ;;  %5205 = vtanh.f32 %v2433_v6 }
 0x2c6   : > { %v5192_v38 = vpop.eup %5191  ;;  %v2865_v35 = vadd.f32 1.0, %v5190_v30  ;;  %v2250_v61 = vadd.f32 %v4574_v14, %v6723_v53  ;;  %v2445_v2 = vmul.f32 0.5, %v2082_v8  ;;  %v4433_v26 = vpack.c.bf16 %v3083_v21, %v3082_v49 }
 0x2c7   : > { %v5194_v43 = vpop.eup %5193  ;;  %v3084_v54 = vmul.f32 0.5, %v2860_v33  ;;  %v2866_v5 = vadd.f32 1.0, %v5192_v38  ;;  %5207 = vtanh.f32 %v2438_v47  ;;  %v2446_v56 = vmul.f32 0.5, %v2084_v23  ;;  %v7049_v33 = vpop.f32.mrf.mxu0 }
 0x2c8   : > { %v5196_v10 = vpop.eup %5195  ;;  %v3089_v63 = vmul.f32 0.5, %v2865_v35  ;;  %v2867_v28 = vadd.f32 1.0, %v5194_v43  ;;  %5209 = vtanh.f32 %v2439_v12  ;;  %v2440_v24 = vmul.f32 0.5, %v2250_v61  ;;  %3964 = vst [vmem:[%s6124_s14 + $0x1b4] sm:$0xff] %v4433_v26 }
 0x2c9   : > { %v4434_v9 = vpack.c.bf16 %v3084_v54, %v3084_v54  ;;  %v3090_v52 = vmul.f32 0.5, %v2866_v5  ;;  %v2872_v40 = vadd.f32 1.0, %v5196_v10  ;;  %5211 = vtanh.f32 %v2445_v2 }
 0x2ca   : > { %v3091_v32 = vmul.f32 0.5, %v2867_v28  ;;  %5213 = vtanh.f32 %v2440_v24  ;;  %v4577_v4 = vadd.f32 %v6888_v20, %v6880_v57  ;;  %v5198_v15 = vpop.eup %5197  ;;  %v2086_v46 = vadd.f32 %v6890_v18, %v6699_v58 }
 0x2cb   : > { %3965 = vst.msk [vmem:[%s6124_s14 + $0x1bc] sm:$0xf] %vm3904_vm0, %v4434_v9  ;;  %v4437_v48 = vpack.c.bf16 %v3090_v52, %v3089_v63  ;;  %v3096_v42 = vmul.f32 0.5, %v2872_v40  ;;  %v2088_v49 = vadd.f32 %v6902_v19, %v6709_v13  ;;  %v2873_v55 = vadd.f32 1.0, %v5198_v15  ;;  %v7061_v63 = vpop.f32.mrf.mxu0 }
 0x2cc   : > { %v4438_v16 = vpack.c.bf16 %v3091_v32, %v3091_v32  ;;  %5215 = vtanh.f32 %v2446_v56  ;;  %v2255_v57 = vadd.f32 %v4577_v4, %v6723_v53  ;;  %v2452_v20 = vmul.f32 0.5, %v2086_v46 }
 0x2cd   : > { %3968 = vst [vmem:[%s6124_s14 + $0x1d0] sm:$0xff] %v4437_v48  ;;  %v2453_v22 = vmul.f32 0.5, %v2088_v49  ;;  %v4580_v31 = vadd.f32 %v6917_v37, %v6900_v36  ;;  %v2092_v18 = vadd.f32 %v6919_v7, %v6699_v58  ;;  %v3097_v19 = vmul.f32 0.5, %v2873_v55  ;;  %v7051_v7 = vpop.f32.mrf.mxu1  ;;  %v7071_v55 = vpop.f32.mrf.mxu0 }
 0x2ce   : > { %v5200_v6 = vpop.eup %5199  ;;  %3969 = vst.msk [vmem:[%s6124_s14 + $0x1d8] sm:$0xf] %vm3904_vm0, %v4438_v16  ;;  %v2447_v47 = vmul.f32 0.5, %v2255_v57  ;;  %v2094_v14 = vadd.f32 %v6933_v44, %v6709_v13  ;;  %v4583_v8 = vadd.f32 %v6941_v11, %v6931_v25  ;;  %5217 = vtanh.f32 %v2452_v20 }
 0x2cf   : > { %v5202_v30 = vpop.eup %5201  ;;  %v2879_v21 = vadd.f32 1.0, %v5200_v6  ;;  %v2258_v36 = vadd.f32 %v4580_v31, %v6723_v53  ;;  %v2459_v37 = vmul.f32 0.5, %v2092_v18  ;;  %v4441_v23 = vpack.c.bf16 %v3097_v19, %v3096_v42  ;;  %v7063_v28 = vpop.f32.mrf.mxu1 }
 0x2d0   : > { %v5204_v12 = vpop.eup %5203  ;;  %v2880_v38 = vadd.f32 1.0, %v5202_v30  ;;  %5219 = vtanh.f32 %v2447_v47  ;;  %v2460_v35 = vmul.f32 0.5, %v2094_v14  ;;  %v2263_v2 = vadd.f32 %v4583_v8, %v6723_v53 }
 0x2d1   : > { %v2874_v44 = vadd.f32 1.0, %v5204_v12  ;;  %v3103_v61 = vmul.f32 0.5, %v2879_v21  ;;  %5221 = vtanh.f32 %v2453_v22  ;;  %v2454_v25 = vmul.f32 0.5, %v2258_v36  ;;  %3972 = vst [vmem:[%s6124_s14 + $0x1ec] sm:$0xff] %v4441_v23  ;;  %v7073_v57 = vpop.f32.mrf.mxu1  ;;  %v7085_v23 = vpop.f32.mrf.mxu0 }
 0x2d2   : > { %v3104_v11 = vmul.f32 0.5, %v2880_v38  ;;  %5223 = vtanh.f32 %v2459_v37  ;;  %v2096_v43 = vadd.f32 %v6943_v3, %v6699_v58  ;;  %v5206_v26 = vpop.eup %5205  ;;  %v2098_v5 = vadd.f32 %v6956_v39, %v6709_v13 }
 0x2d3   : > { %v3098_v54 = vmul.f32 0.5, %v2874_v44  ;;  %5225 = vtanh.f32 %v2454_v25  ;;  %v4586_v10 = vadd.f32 %v6968_v34, %v6954_v45  ;;  %v2881_v52 = vadd.f32 1.0, %v5206_v26 }
 0x2d4   : > { %v5208_v24 = vpop.eup %5207  ;;  %v4445_v9 = vpack.c.bf16 %v3104_v11, %v3103_v61  ;;  %5227 = vtanh.f32 %v2460_v35  ;;  %v2461_v3 = vmul.f32 0.5, %v2263_v2  ;;  %v2466_v4 = vmul.f32 0.5, %v2096_v43 }
 0x2d5   : > { %v5210_v40 = vpop.eup %5209  ;;  %v4442_v32 = vpack.c.bf16 %v3098_v54, %v3098_v54  ;;  %v2886_v56 = vadd.f32 1.0, %v5208_v24  ;;  %v2467_v15 = vmul.f32 0.5, %v2098_v5  ;;  %v3105_v39 = vmul.f32 0.5, %v2881_v52 }
 0x2d6   : > { %v5212_v48 = vpop.eup %5211  ;;  %3976 = vst [vmem:[%s6124_s14 + $0x208] sm:$0xff] %v4445_v9  ;;  %v2887_v42 = vadd.f32 1.0, %v5210_v40  ;;  %5229 = vtanh.f32 %v2461_v3  ;;  %v2266_v45 = vadd.f32 %v4586_v10, %v6723_v53  ;;  %v2102_v16 = vadd.f32 %v6970_v27, %v6699_v58  ;;  %v7097_v9 = vpop.f32.mrf.mxu0 }
 0x2d7   : > { %v5214_v34 = vpop.eup %5213  ;;  %3973 = vst.msk [vmem:[%s6124_s14 + $0x1f4] sm:$0xf] %vm3904_vm0, %v4442_v32  ;;  %v3110_v46 = vmul.f32 0.5, %v2886_v56  ;;  %v2893_v49 = vadd.f32 1.0, %v5212_v48  ;;  %5231 = vtanh.f32 %v2466_v4  ;;  %v4446_v20 = vpack.c.bf16 %v3105_v39, %v3105_v39 }
 0x2d8   : > { %v3111_v22 = vmul.f32 0.5, %v2887_v42  ;;  %v2888_v31 = vadd.f32 1.0, %v5214_v34  ;;  %5233 = vtanh.f32 %v2467_v15  ;;  %v2468_v19 = vmul.f32 0.5, %v2266_v45 }
 0x2d9   : > { %v5216_v18 = vpop.eup %5215  ;;  %v3117_v6 = vmul.f32 0.5, %v2893_v49  ;;  %v2473_v47 = vmul.f32 0.5, %v2102_v16  ;;  %v2104_v14 = vadd.f32 %v6979_v50, %v6709_v13  ;;  %3977 = vst.msk [vmem:[%s6124_s14 + $0x210] sm:$0xf] %vm3904_vm0, %v4446_v20  ;;  %v4589_v21 = vadd.f32 %v6991_v60, %v6977_v17  ;;  %v7087_v50 = vpop.f32.mrf.mxu1 }
 0x2da   : > { %v4449_v8 = vpack.c.bf16 %v3111_v22, %v3110_v46  ;;  %v3112_v27 = vmul.f32 0.5, %v2888_v31  ;;  %v2894_v30 = vadd.f32 1.0, %v5216_v18  ;;  %5235 = vtanh.f32 %v2468_v19  ;;  %v7105_v16 = vpop.f32.mrf.mxu0 }
 0x2db   : > { %v2474_v36 = vmul.f32 0.5, %v2104_v14  ;;  %v2106_v37 = vadd.f32 %v6993_v29, %v6699_v58  ;;  %v2108_v12 = vadd.f32 %v7008_v41, %v6709_v13  ;;  %v5218_v38 = vpop.eup %5217  ;;  %5237 = vtanh.f32 %v2473_v47  ;;  %v7099_v52 = vpop.f32.mrf.mxu1 }
 0x2dc   : > { %3980 = vst [vmem:[%s6124_s14 + $0x224] sm:$0xff] %v4449_v8  ;;  %v4450_v35 = vpack.c.bf16 %v3112_v27, %v3112_v27  ;;  %v3118_v44 = vmul.f32 0.5, %v2894_v30  ;;  %v2271_v17 = vadd.f32 %v4589_v21, %v6723_v53  ;;  %v2900_v61 = vadd.f32 1.0, %v5218_v38 }
 0x2dd   : > { %v5220_v60 = vpop.eup %5219  ;;  %5239 = vtanh.f32 %v2474_v36  ;;  %v2480_v25 = vmul.f32 0.5, %v2106_v37  ;;  %v2481_v29 = vmul.f32 0.5, %v2108_v12  ;;  %v4592_v26 = vadd.f32 %v7019_v0, %v7006_v1  ;;  %v7107_v20 = vpop.f32.mrf.mxu1 }
 0x2de   : > { %v5222_v11 = vpop.eup %5221  ;;  %3981 = vst.msk [vmem:[%s6124_s14 + $0x22c] sm:$0xf] %vm3904_vm0, %v4450_v35  ;;  %v4453_v41 = vpack.c.bf16 %v3118_v44, %v3117_v6  ;;  %v2895_v2 = vadd.f32 1.0, %v5220_v60  ;;  %v2475_v43 = vmul.f32 0.5, %v2271_v17  ;;  %v3124_v5 = vmul.f32 0.5, %v2900_v61 }
 0x2df   : > { %v5224_v54 = vpop.eup %5223  ;;  %v2901_v10 = vadd.f32 1.0, %v5222_v11  ;;  %5241 = vtanh.f32 %v2480_v25  ;;  %v2112_v24 = vadd.f32 %v7021_v59, %v6699_v58  ;;  %v2274_v56 = vadd.f32 %v4592_v26, %v6723_v53  ;;  %v7121_v38 = vpop.f32.mrf.mxu1 }
 0x2e0   : > { %v5226_v3 = vpop.eup %5225  ;;  %3984 = vst [vmem:[%s6124_s14 + $0x240] sm:$0xff] %v4453_v41  ;;  %v3119_v40 = vmul.f32 0.5, %v2895_v2  ;;  %v2907_v32 = vadd.f32 1.0, %v5224_v54  ;;  %5243 = vtanh.f32 %v2475_v43  ;;  %v2114_v49 = vadd.f32 %v7034_v62, %v6709_v13 }
 0x2e1   : > { %v5228_v4 = vpop.eup %5227  ;;  %v3125_v1 = vmul.f32 0.5, %v2901_v10  ;;  %v2902_v0 = vadd.f32 1.0, %v5226_v3  ;;  %5245 = vtanh.f32 %v2481_v29  ;;  %v2487_v15 = vmul.f32 0.5, %v2112_v24 }
 0x2e2   : > { %v4454_v48 = vpack.c.bf16 %v3119_v40, %v3119_v40  ;;  %v3131_v39 = vmul.f32 0.5, %v2907_v32  ;;  %v2908_v59 = vadd.f32 1.0, %v5228_v4  ;;  %v2482_v42 = vmul.f32 0.5, %v2274_v56 }
 0x2e3   : > { %v5230_v45 = vpop.eup %5229  ;;  %v4457_v34 = vpack.c.bf16 %v3125_v1, %v3124_v5  ;;  %v3126_v46 = vmul.f32 0.5, %v2902_v0  ;;  %5247 = vtanh.f32 %v2487_v15  ;;  %v4595_v6 = vadd.f32 %v7049_v33, %v7032_v51  ;;  %v4603_v33 = vpop.f32.mrf.mxu0 }
 0x2e4   : > { %v5232_v22 = vpop.eup %5231  ;;  %3985 = vst.msk [vmem:[%s6124_s14 + $0x248] sm:$0xf] %vm3904_vm0, %v4454_v48  ;;  %v3132_v31 = vmul.f32 0.5, %v2908_v59  ;;  %v2909_v18 = vadd.f32 1.0, %v5230_v45  ;;  %5249 = vtanh.f32 %v2482_v42  ;;  %v2488_v62 = vmul.f32 0.5, %v2114_v49  ;;  %v2133_v5 = vpop.f32.mrf.mxu1 }
 0x2e5   : > { %v5234_v19 = vpop.eup %5233  ;;  %3988 = vst [vmem:[%s6124_s14 + $0x25c] sm:$0xff] %v4457_v34  ;;  %v4458_v47 = vpack.c.bf16 %v3126_v46, %v3126_v46  ;;  %v2914_v14 = vadd.f32 1.0, %v5232_v22  ;;  %v2116_v8 = vadd.f32 %v7051_v7, %v6699_v58  ;;  %v2279_v36 = vadd.f32 %v4595_v6, %v6723_v53 }
 0x2e6   : > { %v4461_v27 = vpack.c.bf16 %v3132_v31, %v3131_v39  ;;  %v3133_v30 = vmul.f32 0.5, %v2909_v18  ;;  %v2915_v21 = vadd.f32 1.0, %v5234_v19  ;;  %5251 = vtanh.f32 %v2488_v62  ;;  %v2135_v45 = vpop.f32.mrf.mxu1 }
 0x2e7   : > { %3989 = vst.msk [vmem:[%s6124_s14 + $0x264] sm:$0xf] %vm3904_vm0, %v4458_v47  ;;  %v3138_v37 = vmul.f32 0.5, %v2914_v14  ;;  %v2494_v12 = vmul.f32 0.5, %v2116_v8  ;;  %v2118_v51 = vadd.f32 %v7063_v28, %v6709_v13  ;;  %v5236_v35 = vpop.eup %5235  ;;  %v2489_v17 = vmul.f32 0.5, %v2279_v36 }
 0x2e8   : > { %3992 = vst [vmem:[%s6124_s14 + $0x278] sm:$0xff] %v4461_v27  ;;  %v4462_v7 = vpack.c.bf16 %v3133_v30, %v3133_v30  ;;  %v3139_v44 = vmul.f32 0.5, %v2915_v21  ;;  %v4598_v60 = vadd.f32 %v7071_v55, %v7061_v63  ;;  %v5238_v61 = vpop.eup %5237  ;;  %v2916_v25 = vadd.f32 1.0, %v5236_v35  ;;  %v4605_v55 = vpop.f32.mrf.mxu0 }
 0x2e9   : > { %5253 = vtanh.f32 %v2494_v12  ;;  %v2495_v29 = vmul.f32 0.5, %v2118_v51  ;;  %v2122_v11 = vadd.f32 %v7073_v57, %v6699_v58  ;;  %v2921_v2 = vadd.f32 1.0, %v5238_v61 }
 0x2ea   : > { %v5240_v28 = vpop.eup %5239  ;;  %3993 = vst.msk [vmem:[%s6124_s14 + $0x280] sm:$0xf] %vm3904_vm0, %v4462_v7  ;;  %v4465_v41 = vpack.c.bf16 %v3139_v44, %v3138_v37  ;;  %5255 = vtanh.f32 %v2489_v17  ;;  %v2282_v43 = vadd.f32 %v4598_v60, %v6723_v53  ;;  %v3140_v26 = vmul.f32 0.5, %v2916_v25 }
 0x2eb   : > { %v2922_v54 = vadd.f32 1.0, %v5240_v28  ;;  %5257 = vtanh.f32 %v2495_v29  ;;  %v2501_v63 = vmul.f32 0.5, %v2122_v11  ;;  %v3145_v24 = vmul.f32 0.5, %v2921_v2 }
 0x2ec   : > { %v5242_v10 = vpop.eup %5241  ;;  %3996 = vst [vmem:[%s6124_s14 + $0x294] sm:$0xff] %v4465_v41  ;;  %v2496_v3 = vmul.f32 0.5, %v2282_v43  ;;  %v2124_v57 = vadd.f32 %v7087_v50, %v6709_v13  ;;  %v4601_v40 = vadd.f32 %v7097_v9, %v7085_v23  ;;  %v4466_v56 = vpack.c.bf16 %v3140_v26, %v3140_v26  ;;  %v4606_v9 = vpop.f32.mrf.mxu0 }
 0x2ed   : > { %v5244_v32 = vpop.eup %5243  ;;  %v3146_v4 = vmul.f32 0.5, %v2922_v54  ;;  %v2928_v1 = vadd.f32 1.0, %v5242_v10  ;;  %5259 = vtanh.f32 %v2501_v63  ;;  %v2126_v23 = vadd.f32 %v7099_v52, %v6699_v58 }
 0x2ee   : > { %v5246_v0 = vpop.eup %5245  ;;  %v2923_v15 = vadd.f32 1.0, %v5244_v32  ;;  %5261 = vtanh.f32 %v2496_v3  ;;  %v2502_v48 = vmul.f32 0.5, %v2124_v57  ;;  %v2287_v39 = vadd.f32 %v4601_v40, %v6723_v53  ;;  %3997 = vst.msk [vmem:[%s6124_s14 + $0x29c] sm:$0xf] %vm3904_vm0, %v4466_v56  ;;  %v4608_v21 = vpop.f32.mrf.mxu0 }
 0x2ef   : > { %v4469_v59 = vpack.c.bf16 %v3146_v4, %v3145_v24  ;;  %v3152_v42 = vmul.f32 0.5, %v2928_v1  ;;  %v2929_v50 = vadd.f32 1.0, %v5246_v0  ;;  %v2128_v22 = vadd.f32 %v7107_v20, %v6709_v13  ;;  %v2137_v20 = vpop.f32.mrf.mxu1 }
 0x2f0   : > { %v5248_v34 = vpop.eup %5247  ;;  %v3147_v46 = vmul.f32 0.5, %v2923_v15  ;;  %5263 = vtanh.f32 %v2502_v48  ;;  %v2503_v49 = vmul.f32 0.5, %v2287_v39  ;;  %v2508_v19 = vmul.f32 0.5, %v2126_v23  ;;  %v4609_v41 = vpop.f32.mrf.mxu0 }
 0x2f1   : > { %v5250_v31 = vpop.eup %5249  ;;  %4000 = vst [vmem:[%s6124_s14 + $0x2b0] sm:$0xff] %v4469_v59  ;;  %v3153_v18 = vmul.f32 0.5, %v2929_v50  ;;  %v2935_v6 = vadd.f32 1.0, %v5248_v34  ;;  %v4604_v47 = vadd.f32 %v4603_v33, %v7105_v16  ;;  %v2509_v62 = vmul.f32 0.5, %v2128_v22 }
 0x2f2   : > { %v4470_v14 = vpack.c.bf16 %v3147_v46, %v3147_v46  ;;  %v2930_v52 = vadd.f32 1.0, %v5250_v31  ;;  %5265 = vtanh.f32 %v2503_v49  ;;  %v2132_v16 = vadd.f32 %v7121_v38, %v6699_v58 }
 0x2f3   : > { %v4473_v8 = vpack.c.bf16 %v3153_v18, %v3152_v42  ;;  %v3159_v27 = vmul.f32 0.5, %v2935_v6  ;;  %5267 = vtanh.f32 %v2508_v19  ;;  %v2290_v30 = vadd.f32 %v4604_v47, %v6723_v53  ;;  %v5252_v36 = vpop.eup %5251 }
 0x2f4   : > { %4001 = vst.msk [vmem:[%s6124_s14 + $0x2b8] sm:$0xf] %vm3904_vm0, %v4470_v14  ;;  %v3154_v37 = vmul.f32 0.5, %v2930_v52  ;;  %5269 = vtanh.f32 %v2509_v62  ;;  %v2134_v12 = vadd.f32 %v2133_v5, %v6709_v13  ;;  %v2936_v51 = vadd.f32 1.0, %v5252_v36 }
 0x2f5   : > { %4004 = vst [vmem:[%s6124_s14 + $0x2cc] sm:$0xff] %v4473_v8  ;;  %v2510_v33 = vmul.f32 0.5, %v2290_v30  ;;  %v4607_v35 = vadd.f32 %v4606_v9, %v4605_v55  ;;  %v2136_v7 = vadd.f32 %v2135_v45, %v6699_v58  ;;  %v2515_v60 = vmul.f32 0.5, %v2132_v16 }
 0x2f6   : > { %v5254_v44 = vpop.eup %5253  ;;  %v4474_v17 = vpack.c.bf16 %v3154_v37, %v3154_v37  ;;  %v2516_v61 = vmul.f32 0.5, %v2134_v12  ;;  %v2138_v25 = vadd.f32 %v2137_v20, %v6709_v13  ;;  %v3160_v11 = vmul.f32 0.5, %v2936_v51 }
 0x2f7   : > { %v5256_v29 = vpop.eup %5255  ;;  %v2942_v28 = vadd.f32 1.0, %v5254_v44  ;;  %5271 = vtanh.f32 %v2510_v33  ;;  %v2295_v38 = vadd.f32 %v4607_v35, %v6723_v53  ;;  %v2522_v58 = vmul.f32 0.5, %v2136_v7 }
 0x2f8   : > { %v5258_v2 = vpop.eup %5257  ;;  %4005 = vst.msk [vmem:[%s6124_s14 + $0x2d4] sm:$0xf] %vm3904_vm0, %v4474_v17  ;;  %v2937_v43 = vadd.f32 1.0, %v5256_v29  ;;  %5273 = vtanh.f32 %v2515_v60  ;;  %v2523_v26 = vmul.f32 0.5, %v2138_v25  ;;  %v4477_v54 = vpack.c.bf16 %v3160_v11, %v3159_v27 }
 0x2f9   : > { %v2943_v63 = vadd.f32 1.0, %v5258_v2  ;;  %5275 = vtanh.f32 %v2516_v61  ;;  %v2517_v5 = vmul.f32 0.5, %v2295_v38  ;;  %v4610_v10 = vadd.f32 %v4609_v41, %v4608_v21 }
 0x2fa   : > { %v5260_v55 = vpop.eup %5259  ;;  %v3161_v13 = vmul.f32 0.5, %v2937_v43  ;;  %5277 = vtanh.f32 %v2522_v58  ;;  %4008 = vst [vmem:[%s6124_s14 + $0x2e8] sm:$0xff] %v4477_v54  ;;  %v3166_v3 = vmul.f32 0.5, %v2942_v28 }
 0x2fb   : > { %v5262_v24 = vpop.eup %5261  ;;  %v3167_v57 = vmul.f32 0.5, %v2943_v63  ;;  %v2949_v40 = vadd.f32 1.0, %v5260_v55  ;;  %5279 = vtanh.f32 %v2523_v26  ;;  %v2298_v4 = vadd.f32 %v4610_v10, %v6723_v53 }
 0x2fc   : > { %v4478_v32 = vpack.c.bf16 %v3161_v13, %v3161_v13  ;;  %v2944_v56 = vadd.f32 1.0, %v5262_v24  ;;  %5281 = vtanh.f32 %v2517_v5 }
 0x2fd   : > { %v5264_v1 = vpop.eup %5263  ;;  %v4481_v0 = vpack.c.bf16 %v3167_v57, %v3166_v3  ;;  %v2524_v39 = vmul.f32 0.5, %v2298_v4  ;;  %v3173_v42 = vmul.f32 0.5, %v2949_v40 }
 0x2fe   : > { %4009 = vst.msk [vmem:[%s6124_s14 + $0x2f0] sm:$0xf] %vm3904_vm0, %v4478_v32  ;;  %v3168_v15 = vmul.f32 0.5, %v2944_v56  ;;  %v2950_v48 = vadd.f32 1.0, %v5264_v1 }
 0x2ff   : > { %v5266_v59 = vpop.eup %5265  ;;  %4012 = vst [vmem:[%s6124_s14 + $0x304] sm:$0xff] %v4481_v0  ;;  %5283 = vtanh.f32 %v2524_v39 }
 0x300   : > { %v5268_v50 = vpop.eup %5267  ;;  %v4482_v23 = vpack.c.bf16 %v3168_v15, %v3168_v15  ;;  %v3174_v9 = vmul.f32 0.5, %v2950_v48  ;;  %v2951_v45 = vadd.f32 1.0, %v5266_v59 }
 0x301   : > { %v5270_v34 = vpop.eup %5269  ;;  %v2956_v53 = vadd.f32 1.0, %v5268_v50 }
 0x302   : > { %4013 = vst.msk [vmem:[%s6124_s14 + $0x30c] sm:$0xf] %vm3904_vm0, %v4482_v23  ;;  %v4485_v46 = vpack.c.bf16 %v3174_v9, %v3173_v42  ;;  %v3175_v49 = vmul.f32 0.5, %v2951_v45  ;;  %v2957_v22 = vadd.f32 1.0, %v5270_v34 }
 0x303   : > { %v3180_v6 = vmul.f32 0.5, %v2956_v53 }
 0x304   : > { %v5272_v31 = vpop.eup %5271  ;;  %4016 = vst [vmem:[%s6124_s14 + $0x320] sm:$0xff] %v4485_v46  ;;  %v4486_v18 = vpack.c.bf16 %v3175_v49, %v3175_v49  ;;  %v3181_v19 = vmul.f32 0.5, %v2957_v22 }
 0x305   : > { %v5274_v47 = vpop.eup %5273  ;;  %v2958_v14 = vadd.f32 1.0, %v5272_v31 }
 0x306   : > { %v5276_v52 = vpop.eup %5275  ;;  %4017 = vst.msk [vmem:[%s6124_s14 + $0x328] sm:$0xf] %vm3904_vm0, %v4486_v18  ;;  %v4489_v62 = vpack.c.bf16 %v3181_v19, %v3180_v6  ;;  %v2963_v8 = vadd.f32 1.0, %v5274_v47 }
 0x307   : > { %v5278_v27 = vpop.eup %5277  ;;  %v3182_v30 = vmul.f32 0.5, %v2958_v14  ;;  %v2964_v21 = vadd.f32 1.0, %v5276_v52 }
 0x308   : > { %v5280_v20 = vpop.eup %5279  ;;  %4020 = vst [vmem:[%s6124_s14 + $0x33c] sm:$0xff] %v4489_v62  ;;  %v2970_v36 = vadd.f32 1.0, %v5278_v27  ;;  %v3187_v12 = vmul.f32 0.5, %v2963_v8 }
 0x309   : > { %v5282_v37 = vpop.eup %5281  ;;  %v4490_v16 = vpack.c.bf16 %v3182_v30, %v3182_v30  ;;  %v3188_v51 = vmul.f32 0.5, %v2964_v21  ;;  %v2971_v33 = vadd.f32 1.0, %v5280_v20 }
 0x30a   : > { %v2965_v35 = vadd.f32 1.0, %v5282_v37  ;;  %v3194_v44 = vmul.f32 0.5, %v2970_v36 }
 0x30b   : > { %4021 = vst.msk [vmem:[%s6124_s14 + $0x344] sm:$0xf] %vm3904_vm0, %v4490_v16  ;;  %v4493_v7 = vpack.c.bf16 %v3188_v51, %v3187_v12  ;;  %v3195_v17 = vmul.f32 0.5, %v2971_v33 }
 0x30c   : > { %v3189_v60 = vmul.f32 0.5, %v2965_v35  ;;  %v5284_v61 = vpop.eup %5283 }
 0x30d   : > { %4024 = vst [vmem:[%s6124_s14 + $0x358] sm:$0xff] %v4493_v7  ;;  %v4497_v25 = vpack.c.bf16 %v3195_v17, %v3194_v44  ;;  %v2972_v11 = vadd.f32 1.0, %v5284_v61 }
 0x30e   : > { %v4494_v29 = vpack.c.bf16 %v3189_v60, %v3189_v60 }
 0x30f   : > { %4028 = vst [vmem:[%s6124_s14 + $0x374] sm:$0xff] %v4497_v25  ;;  %v3196_v28 = vmul.f32 0.5, %v2972_v11 }
 0x310   : > { %4025 = vst.msk [vmem:[%s6124_s14 + $0x360] sm:$0xf] %vm3904_vm0, %v4494_v29 }
 0x311   : > { %v4498_v38 = vpack.c.bf16 %v3196_v28, %v3196_v28 }
 0x313   : > { %4029 = vst.msk [vmem:[%s6124_s14 + $0x37c] sm:$0xf] %vm3904_vm0, %v4498_v38 }
 0x314 PF: > { %s15_s18 = sadd.s32 1, %s5292_s18  }
 0x315   : > { %p12_p4 = scmp.ge.s32.totalorder %s15_s18, 6  }
 0x317   :  { %14 = sbr.rel (!%p12_p4) target bundleno = 1 (0x1), region = 70 }

</bundles_post_ra>
